<compile_context>
chip_gen: v6e
topology: v6e:2x2x1
jax: 0.10.0
libtpu: 0.0.40
codegen_flags: <defaults>
</compile_context>

<pallas_src>
import functools
import math

import jax
import jax.numpy as jnp
from jax.experimental import pallas as pl
from jax.experimental.pallas import tpu as pltpu

ACT_NONE, ACT_LEAKY, ACT_RELU = 0, 1, 2

NUM_LAYERS = 6
SECOND = 16            # second_layer_channels
CHANNELS = 1
IN_CH = CHANNELS * 2   # spectrogram_condition=True
TIME_DIM = SECOND * 4  # 64
KH = KW = 5
STRIDE = 2
PAD = 2
BN_EPS = 1e-5


# ----------------------------------------------------------------------------
# Fused matmul + affine + activation + per-row-add Pallas kernel
# ----------------------------------------------------------------------------
def _fused_mm_kernel(*refs, act, has_scale, has_add):
    it = iter(refs)
    x_ref = next(it)
    w_ref = next(it)
    scale_ref = next(it) if has_scale else None
    shift_ref = next(it)
    add_ref = next(it) if has_add else None
    o_ref = next(it)

    y = jnp.dot(x_ref[...], w_ref[...], preferred_element_type=jnp.float32)
    if has_scale:
        y = y * scale_ref[...]
    y = y + shift_ref[...]
    if act == ACT_LEAKY:
        y = jnp.where(y >= 0, y, 0.2 * y)          # LeakyReLU(0.2)
    elif act == ACT_RELU:
        y = jnp.maximum(y, 0.0)
    if has_add:
        y = y + add_ref[...]
    o_ref[...] = y.astype(o_ref.dtype)


def fused_matmul(x, w, scale, shift, add=None, act=ACT_NONE):
    """x: (R, K); w: (K, N); scale/shift: (N,) or None; add: (R, N) or None."""
    R, K = x.shape
    K2, N = w.shape
    assert K == K2, (x.shape, w.shape)

    args = [x.astype(jnp.bfloat16), w.astype(jnp.bfloat16)]
    in_specs = [
        pl.BlockSpec((R, K), lambda i: (0, 0)),
        pl.BlockSpec((K, N), lambda i: (0, 0)),
    ]
    if scale is not None:
        args.append(scale.reshape(1, N).astype(jnp.float32))
        in_specs.append(pl.BlockSpec((1, N), lambda i: (0, 0)))
    args.append(shift.reshape(1, N).astype(jnp.float32))
    in_specs.append(pl.BlockSpec((1, N), lambda i: (0, 0)))
    if add is not None:
        args.append(add.reshape(R, N).astype(jnp.float32))
        in_specs.append(pl.BlockSpec((R, N), lambda i: (0, 0)))

    return pl.pallas_call(
        functools.partial(_fused_mm_kernel, act=act,
                          has_scale=scale is not None, has_add=add is not None),
        out_shape=jax.ShapeDtypeStruct((R, N), jnp.float32),
        grid=(1,),
        in_specs=in_specs,
        out_specs=pl.BlockSpec((R, N), lambda i: (0, 0)),
        compiler_params=pltpu.CompilerParams(
            dimension_semantics=("arbitrary",),
            vmem_limit_bytes=32 * 1024 * 1024,   # safe on v5e/v6e/v7x; needs are << this
        ),
    )(*args)


# ----------------------------------------------------------------------------
# im2col glue (plain JAX), channels-last
# ----------------------------------------------------------------------------
def _im2col_nhwc(x, kh, kw, stride, pad):
    """x: (B, H, W, C) -> patches (B, Ho*Wo, kh*kw*C), K order = (i, j, c)."""
    xp = jnp.pad(x, ((0, 0), (pad, pad), (pad, pad), (0, 0)))
    B, Hp, Wp, C = xp.shape
    Ho = (Hp - kh) // stride + 1
    Wo = (Wp - kw) // stride + 1
    cols = []
    for i in range(kh):
        for j in range(kw):
            cols.append(xp[:, i:i + stride * Ho:stride, j:j + stride * Wo:stride, :])
    p = jnp.stack(cols, axis=3)                    # (B, Ho, Wo, kh*kw, C)
    return p.reshape(B, Ho * Wo, kh * kw * C), Ho, Wo


def make_phase_weight(w):
    """ConvTranspose2d(k=5, s=2, p=2, op=1) weight (Cin, Cout, 5, 5) ->
    combined sub-pixel weight (9*Cin, 4*Cout): rows ordered (di, dj, cin),
    cols ordered (pr, pc, cout); output pixel (2r+pr, 2c+pc) reads the 3x3
    input window centered at (r, c)."""
    Cin, Cout, kh, kw = w.shape
    zeros = jnp.zeros((Cin, Cout), w.dtype)
    taps = []
    for di in range(3):
        for dj in range(3):
            phases = []
            for pr in range(2):
                for pc in range(2):
                    i = 4 + pr - 2 * di
                    j = 4 + pc - 2 * dj
                    if 0 <= i < kh and 0 <= j < kw:
                        phases.append(w[:, :, i, j])
                    else:
                        phases.append(zeros)       # tap unused by this phase
            taps.append(jnp.stack(phases, axis=1))  # (Cin, 4, Cout)
    W = jnp.stack(taps, axis=1)                     # (Cin, 9, 4, Cout)
    return jnp.transpose(W, (1, 0, 2, 3)).reshape(9 * Cin, 4 * Cout)


def bn_fold(gamma, beta, rm, rv, conv_bias, eps=BN_EPS):
    a = gamma / jnp.sqrt(rv + eps)
    shift = (conv_bias - rm) * a + beta
    return a, shift


def sinusoidal_pos_emb(times, dim):
    half = dim // 2
    emb = math.log(10000.0) / (half - 1)
    freqs = jnp.exp(jnp.arange(half, dtype=jnp.float32) * -emb)
    args = times[:, None].astype(jnp.float32) * freqs[None, :]
    return jnp.concatenate([jnp.sin(args), jnp.cos(args)], axis=-1)


# ----------------------------------------------------------------------------
# Deterministic parameter init (shapes follow UNet.__init__ defaults)
# ----------------------------------------------------------------------------
def init_params(key):
    keys = list(jax.random.split(key, 96))
    ki = iter(keys)

    def norm(shape, fan_in):
        return jax.random.normal(next(ki), shape, jnp.float32) / math.sqrt(fan_in)

    def small(shape):
        return 0.01 * jax.random.normal(next(ki), shape, jnp.float32)

    params = {}

    conv = []
    cin = IN_CH
    for i in range(NUM_LAYERS):
        cout = SECOND * (2 ** i)
        conv.append(dict(
            w=norm((cout, cin, KH, KW), cin * KH * KW),
            b=small((cout,)),
            gamma=1.0 + 0.1 * jax.random.normal(next(ki), (cout,), jnp.float32),
            beta=0.1 * jax.random.normal(next(ki), (cout,), jnp.float32),
            rm=jnp.zeros((cout,), jnp.float32),
            rv=jnp.ones((cout,), jnp.float32),
        ))
        cin = cout
    params["conv"] = conv

    dims = [(SECOND * 2 ** (NUM_LAYERS - 1), SECOND * 2 ** (NUM_LAYERS - 2))]
    for i in range(NUM_LAYERS - 1, 1, -1):
        dims.append((SECOND * 2 ** i, SECOND * 2 ** (i - 2)))
    dims.append((SECOND * 2, IN_CH))
    deconv = []
    for (ci, co) in dims:
        deconv.append(dict(w=norm((ci, co, KH, KW), ci * KH * KW), b=small((co,))))
    params["deconv"] = deconv

    bad = []
    for i in range(NUM_LAYERS - 1, 0, -1):
        c = SECOND * 2 ** (i - 1)
        bad.append(dict(
            gamma=1.0 + 0.1 * jax.random.normal(next(ki), (c,), jnp.float32),
            beta=0.1 * jax.random.normal(next(ki), (c,), jnp.float32),
            rm=jnp.zeros((c,), jnp.float32),
            rv=jnp.ones((c,), jnp.float32),
        ))
    params["bad"] = bad

    params["time_mlp"] = dict(w=norm((TIME_DIM, TIME_DIM), TIME_DIM), b=small((TIME_DIM,)))

    tdims = [SECOND * 2 ** i for i in range(NUM_LAYERS)] + \
            [SECOND * 2 ** (i - 1) for i in range(NUM_LAYERS - 2, 0, -1)]
    params["temb"] = [dict(w=norm((TIME_DIM, d), TIME_DIM), b=small((d,))) for d in tdims]

    params["last"] = dict(w=norm((1, IN_CH, 1, 1), IN_CH), b=small((1,)))
    return params


# ----------------------------------------------------------------------------
# One-time weight re-layout / BN folding (runs once, outside the forward)
# ----------------------------------------------------------------------------
def prepare_params(params, in_hw):
    H, W = in_hw

    def conv_out(s):
        return (s + 2 * PAD - KH) // STRIDE + 1

    enc_hw = [(H, W)]
    for _ in range(NUM_LAYERS):
        h, w = enc_hw[-1]
        enc_hw.append((conv_out(h), conv_out(w)))

    bf16 = jnp.bfloat16
    prep = {"enc_hw": enc_hw}

    # --- time embedding projections (all 10 batched into one matmul) ---
    prep["time_mlp_w"] = params["time_mlp"]["w"].astype(bf16)
    prep["time_mlp_b"] = params["time_mlp"]["b"]
    temb_dims = [p["w"].shape[1] for p in params["temb"]]
    offs = [0]
    for d in temb_dims:
        offs.append(offs[-1] + d)
    prep["temb_dims"] = temb_dims
    prep["temb_off"] = offs[:-1]
    prep["temb_w"] = jnp.concatenate([p["w"] for p in params["temb"]], axis=1).astype(bf16)
    prep["temb_b"] = jnp.concatenate([p["b"] for p in params["temb"]], axis=0)

    # --- encoder convs (BN folded; 1x1-input layers become dense projections) ---
    prep["conv"] = []
    for i, p in enumerate(params["conv"]):
        w = p["w"]                                        # (Cout, Cin, 5, 5)
        cout = w.shape[0]
        scale, shift = bn_fold(p["gamma"], p["beta"], p["rm"], p["rv"], p["b"])
        if enc_hw[i] == (1, 1):
            wm = jnp.transpose(w[:, :, PAD, PAD], (1, 0))     # (Cin, Cout)
            kind = "pixel"
        else:
            wm = jnp.transpose(w, (2, 3, 1, 0)).reshape(-1, cout)
            kind = "full"
        prep["conv"].append(dict(kind=kind, w=wm.astype(bf16),
                                 scale=scale, shift=shift, n=cout))

    # --- deconv[0]: 1x1 -> 1x1 dense projection (bias only) ---
    d0 = params["deconv"][0]
    assert enc_hw[NUM_LAYERS] == (1, 1) and enc_hw[NUM_LAYERS - 1] == (1, 1)
    prep["deconv0"] = dict(w=d0["w"][:, :, PAD, PAD].astype(bf16),
                           shift=d0["b"], cout=d0["w"].shape[1])

    # --- decoder middle layers: Deconv + BN + ReLU (+ temb added in kernel) ---
    prep["dec"] = {}
    for i in range(1, NUM_LAYERS - 1):
        dp = params["deconv"][i]
        bp = params["bad"][i]
        w = dp["w"]                                       # (Cin, Cout, 5, 5)
        cout = w.shape[1]
        ih = enc_hw[NUM_LAYERS - i]
        oh = enc_hw[NUM_LAYERS - i - 1]
        scale_c, shift_c = bn_fold(bp["gamma"], bp["beta"], bp["rm"], bp["rv"], dp["b"])
        if ih == (1, 1):
            Ho, Wo = oh
            assert Ho <= KH - PAD and Wo <= KW - PAD
            wsel = jnp.transpose(w[:, :, PAD:PAD + Ho, PAD:PAD + Wo], (0, 2, 3, 1))
            wsel = wsel.reshape(w.shape[0], Ho * Wo * cout)   # cols = (oh, ow, cout)
            prep["dec"][i] = dict(kind="pixel", w=wsel.astype(bf16),
                                  scale=jnp.tile(scale_c, Ho * Wo),
                                  shift=jnp.tile(shift_c, Ho * Wo),
                                  cout=cout, out_hw=oh)
        else:
            assert oh == (2 * ih[0], 2 * ih[1])
            prep["dec"][i] = dict(kind="phase", w=make_phase_weight(w).astype(bf16),
                                  scale=jnp.tile(scale_c, 4),
                                  shift=jnp.tile(shift_c, 4),
                                  cout=cout)

    # --- last deconv fused with the 1x1 last_conv (no nonlinearity between) ---
    dl = params["deconv"][-1]
    lp = params["last"]
    w = dl["w"]                                           # (Cin, IN_CH, 5, 5)
    cout = w.shape[1]
    ih = enc_hw[1]
    assert (H, W) == (2 * ih[0], 2 * ih[1])
    wc = make_phase_weight(w).reshape(-1, 4, cout)        # (9*Cin, 4, Cout)
    w_last = lp["w"].reshape(1, cout)                     # (1, Cout)
    w_fused = jnp.einsum("kpc,oc->kpo", wc, w_last).reshape(-1, 4)
    shift_fused = jnp.broadcast_to(jnp.dot(dl["b"], w_last[0]) + lp["b"][0],
                                   (4,)).astype(jnp.float32)
    prep["last"] = dict(w=w_fused.astype(bf16), shift=shift_fused)
    return prep


# ----------------------------------------------------------------------------
# Forward pass (mirrors UNet.forward), NHWC internally
# ----------------------------------------------------------------------------
def unet_forward(prep, data, times, y_cond):
    B = data.shape[0]
    # spectrogram condition: cat((y_cond, data), dim=1); NCHW -> NHWC
    x = jnp.transpose(jnp.concatenate([y_cond, data], axis=1), (0, 2, 3, 1))

    # time_mlp: SinusoidalPosEmb -> Linear -> ReLU; then all temb Linears batched
    t = sinusoidal_pos_emb(times, TIME_DIM)
    t = fused_matmul(t, prep["time_mlp_w"], None, prep["time_mlp_b"], act=ACT_RELU)
    temb_all = fused_matmul(t, prep["temb_w"], None, prep["temb_b"], act=ACT_RELU)
    tembs = [temb_all[:, o:o + d] for o, d in zip(prep["temb_off"], prep["temb_dims"])]

    skips = [x]
    # encoder: Conv(s2) -> BN(eval) -> LeakyReLU(0.2), then += time_emb
    for i in range(NUM_LAYERS):
        lw = prep["conv"][i]
        n = lw["n"]
        if lw["kind"] == "pixel":
            xin = x.reshape(B, -1)
            Ho = Wo = 1
        else:
            patches, Ho, Wo = _im2col_nhwc(x, KH, KW, STRIDE, PAD)
            xin = patches.reshape(B * Ho * Wo, -1)
        add = jnp.broadcast_to(tembs[i][:, None, :], (B, Ho * Wo, n)).reshape(B * Ho * Wo, n)
        y = fused_matmul(xin, lw["w"], lw["scale"], lw["shift"], add=add, act=ACT_LEAKY)
        x = y.reshape(B, Ho, Wo, n)
        skips.append(x)

    # first deconv (no BN / act / time-emb): dense 1x1 projection
    d0 = prep["deconv0"]
    y = fused_matmul(x.reshape(B, -1), d0["w"], None, d0["shift"], act=ACT_NONE)
    x = y.reshape(B, 1, 1, d0["cout"])

    # decoder: Deconv(cat skip) -> BN(eval) -> ReLU -> [Dropout2d==id], += time_emb
    for i in range(1, NUM_LAYERS - 1):
        dp = prep["dec"][i]
        cout = dp["cout"]
        temb = tembs[NUM_LAYERS + i - 1]
        xin = jnp.concatenate([x, skips[NUM_LAYERS - i]], axis=-1)
        if dp["kind"] == "pixel":                       # 1x1 spatial input
            Ho, Wo = dp["out_hw"]
            add = jnp.tile(temb, (1, Ho * Wo))
            y = fused_matmul(xin.reshape(B, -1), dp["w"], dp["scale"], dp["shift"],
                             add=add, act=ACT_RELU)
            x = y.reshape(B, Ho, Wo, cout)
        else:                                           # 2x sub-pixel phase deconv
            Hin, Win = xin.shape[1], xin.shape[2]
            patches, _, _ = _im2col_nhwc(xin, 3, 3, 1, 1)
            R = B * Hin * Win
            add = jnp.broadcast_to(jnp.tile(temb, (1, 4))[:, None, :],
                                   (B, Hin * Win, 4 * cout)).reshape(R, 4 * cout)
            y = fused_matmul(patches.reshape(R, -1), dp["w"], dp["scale"], dp["shift"],
                             add=add, act=ACT_RELU)
            x = y.reshape(B, Hin, Win, 2, 2, cout).transpose(0, 1, 3, 2, 4, 5)
            x = x.reshape(B, 2 * Hin, 2 * Win, cout)

    # last deconv (no BN / act / time-emb) fused with the final 1x1 conv
    dl = prep["last"]
    xin = jnp.concatenate([x, skips[1]], axis=-1)
    Hin, Win = xin.shape[1], xin.shape[2]
    patches, _, _ = _im2col_nhwc(xin, 3, 3, 1, 1)
    y = fused_matmul(patches.reshape(B * Hin * Win, -1), dl["w"], None, dl["shift"],
                     act=ACT_NONE)                                   # (R, 4)
    x = y.reshape(B, Hin, Win, 2, 2, 1).transpose(0, 1, 3, 2, 4, 5)
    x = x.reshape(B, 2 * Hin, 2 * Win, 1)
    return jnp.transpose(x, (0, 3, 1, 2))               # back to NCHW


if __name__ == "__main__":
    key = jax.random.PRNGKey(0)
    kp, kd, kc, kt = jax.random.split(key, 4)
    params = init_params(kp)

    B, C, H, W = 2, CHANNELS, 16, 16
    data = jax.random.normal(kd, (B, C, H, W), jnp.float32)
    y_cond = jax.random.normal(kc, (B, C, H, W), jnp.float32)
    times = jax.random.uniform(kt, (B,), jnp.float32, 0.0, 1000.0)

    prep = prepare_params(params, (H, W))
    fwd = jax.jit(functools.partial(unet_forward, prep))
    out = jax.block_until_ready(fwd(data, times, y_cond))
    assert out.shape == (B, 1, H, W), out.shape
    assert bool(jnp.all(jnp.isfinite(out)))
    print("KERNEL_OK")
</pallas_src>

<mosaic_0001>
module attributes {stable_mosaic.version = 11 : i64} {
  func.func @_fused_mm_kernel(%arg0: i32, %arg1: memref<2x64xbf16, #tpu.memory_space<vmem>>, %arg2: memref<64x64xbf16, #tpu.memory_space<vmem>>, %arg3: memref<1x64xf32, #tpu.memory_space<vmem>>, %arg4: memref<2x64xf32, #tpu.memory_space<vmem>>) attributes {dimension_semantics = [#tpu.dimension_semantics<arbitrary>], iteration_bounds = array<i64: 1>, scalar_prefetch = 0 : i64, scratch_operands = 0 : i64, tpu.core_type = #tpu.core_type<tc>, window_params = [{pipeline_mode = #tpu.pipeline_mode<synchronous>, transform_indices = @transform_0, window_bounds = array<i64: 2, 64>}, {pipeline_mode = #tpu.pipeline_mode<synchronous>, transform_indices = @transform_1, window_bounds = array<i64: 64, 64>}, {pipeline_mode = #tpu.pipeline_mode<synchronous>, transform_indices = @transform_2, window_bounds = array<i64: 1, 64>}, {pipeline_mode = #tpu.pipeline_mode<synchronous>, transform_indices = @transform_3, window_bounds = array<i64: 2, 64>}]} {
    %c0 = arith.constant 0 : index
    %c0_0 = arith.constant 0 : index
    %0 = vector.load %arg1[%c0, %c0_0] : memref<2x64xbf16, #tpu.memory_space<vmem>>, vector<2x64xbf16>
    %c0_1 = arith.constant 0 : index
    %c0_2 = arith.constant 0 : index
    %1 = vector.load %arg2[%c0_1, %c0_2] : memref<64x64xbf16, #tpu.memory_space<vmem>>, vector<64x64xbf16>
    %cst = arith.constant dense<0.000000e+00> : vector<2x64xf32>
    %2 = tpu.matmul %0, %1, %cst {dimension_numbers = #tpu.dot_dimension_numbers<[1], [0], [0], [1], [0, 0, 1, 1], [], []>} : vector<2x64xbf16>, vector<64x64xbf16>, vector<2x64xf32> -> vector<2x64xf32>
    %c0_3 = arith.constant 0 : index
    %c0_4 = arith.constant 0 : index
    %3 = vector.load %arg3[%c0_3, %c0_4] : memref<1x64xf32, #tpu.memory_space<vmem>>, vector<1x64xf32>
    %4 = vector.broadcast %3 : vector<1x64xf32> to vector<2x64xf32>
    %5 = arith.addf %2, %4 : vector<2x64xf32>
    %cst_5 = arith.constant 0.000000e+00 : f32
    %6 = vector.broadcast %cst_5 : f32 to vector<2x64xf32>
    %7 = arith.maximumf %5, %6 : vector<2x64xf32>
    %c0_6 = arith.constant 0 : index
    %c0_7 = arith.constant 0 : index
    %8 = vector.load %arg4[%c0_6, %c0_7] : memref<2x64xf32, #tpu.memory_space<vmem>>, vector<2x64xf32>
    tpu.vector_store %arg4[%c0_6, %c0_7], %7 {strides = array<i32>} : memref<2x64xf32, #tpu.memory_space<vmem>>, vector<2x64xf32>,
    return
  }
  func.func @transform_0(%arg0: i32) -> (i32, i32) {
    %c0_i32 = arith.constant 0 : i32
    %c0_i32_0 = arith.constant 0 : i32
    %c0_i32_1 = arith.constant 0 : i32
    return %c0_i32, %c0_i32_0 : i32, i32
  }
  func.func @transform_1(%arg0: i32) -> (i32, i32) {
    %c0_i32 = arith.constant 0 : i32
    %c0_i32_0 = arith.constant 0 : i32
    %c0_i32_1 = arith.constant 0 : i32
    return %c0_i32, %c0_i32_0 : i32, i32
  }
  func.func @transform_2(%arg0: i32) -> (i32, i32) {
    %c0_i32 = arith.constant 0 : i32
    %c0_i32_0 = arith.constant 0 : i32
    %c0_i32_1 = arith.constant 0 : i32
    return %c0_i32, %c0_i32_0 : i32, i32
  }
  func.func @transform_3(%arg0: i32) -> (i32, i32) {
    %c0_i32 = arith.constant 0 : i32
    %c0_i32_0 = arith.constant 0 : i32
    %c0_i32_1 = arith.constant 0 : i32
    return %c0_i32, %c0_i32_0 : i32, i32
  }
}

module attributes {stable_mosaic.version = 11 : i64} {
  func.func @_fused_mm_kernel(%arg0: i32, %arg1: memref<2x64xbf16, #tpu.memory_space<vmem>>, %arg2: memref<64x1248xbf16, #tpu.memory_space<vmem>>, %arg3: memref<1x1248xf32, #tpu.memory_space<vmem>>, %arg4: memref<2x1248xf32, #tpu.memory_space<vmem>>) attributes {dimension_semantics = [#tpu.dimension_semantics<arbitrary>], iteration_bounds = array<i64: 1>, scalar_prefetch = 0 : i64, scratch_operands = 0 : i64, tpu.core_type = #tpu.core_type<tc>, window_params = [{pipeline_mode = #tpu.pipeline_mode<synchronous>, transform_indices = @transform_0, window_bounds = array<i64: 2, 64>}, {pipeline_mode = #tpu.pipeline_mode<synchronous>, transform_indices = @transform_1, window_bounds = array<i64: 64, 1248>}, {pipeline_mode = #tpu.pipeline_mode<synchronous>, transform_indices = @transform_2, window_bounds = array<i64: 1, 1248>}, {pipeline_mode = #tpu.pipeline_mode<synchronous>, transform_indices = @transform_3, window_bounds = array<i64: 2, 1248>}]} {
    %c0 = arith.constant 0 : index
    %c0_0 = arith.constant 0 : index
    %0 = vector.load %arg1[%c0, %c0_0] : memref<2x64xbf16, #tpu.memory_space<vmem>>, vector<2x64xbf16>
    %c0_1 = arith.constant 0 : index
    %c0_2 = arith.constant 0 : index
    %1 = vector.load %arg2[%c0_1, %c0_2] : memref<64x1248xbf16, #tpu.memory_space<vmem>>, vector<64x1248xbf16>
    %cst = arith.constant dense<0.000000e+00> : vector<2x1248xf32>
    %2 = tpu.matmul %0, %1, %cst {dimension_numbers = #tpu.dot_dimension_numbers<[1], [0], [0], [1], [0, 0, 1, 1], [], []>} : vector<2x64xbf16>, vector<64x1248xbf16>, vector<2x1248xf32> -> vector<2x1248xf32>
    %c0_3 = arith.constant 0 : index
    %c0_4 = arith.constant 0 : index
    %3 = vector.load %arg3[%c0_3, %c0_4] : memref<1x1248xf32, #tpu.memory_space<vmem>>, vector<1x1248xf32>
    %4 = vector.broadcast %3 : vector<1x1248xf32> to vector<2x1248xf32>
    %5 = arith.addf %2, %4 : vector<2x1248xf32>
    %cst_5 = arith.constant 0.000000e+00 : f32
    %6 = vector.broadcast %cst_5 : f32 to vector<2x1248xf32>
    %7 = arith.maximumf %5, %6 : vector<2x1248xf32>
    %c0_6 = arith.constant 0 : index
    %c0_7 = arith.constant 0 : index
    %8 = vector.load %arg4[%c0_6, %c0_7] : memref<2x1248xf32, #tpu.memory_space<vmem>>, vector<2x1248xf32>
    tpu.vector_store %arg4[%c0_6, %c0_7], %7 {strides = array<i32>} : memref<2x1248xf32, #tpu.memory_space<vmem>>, vector<2x1248xf32>,
    return
  }
  func.func @transform_0(%arg0: i32) -> (i32, i32) {
    %c0_i32 = arith.constant 0 : i32
    %c0_i32_0 = arith.constant 0 : i32
    %c0_i32_1 = arith.constant 0 : i32
    return %c0_i32, %c0_i32_0 : i32, i32
  }
  func.func @transform_1(%arg0: i32) -> (i32, i32) {
    %c0_i32 = arith.constant 0 : i32
    %c0_i32_0 = arith.constant 0 : i32
    %c0_i32_1 = arith.constant 0 : i32
    return %c0_i32, %c0_i32_0 : i32, i32
  }
  func.func @transform_2(%arg0: i32) -> (i32, i32) {
    %c0_i32 = arith.constant 0 : i32
    %c0_i32_0 = arith.constant 0 : i32
    %c0_i32_1 = arith.constant 0 : i32
    return %c0_i32, %c0_i32_0 : i32, i32
  }
  func.func @transform_3(%arg0: i32) -> (i32, i32) {
    %c0_i32 = arith.constant 0 : i32
    %c0_i32_0 = arith.constant 0 : i32
    %c0_i32_1 = arith.constant 0 : i32
    return %c0_i32, %c0_i32_0 : i32, i32
  }
}

module attributes {stable_mosaic.version = 11 : i64} {
  func.func @_fused_mm_kernel(%arg0: i32, %arg1: memref<128x50xbf16, #tpu.memory_space<vmem>>, %arg2: memref<50x16xbf16, #tpu.memory_space<vmem>>, %arg3: memref<1x16xf32, #tpu.memory_space<vmem>>, %arg4: memref<1x16xf32, #tpu.memory_space<vmem>>, %arg5: memref<128x16xf32, #tpu.memory_space<vmem>>, %arg6: memref<128x16xf32, #tpu.memory_space<vmem>>) attributes {dimension_semantics = [#tpu.dimension_semantics<arbitrary>], iteration_bounds = array<i64: 1>, scalar_prefetch = 0 : i64, scratch_operands = 0 : i64, tpu.core_type = #tpu.core_type<tc>, window_params = [{pipeline_mode = #tpu.pipeline_mode<synchronous>, transform_indices = @transform_0, window_bounds = array<i64: 128, 50>}, {pipeline_mode = #tpu.pipeline_mode<synchronous>, transform_indices = @transform_1, window_bounds = array<i64: 50, 16>}, {pipeline_mode = #tpu.pipeline_mode<synchronous>, transform_indices = @transform_2, window_bounds = array<i64: 1, 16>}, {pipeline_mode = #tpu.pipeline_mode<synchronous>, transform_indices = @transform_3, window_bounds = array<i64: 1, 16>}, {pipeline_mode = #tpu.pipeline_mode<synchronous>, transform_indices = @transform_4, window_bounds = array<i64: 128, 16>}, {pipeline_mode = #tpu.pipeline_mode<synchronous>, transform_indices = @transform_5, window_bounds = array<i64: 128, 16>}]} {
    %c0 = arith.constant 0 : index
    %c0_0 = arith.constant 0 : index
    %0 = vector.load %arg1[%c0, %c0_0] : memref<128x50xbf16, #tpu.memory_space<vmem>>, vector<128x50xbf16>
    %c0_1 = arith.constant 0 : index
    %c0_2 = arith.constant 0 : index
    %1 = vector.load %arg2[%c0_1, %c0_2] : memref<50x16xbf16, #tpu.memory_space<vmem>>, vector<50x16xbf16>
    %cst = arith.constant dense<0.000000e+00> : vector<128x16xf32>
    %2 = tpu.matmul %0, %1, %cst {dimension_numbers = #tpu.dot_dimension_numbers<[1], [0], [0], [1], [0, 0, 1, 1], [], []>} : vector<128x50xbf16>, vector<50x16xbf16>, vector<128x16xf32> -> vector<128x16xf32>
    %c0_3 = arith.constant 0 : index
    %c0_4 = arith.constant 0 : index
    %3 = vector.load %arg3[%c0_3, %c0_4] : memref<1x16xf32, #tpu.memory_space<vmem>>, vector<1x16xf32>
    %4 = vector.broadcast %3 : vector<1x16xf32> to vector<128x16xf32>
    %5 = arith.mulf %2, %4 : vector<128x16xf32>
    %c0_5 = arith.constant 0 : index
    %c0_6 = arith.constant 0 : index
    %6 = vector.load %arg4[%c0_5, %c0_6] : memref<1x16xf32, #tpu.memory_space<vmem>>, vector<1x16xf32>
    %7 = vector.broadcast %6 : vector<1x16xf32> to vector<128x16xf32>
    %8 = arith.addf %5, %7 : vector<128x16xf32>
    %cst_7 = arith.constant 0.000000e+00 : f32
    %9 = vector.broadcast %cst_7 : f32 to vector<128x16xf32>
    %10 = arith.cmpf oge, %8, %9 : vector<128x16xf32>
    %cst_8 = arith.constant 2.000000e-01 : f32
    %11 = vector.broadcast %cst_8 : f32 to vector<128x16xf32>
    %12 = arith.mulf %11, %8 : vector<128x16xf32>
    %13 = arith.select %10, %8, %12 : vector<128x16xi1>, vector<128x16xf32>
    %c0_9 = arith.constant 0 : index
    %c0_10 = arith.constant 0 : index
    %14 = vector.load %arg5[%c0_9, %c0_10] : memref<128x16xf32, #tpu.memory_space<vmem>>, vector<128x16xf32>
    %15 = arith.addf %13, %14 : vector<128x16xf32>
    %c0_11 = arith.constant 0 : index
    %c0_12 = arith.constant 0 : index
    %16 = vector.load %arg6[%c0_11, %c0_12] : memref<128x16xf32, #tpu.memory_space<vmem>>, vector<128x16xf32>
    tpu.vector_store %arg6[%c0_11, %c0_12], %15 {strides = array<i32>} : memref<128x16xf32, #tpu.memory_space<vmem>>, vector<128x16xf32>,
    return
  }
  func.func @transform_0(%arg0: i32) -> (i32, i32) {
    %c0_i32 = arith.constant 0 : i32
    %c0_i32_0 = arith.constant 0 : i32
    %c0_i32_1 = arith.constant 0 : i32
    return %c0_i32, %c0_i32_0 : i32, i32
  }
  func.func @transform_1(%arg0: i32) -> (i32, i32) {
    %c0_i32 = arith.constant 0 : i32
    %c0_i32_0 = arith.constant 0 : i32
    %c0_i32_1 = arith.constant 0 : i32
    return %c0_i32, %c0_i32_0 : i32, i32
  }
  func.func @transform_2(%arg0: i32) -> (i32, i32) {
    %c0_i32 = arith.constant 0 : i32
    %c0_i32_0 = arith.constant 0 : i32
    %c0_i32_1 = arith.constant 0 : i32
    return %c0_i32, %c0_i32_0 : i32, i32
  }
  func.func @transform_3(%arg0: i32) -> (i32, i32) {
    %c0_i32 = arith.constant 0 : i32
    %c0_i32_0 = arith.constant 0 : i32
    %c0_i32_1 = arith.constant 0 : i32
    return %c0_i32, %c0_i32_0 : i32, i32
  }
  func.func @transform_4(%arg0: i32) -> (i32, i32) {
    %c0_i32 = arith.constant 0 : i32
    %c0_i32_0 = arith.constant 0 : i32
    %c0_i32_1 = arith.constant 0 : i32
    return %c0_i32, %c0_i32_0 : i32, i32
  }
  func.func @transform_5(%arg0: i32) -> (i32, i32) {
    %c0_i32 = arith.constant 0 : i32
    %c0_i32_0 = arith.constant 0 : i32
    %c0_i32_1 = arith.constant 0 : i32
    return %c0_i32, %c0_i32_0 : i32, i32
  }
}

module attributes {stable_mosaic.version = 11 : i64} {
  func.func @_fused_mm_kernel(%arg0: i32, %arg1: memref<32x400xbf16, #tpu.memory_space<vmem>>, %arg2: memref<400x32xbf16, #tpu.memory_space<vmem>>, %arg3: memref<1x32xf32, #tpu.memory_space<vmem>>, %arg4: memref<1x32xf32, #tpu.memory_space<vmem>>, %arg5: memref<32x32xf32, #tpu.memory_space<vmem>>, %arg6: memref<32x32xf32, #tpu.memory_space<vmem>>) attributes {dimension_semantics = [#tpu.dimension_semantics<arbitrary>], iteration_bounds = array<i64: 1>, scalar_prefetch = 0 : i64, scratch_operands = 0 : i64, tpu.core_type = #tpu.core_type<tc>, window_params = [{pipeline_mode = #tpu.pipeline_mode<synchronous>, transform_indices = @transform_0, window_bounds = array<i64: 32, 400>}, {pipeline_mode = #tpu.pipeline_mode<synchronous>, transform_indices = @transform_1, window_bounds = array<i64: 400, 32>}, {pipeline_mode = #tpu.pipeline_mode<synchronous>, transform_indices = @transform_2, window_bounds = array<i64: 1, 32>}, {pipeline_mode = #tpu.pipeline_mode<synchronous>, transform_indices = @transform_3, window_bounds = array<i64: 1, 32>}, {pipeline_mode = #tpu.pipeline_mode<synchronous>, transform_indices = @transform_4, window_bounds = array<i64: 32, 32>}, {pipeline_mode = #tpu.pipeline_mode<synchronous>, transform_indices = @transform_5, window_bounds = array<i64: 32, 32>}]} {
    %c0 = arith.constant 0 : index
    %c0_0 = arith.constant 0 : index
    %0 = vector.load %arg1[%c0, %c0_0] : memref<32x400xbf16, #tpu.memory_space<vmem>>, vector<32x400xbf16>
    %c0_1 = arith.constant 0 : index
    %c0_2 = arith.constant 0 : index
    %1 = vector.load %arg2[%c0_1, %c0_2] : memref<400x32xbf16, #tpu.memory_space<vmem>>, vector<400x32xbf16>
    %cst = arith.constant dense<0.000000e+00> : vector<32x32xf32>
    %2 = tpu.matmul %0, %1, %cst {dimension_numbers = #tpu.dot_dimension_numbers<[1], [0], [0], [1], [0, 0, 1, 1], [], []>} : vector<32x400xbf16>, vector<400x32xbf16>, vector<32x32xf32> -> vector<32x32xf32>
    %c0_3 = arith.constant 0 : index
    %c0_4 = arith.constant 0 : index
    %3 = vector.load %arg3[%c0_3, %c0_4] : memref<1x32xf32, #tpu.memory_space<vmem>>, vector<1x32xf32>
    %4 = vector.broadcast %3 : vector<1x32xf32> to vector<32x32xf32>
    %5 = arith.mulf %2, %4 : vector<32x32xf32>
    %c0_5 = arith.constant 0 : index
    %c0_6 = arith.constant 0 : index
    %6 = vector.load %arg4[%c0_5, %c0_6] : memref<1x32xf32, #tpu.memory_space<vmem>>, vector<1x32xf32>
    %7 = vector.broadcast %6 : vector<1x32xf32> to vector<32x32xf32>
    %8 = arith.addf %5, %7 : vector<32x32xf32>
    %cst_7 = arith.constant 0.000000e+00 : f32
    %9 = vector.broadcast %cst_7 : f32 to vector<32x32xf32>
    %10 = arith.cmpf oge, %8, %9 : vector<32x32xf32>
    %cst_8 = arith.constant 2.000000e-01 : f32
    %11 = vector.broadcast %cst_8 : f32 to vector<32x32xf32>
    %12 = arith.mulf %11, %8 : vector<32x32xf32>
    %13 = arith.select %10, %8, %12 : vector<32x32xi1>, vector<32x32xf32>
    %c0_9 = arith.constant 0 : index
    %c0_10 = arith.constant 0 : index
    %14 = vector.load %arg5[%c0_9, %c0_10] : memref<32x32xf32, #tpu.memory_space<vmem>>, vector<32x32xf32>
    %15 = arith.addf %13, %14 : vector<32x32xf32>
    %c0_11 = arith.constant 0 : index
    %c0_12 = arith.constant 0 : index
    %16 = vector.load %arg6[%c0_11, %c0_12] : memref<32x32xf32, #tpu.memory_space<vmem>>, vector<32x32xf32>
    tpu.vector_store %arg6[%c0_11, %c0_12], %15 {strides = array<i32>} : memref<32x32xf32, #tpu.memory_space<vmem>>, vector<32x32xf32>,
    return
  }
  func.func @transform_0(%arg0: i32) -> (i32, i32) {
    %c0_i32 = arith.constant 0 : i32
    %c0_i32_0 = arith.constant 0 : i32
    %c0_i32_1 = arith.constant 0 : i32
    return %c0_i32, %c0_i32_0 : i32, i32
  }
  func.func @transform_1(%arg0: i32) -> (i32, i32) {
    %c0_i32 = arith.constant 0 : i32
    %c0_i32_0 = arith.constant 0 : i32
    %c0_i32_1 = arith.constant 0 : i32
    return %c0_i32, %c0_i32_0 : i32, i32
  }
  func.func @transform_2(%arg0: i32) -> (i32, i32) {
    %c0_i32 = arith.constant 0 : i32
    %c0_i32_0 = arith.constant 0 : i32
    %c0_i32_1 = arith.constant 0 : i32
    return %c0_i32, %c0_i32_0 : i32, i32
  }
  func.func @transform_3(%arg0: i32) -> (i32, i32) {
    %c0_i32 = arith.constant 0 : i32
    %c0_i32_0 = arith.constant 0 : i32
    %c0_i32_1 = arith.constant 0 : i32
    return %c0_i32, %c0_i32_0 : i32, i32
  }
  func.func @transform_4(%arg0: i32) -> (i32, i32) {
    %c0_i32 = arith.constant 0 : i32
    %c0_i32_0 = arith.constant 0 : i32
    %c0_i32_1 = arith.constant 0 : i32
    return %c0_i32, %c0_i32_0 : i32, i32
  }
  func.func @transform_5(%arg0: i32) -> (i32, i32) {
    %c0_i32 = arith.constant 0 : i32
    %c0_i32_0 = arith.constant 0 : i32
    %c0_i32_1 = arith.constant 0 : i32
    return %c0_i32, %c0_i32_0 : i32, i32
  }
}

module attributes {stable_mosaic.version = 11 : i64} {
  func.func @_fused_mm_kernel(%arg0: i32, %arg1: memref<8x800xbf16, #tpu.memory_space<vmem>>, %arg2: memref<800x64xbf16, #tpu.memory_space<vmem>>, %arg3: memref<1x64xf32, #tpu.memory_space<vmem>>, %arg4: memref<1x64xf32, #tpu.memory_space<vmem>>, %arg5: memref<8x64xf32, #tpu.memory_space<vmem>>, %arg6: memref<8x64xf32, #tpu.memory_space<vmem>>) attributes {dimension_semantics = [#tpu.dimension_semantics<arbitrary>], iteration_bounds = array<i64: 1>, scalar_prefetch = 0 : i64, scratch_operands = 0 : i64, tpu.core_type = #tpu.core_type<tc>, window_params = [{pipeline_mode = #tpu.pipeline_mode<synchronous>, transform_indices = @transform_0, window_bounds = array<i64: 8, 800>}, {pipeline_mode = #tpu.pipeline_mode<synchronous>, transform_indices = @transform_1, window_bounds = array<i64: 800, 64>}, {pipeline_mode = #tpu.pipeline_mode<synchronous>, transform_indices = @transform_2, window_bounds = array<i64: 1, 64>}, {pipeline_mode = #tpu.pipeline_mode<synchronous>, transform_indices = @transform_3, window_bounds = array<i64: 1, 64>}, {pipeline_mode = #tpu.pipeline_mode<synchronous>, transform_indices = @transform_4, window_bounds = array<i64: 8, 64>}, {pipeline_mode = #tpu.pipeline_mode<synchronous>, transform_indices = @transform_5, window_bounds = array<i64: 8, 64>}]} {
    %c0 = arith.constant 0 : index
    %c0_0 = arith.constant 0 : index
    %0 = vector.load %arg1[%c0, %c0_0] : memref<8x800xbf16, #tpu.memory_space<vmem>>, vector<8x800xbf16>
    %c0_1 = arith.constant 0 : index
    %c0_2 = arith.constant 0 : index
    %1 = vector.load %arg2[%c0_1, %c0_2] : memref<800x64xbf16, #tpu.memory_space<vmem>>, vector<800x64xbf16>
    %cst = arith.constant dense<0.000000e+00> : vector<8x64xf32>
    %2 = tpu.matmul %0, %1, %cst {dimension_numbers = #tpu.dot_dimension_numbers<[1], [0], [0], [1], [0, 0, 1, 1], [], []>} : vector<8x800xbf16>, vector<800x64xbf16>, vector<8x64xf32> -> vector<8x64xf32>
    %c0_3 = arith.constant 0 : index
    %c0_4 = arith.constant 0 : index
    %3 = vector.load %arg3[%c0_3, %c0_4] : memref<1x64xf32, #tpu.memory_space<vmem>>, vector<1x64xf32>
    %4 = vector.broadcast %3 : vector<1x64xf32> to vector<8x64xf32>
    %5 = arith.mulf %2, %4 : vector<8x64xf32>
    %c0_5 = arith.constant 0 : index
    %c0_6 = arith.constant 0 : index
    %6 = vector.load %arg4[%c0_5, %c0_6] : memref<1x64xf32, #tpu.memory_space<vmem>>, vector<1x64xf32>
    %7 = vector.broadcast %6 : vector<1x64xf32> to vector<8x64xf32>
    %8 = arith.addf %5, %7 : vector<8x64xf32>
    %cst_7 = arith.constant 0.000000e+00 : f32
    %9 = vector.broadcast %cst_7 : f32 to vector<8x64xf32>
    %10 = arith.cmpf oge, %8, %9 : vector<8x64xf32>
    %cst_8 = arith.constant 2.000000e-01 : f32
    %11 = vector.broadcast %cst_8 : f32 to vector<8x64xf32>
    %12 = arith.mulf %11, %8 : vector<8x64xf32>
    %13 = arith.select %10, %8, %12 : vector<8x64xi1>, vector<8x64xf32>
    %c0_9 = arith.constant 0 : index
    %c0_10 = arith.constant 0 : index
    %14 = vector.load %arg5[%c0_9, %c0_10] : memref<8x64xf32, #tpu.memory_space<vmem>>, vector<8x64xf32>
    %15 = arith.addf %13, %14 : vector<8x64xf32>
    %c0_11 = arith.constant 0 : index
    %c0_12 = arith.constant 0 : index
    %16 = vector.load %arg6[%c0_11, %c0_12] : memref<8x64xf32, #tpu.memory_space<vmem>>, vector<8x64xf32>
    tpu.vector_store %arg6[%c0_11, %c0_12], %15 {strides = array<i32>} : memref<8x64xf32, #tpu.memory_space<vmem>>, vector<8x64xf32>,
    return
  }
  func.func @transform_0(%arg0: i32) -> (i32, i32) {
    %c0_i32 = arith.constant 0 : i32
    %c0_i32_0 = arith.constant 0 : i32
    %c0_i32_1 = arith.constant 0 : i32
    return %c0_i32, %c0_i32_0 : i32, i32
  }
  func.func @transform_1(%arg0: i32) -> (i32, i32) {
    %c0_i32 = arith.constant 0 : i32
    %c0_i32_0 = arith.constant 0 : i32
    %c0_i32_1 = arith.constant 0 : i32
    return %c0_i32, %c0_i32_0 : i32, i32
  }
  func.func @transform_2(%arg0: i32) -> (i32, i32) {
    %c0_i32 = arith.constant 0 : i32
    %c0_i32_0 = arith.constant 0 : i32
    %c0_i32_1 = arith.constant 0 : i32
    return %c0_i32, %c0_i32_0 : i32, i32
  }
  func.func @transform_3(%arg0: i32) -> (i32, i32) {
    %c0_i32 = arith.constant 0 : i32
    %c0_i32_0 = arith.constant 0 : i32
    %c0_i32_1 = arith.constant 0 : i32
    return %c0_i32, %c0_i32_0 : i32, i32
  }
  func.func @transform_4(%arg0: i32) -> (i32, i32) {
    %c0_i32 = arith.constant 0 : i32
    %c0_i32_0 = arith.constant 0 : i32
    %c0_i32_1 = arith.constant 0 : i32
    return %c0_i32, %c0_i32_0 : i32, i32
  }
  func.func @transform_5(%arg0: i32) -> (i32, i32) {
    %c0_i32 = arith.constant 0 : i32
    %c0_i32_0 = arith.constant 0 : i32
    %c0_i32_1 = arith.constant 0 : i32
    return %c0_i32, %c0_i32_0 : i32, i32
  }
}

module attributes {stable_mosaic.version = 11 : i64} {
  func.func @_fused_mm_kernel(%arg0: i32, %arg1: memref<2x1600xbf16, #tpu.memory_space<vmem>>, %arg2: memref<1600x128xbf16, #tpu.memory_space<vmem>>, %arg3: memref<1x128xf32, #tpu.memory_space<vmem>>, %arg4: memref<1x128xf32, #tpu.memory_space<vmem>>, %arg5: memref<2x128xf32, #tpu.memory_space<vmem>>, %arg6: memref<2x128xf32, #tpu.memory_space<vmem>>) attributes {dimension_semantics = [#tpu.dimension_semantics<arbitrary>], iteration_bounds = array<i64: 1>, scalar_prefetch = 0 : i64, scratch_operands = 0 : i64, tpu.core_type = #tpu.core_type<tc>, window_params = [{pipeline_mode = #tpu.pipeline_mode<synchronous>, transform_indices = @transform_0, window_bounds = array<i64: 2, 1600>}, {pipeline_mode = #tpu.pipeline_mode<synchronous>, transform_indices = @transform_1, window_bounds = array<i64: 1600, 128>}, {pipeline_mode = #tpu.pipeline_mode<synchronous>, transform_indices = @transform_2, window_bounds = array<i64: 1, 128>}, {pipeline_mode = #tpu.pipeline_mode<synchronous>, transform_indices = @transform_3, window_bounds = array<i64: 1, 128>}, {pipeline_mode = #tpu.pipeline_mode<synchronous>, transform_indices = @transform_4, window_bounds = array<i64: 2, 128>}, {pipeline_mode = #tpu.pipeline_mode<synchronous>, transform_indices = @transform_5, window_bounds = array<i64: 2, 128>}]} {
    %c0 = arith.constant 0 : index
    %c0_0 = arith.constant 0 : index
    %0 = vector.load %arg1[%c0, %c0_0] : memref<2x1600xbf16, #tpu.memory_space<vmem>>, vector<2x1600xbf16>
    %c0_1 = arith.constant 0 : index
    %c0_2 = arith.constant 0 : index
    %1 = vector.load %arg2[%c0_1, %c0_2] : memref<1600x128xbf16, #tpu.memory_space<vmem>>, vector<1600x128xbf16>
    %cst = arith.constant dense<0.000000e+00> : vector<2x128xf32>
    %2 = tpu.matmul %0, %1, %cst {dimension_numbers = #tpu.dot_dimension_numbers<[1], [0], [0], [1], [0, 0, 1, 1], [], []>} : vector<2x1600xbf16>, vector<1600x128xbf16>, vector<2x128xf32> -> vector<2x128xf32>
    %c0_3 = arith.constant 0 : index
    %c0_4 = arith.constant 0 : index
    %3 = vector.load %arg3[%c0_3, %c0_4] : memref<1x128xf32, #tpu.memory_space<vmem>>, vector<1x128xf32>
    %4 = vector.broadcast %3 : vector<1x128xf32> to vector<2x128xf32>
    %5 = arith.mulf %2, %4 : vector<2x128xf32>
    %c0_5 = arith.constant 0 : index
    %c0_6 = arith.constant 0 : index
    %6 = vector.load %arg4[%c0_5, %c0_6] : memref<1x128xf32, #tpu.memory_space<vmem>>, vector<1x128xf32>
    %7 = vector.broadcast %6 : vector<1x128xf32> to vector<2x128xf32>
    %8 = arith.addf %5, %7 : vector<2x128xf32>
    %cst_7 = arith.constant 0.000000e+00 : f32
    %9 = vector.broadcast %cst_7 : f32 to vector<2x128xf32>
    %10 = arith.cmpf oge, %8, %9 : vector<2x128xf32>
    %cst_8 = arith.constant 2.000000e-01 : f32
    %11 = vector.broadcast %cst_8 : f32 to vector<2x128xf32>
    %12 = arith.mulf %11, %8 : vector<2x128xf32>
    %13 = arith.select %10, %8, %12 : vector<2x128xi1>, vector<2x128xf32>
    %c0_9 = arith.constant 0 : index
    %c0_10 = arith.constant 0 : index
    %14 = vector.load %arg5[%c0_9, %c0_10] : memref<2x128xf32, #tpu.memory_space<vmem>>, vector<2x128xf32>
    %15 = arith.addf %13, %14 : vector<2x128xf32>
    %c0_11 = arith.constant 0 : index
    %c0_12 = arith.constant 0 : index
    %16 = vector.load %arg6[%c0_11, %c0_12] : memref<2x128xf32, #tpu.memory_space<vmem>>, vector<2x128xf32>
    tpu.vector_store %arg6[%c0_11, %c0_12], %15 {strides = array<i32>} : memref<2x128xf32, #tpu.memory_space<vmem>>, vector<2x128xf32>,
    return
  }
  func.func @transform_0(%arg0: i32) -> (i32, i32) {
    %c0_i32 = arith.constant 0 : i32
    %c0_i32_0 = arith.constant 0 : i32
    %c0_i32_1 = arith.constant 0 : i32
    return %c0_i32, %c0_i32_0 : i32, i32
  }
  func.func @transform_1(%arg0: i32) -> (i32, i32) {
    %c0_i32 = arith.constant 0 : i32
    %c0_i32_0 = arith.constant 0 : i32
    %c0_i32_1 = arith.constant 0 : i32
    return %c0_i32, %c0_i32_0 : i32, i32
  }
  func.func @transform_2(%arg0: i32) -> (i32, i32) {
    %c0_i32 = arith.constant 0 : i32
    %c0_i32_0 = arith.constant 0 : i32
    %c0_i32_1 = arith.constant 0 : i32
    return %c0_i32, %c0_i32_0 : i32, i32
  }
  func.func @transform_3(%arg0: i32) -> (i32, i32) {
    %c0_i32 = arith.constant 0 : i32
    %c0_i32_0 = arith.constant 0 : i32
    %c0_i32_1 = arith.constant 0 : i32
    return %c0_i32, %c0_i32_0 : i32, i32
  }
  func.func @transform_4(%arg0: i32) -> (i32, i32) {
    %c0_i32 = arith.constant 0 : i32
    %c0_i32_0 = arith.constant 0 : i32
    %c0_i32_1 = arith.constant 0 : i32
    return %c0_i32, %c0_i32_0 : i32, i32
  }
  func.func @transform_5(%arg0: i32) -> (i32, i32) {
    %c0_i32 = arith.constant 0 : i32
    %c0_i32_0 = arith.constant 0 : i32
    %c0_i32_1 = arith.constant 0 : i32
    return %c0_i32, %c0_i32_0 : i32, i32
  }
}

module attributes {stable_mosaic.version = 11 : i64} {
  func.func @_fused_mm_kernel(%arg0: i32, %arg1: memref<2x128xbf16, #tpu.memory_space<vmem>>, %arg2: memref<128x256xbf16, #tpu.memory_space<vmem>>, %arg3: memref<1x256xf32, #tpu.memory_space<vmem>>, %arg4: memref<1x256xf32, #tpu.memory_space<vmem>>, %arg5: memref<2x256xf32, #tpu.memory_space<vmem>>, %arg6: memref<2x256xf32, #tpu.memory_space<vmem>>) attributes {dimension_semantics = [#tpu.dimension_semantics<arbitrary>], iteration_bounds = array<i64: 1>, scalar_prefetch = 0 : i64, scratch_operands = 0 : i64, tpu.core_type = #tpu.core_type<tc>, window_params = [{pipeline_mode = #tpu.pipeline_mode<synchronous>, transform_indices = @transform_0, window_bounds = array<i64: 2, 128>}, {pipeline_mode = #tpu.pipeline_mode<synchronous>, transform_indices = @transform_1, window_bounds = array<i64: 128, 256>}, {pipeline_mode = #tpu.pipeline_mode<synchronous>, transform_indices = @transform_2, window_bounds = array<i64: 1, 256>}, {pipeline_mode = #tpu.pipeline_mode<synchronous>, transform_indices = @transform_3, window_bounds = array<i64: 1, 256>}, {pipeline_mode = #tpu.pipeline_mode<synchronous>, transform_indices = @transform_4, window_bounds = array<i64: 2, 256>}, {pipeline_mode = #tpu.pipeline_mode<synchronous>, transform_indices = @transform_5, window_bounds = array<i64: 2, 256>}]} {
    %c0 = arith.constant 0 : index
    %c0_0 = arith.constant 0 : index
    %0 = vector.load %arg1[%c0, %c0_0] : memref<2x128xbf16, #tpu.memory_space<vmem>>, vector<2x128xbf16>
    %c0_1 = arith.constant 0 : index
    %c0_2 = arith.constant 0 : index
    %1 = vector.load %arg2[%c0_1, %c0_2] : memref<128x256xbf16, #tpu.memory_space<vmem>>, vector<128x256xbf16>
    %cst = arith.constant dense<0.000000e+00> : vector<2x256xf32>
    %2 = tpu.matmul %0, %1, %cst {dimension_numbers = #tpu.dot_dimension_numbers<[1], [0], [0], [1], [0, 0, 1, 1], [], []>} : vector<2x128xbf16>, vector<128x256xbf16>, vector<2x256xf32> -> vector<2x256xf32>
    %c0_3 = arith.constant 0 : index
    %c0_4 = arith.constant 0 : index
    %3 = vector.load %arg3[%c0_3, %c0_4] : memref<1x256xf32, #tpu.memory_space<vmem>>, vector<1x256xf32>
    %4 = vector.broadcast %3 : vector<1x256xf32> to vector<2x256xf32>
    %5 = arith.mulf %2, %4 : vector<2x256xf32>
    %c0_5 = arith.constant 0 : index
    %c0_6 = arith.constant 0 : index
    %6 = vector.load %arg4[%c0_5, %c0_6] : memref<1x256xf32, #tpu.memory_space<vmem>>, vector<1x256xf32>
    %7 = vector.broadcast %6 : vector<1x256xf32> to vector<2x256xf32>
    %8 = arith.addf %5, %7 : vector<2x256xf32>
    %cst_7 = arith.constant 0.000000e+00 : f32
    %9 = vector.broadcast %cst_7 : f32 to vector<2x256xf32>
    %10 = arith.cmpf oge, %8, %9 : vector<2x256xf32>
    %cst_8 = arith.constant 2.000000e-01 : f32
    %11 = vector.broadcast %cst_8 : f32 to vector<2x256xf32>
    %12 = arith.mulf %11, %8 : vector<2x256xf32>
    %13 = arith.select %10, %8, %12 : vector<2x256xi1>, vector<2x256xf32>
    %c0_9 = arith.constant 0 : index
    %c0_10 = arith.constant 0 : index
    %14 = vector.load %arg5[%c0_9, %c0_10] : memref<2x256xf32, #tpu.memory_space<vmem>>, vector<2x256xf32>
    %15 = arith.addf %13, %14 : vector<2x256xf32>
    %c0_11 = arith.constant 0 : index
    %c0_12 = arith.constant 0 : index
    %16 = vector.load %arg6[%c0_11, %c0_12] : memref<2x256xf32, #tpu.memory_space<vmem>>, vector<2x256xf32>
    tpu.vector_store %arg6[%c0_11, %c0_12], %15 {strides = array<i32>} : memref<2x256xf32, #tpu.memory_space<vmem>>, vector<2x256xf32>,
    return
  }
  func.func @transform_0(%arg0: i32) -> (i32, i32) {
    %c0_i32 = arith.constant 0 : i32
    %c0_i32_0 = arith.constant 0 : i32
    %c0_i32_1 = arith.constant 0 : i32
    return %c0_i32, %c0_i32_0 : i32, i32
  }
  func.func @transform_1(%arg0: i32) -> (i32, i32) {
    %c0_i32 = arith.constant 0 : i32
    %c0_i32_0 = arith.constant 0 : i32
    %c0_i32_1 = arith.constant 0 : i32
    return %c0_i32, %c0_i32_0 : i32, i32
  }
  func.func @transform_2(%arg0: i32) -> (i32, i32) {
    %c0_i32 = arith.constant 0 : i32
    %c0_i32_0 = arith.constant 0 : i32
    %c0_i32_1 = arith.constant 0 : i32
    return %c0_i32, %c0_i32_0 : i32, i32
  }
  func.func @transform_3(%arg0: i32) -> (i32, i32) {
    %c0_i32 = arith.constant 0 : i32
    %c0_i32_0 = arith.constant 0 : i32
    %c0_i32_1 = arith.constant 0 : i32
    return %c0_i32, %c0_i32_0 : i32, i32
  }
  func.func @transform_4(%arg0: i32) -> (i32, i32) {
    %c0_i32 = arith.constant 0 : i32
    %c0_i32_0 = arith.constant 0 : i32
    %c0_i32_1 = arith.constant 0 : i32
    return %c0_i32, %c0_i32_0 : i32, i32
  }
  func.func @transform_5(%arg0: i32) -> (i32, i32) {
    %c0_i32 = arith.constant 0 : i32
    %c0_i32_0 = arith.constant 0 : i32
    %c0_i32_1 = arith.constant 0 : i32
    return %c0_i32, %c0_i32_0 : i32, i32
  }
}

module attributes {stable_mosaic.version = 11 : i64} {
  func.func @_fused_mm_kernel(%arg0: i32, %arg1: memref<2x256xbf16, #tpu.memory_space<vmem>>, %arg2: memref<256x512xbf16, #tpu.memory_space<vmem>>, %arg3: memref<1x512xf32, #tpu.memory_space<vmem>>, %arg4: memref<1x512xf32, #tpu.memory_space<vmem>>, %arg5: memref<2x512xf32, #tpu.memory_space<vmem>>, %arg6: memref<2x512xf32, #tpu.memory_space<vmem>>) attributes {dimension_semantics = [#tpu.dimension_semantics<arbitrary>], iteration_bounds = array<i64: 1>, scalar_prefetch = 0 : i64, scratch_operands = 0 : i64, tpu.core_type = #tpu.core_type<tc>, window_params = [{pipeline_mode = #tpu.pipeline_mode<synchronous>, transform_indices = @transform_0, window_bounds = array<i64: 2, 256>}, {pipeline_mode = #tpu.pipeline_mode<synchronous>, transform_indices = @transform_1, window_bounds = array<i64: 256, 512>}, {pipeline_mode = #tpu.pipeline_mode<synchronous>, transform_indices = @transform_2, window_bounds = array<i64: 1, 512>}, {pipeline_mode = #tpu.pipeline_mode<synchronous>, transform_indices = @transform_3, window_bounds = array<i64: 1, 512>}, {pipeline_mode = #tpu.pipeline_mode<synchronous>, transform_indices = @transform_4, window_bounds = array<i64: 2, 512>}, {pipeline_mode = #tpu.pipeline_mode<synchronous>, transform_indices = @transform_5, window_bounds = array<i64: 2, 512>}]} {
    %c0 = arith.constant 0 : index
    %c0_0 = arith.constant 0 : index
    %0 = vector.load %arg1[%c0, %c0_0] : memref<2x256xbf16, #tpu.memory_space<vmem>>, vector<2x256xbf16>
    %c0_1 = arith.constant 0 : index
    %c0_2 = arith.constant 0 : index
    %1 = vector.load %arg2[%c0_1, %c0_2] : memref<256x512xbf16, #tpu.memory_space<vmem>>, vector<256x512xbf16>
    %cst = arith.constant dense<0.000000e+00> : vector<2x512xf32>
    %2 = tpu.matmul %0, %1, %cst {dimension_numbers = #tpu.dot_dimension_numbers<[1], [0], [0], [1], [0, 0, 1, 1], [], []>} : vector<2x256xbf16>, vector<256x512xbf16>, vector<2x512xf32> -> vector<2x512xf32>
    %c0_3 = arith.constant 0 : index
    %c0_4 = arith.constant 0 : index
    %3 = vector.load %arg3[%c0_3, %c0_4] : memref<1x512xf32, #tpu.memory_space<vmem>>, vector<1x512xf32>
    %4 = vector.broadcast %3 : vector<1x512xf32> to vector<2x512xf32>
    %5 = arith.mulf %2, %4 : vector<2x512xf32>
    %c0_5 = arith.constant 0 : index
    %c0_6 = arith.constant 0 : index
    %6 = vector.load %arg4[%c0_5, %c0_6] : memref<1x512xf32, #tpu.memory_space<vmem>>, vector<1x512xf32>
    %7 = vector.broadcast %6 : vector<1x512xf32> to vector<2x512xf32>
    %8 = arith.addf %5, %7 : vector<2x512xf32>
    %cst_7 = arith.constant 0.000000e+00 : f32
    %9 = vector.broadcast %cst_7 : f32 to vector<2x512xf32>
    %10 = arith.cmpf oge, %8, %9 : vector<2x512xf32>
    %cst_8 = arith.constant 2.000000e-01 : f32
    %11 = vector.broadcast %cst_8 : f32 to vector<2x512xf32>
    %12 = arith.mulf %11, %8 : vector<2x512xf32>
    %13 = arith.select %10, %8, %12 : vector<2x512xi1>, vector<2x512xf32>
    %c0_9 = arith.constant 0 : index
    %c0_10 = arith.constant 0 : index
    %14 = vector.load %arg5[%c0_9, %c0_10] : memref<2x512xf32, #tpu.memory_space<vmem>>, vector<2x512xf32>
    %15 = arith.addf %13, %14 : vector<2x512xf32>
    %c0_11 = arith.constant 0 : index
    %c0_12 = arith.constant 0 : index
    %16 = vector.load %arg6[%c0_11, %c0_12] : memref<2x512xf32, #tpu.memory_space<vmem>>, vector<2x512xf32>
    tpu.vector_store %arg6[%c0_11, %c0_12], %15 {strides = array<i32>} : memref<2x512xf32, #tpu.memory_space<vmem>>, vector<2x512xf32>,
    return
  }
  func.func @transform_0(%arg0: i32) -> (i32, i32) {
    %c0_i32 = arith.constant 0 : i32
    %c0_i32_0 = arith.constant 0 : i32
    %c0_i32_1 = arith.constant 0 : i32
    return %c0_i32, %c0_i32_0 : i32, i32
  }
  func.func @transform_1(%arg0: i32) -> (i32, i32) {
    %c0_i32 = arith.constant 0 : i32
    %c0_i32_0 = arith.constant 0 : i32
    %c0_i32_1 = arith.constant 0 : i32
    return %c0_i32, %c0_i32_0 : i32, i32
  }
  func.func @transform_2(%arg0: i32) -> (i32, i32) {
    %c0_i32 = arith.constant 0 : i32
    %c0_i32_0 = arith.constant 0 : i32
    %c0_i32_1 = arith.constant 0 : i32
    return %c0_i32, %c0_i32_0 : i32, i32
  }
  func.func @transform_3(%arg0: i32) -> (i32, i32) {
    %c0_i32 = arith.constant 0 : i32
    %c0_i32_0 = arith.constant 0 : i32
    %c0_i32_1 = arith.constant 0 : i32
    return %c0_i32, %c0_i32_0 : i32, i32
  }
  func.func @transform_4(%arg0: i32) -> (i32, i32) {
    %c0_i32 = arith.constant 0 : i32
    %c0_i32_0 = arith.constant 0 : i32
    %c0_i32_1 = arith.constant 0 : i32
    return %c0_i32, %c0_i32_0 : i32, i32
  }
  func.func @transform_5(%arg0: i32) -> (i32, i32) {
    %c0_i32 = arith.constant 0 : i32
    %c0_i32_0 = arith.constant 0 : i32
    %c0_i32_1 = arith.constant 0 : i32
    return %c0_i32, %c0_i32_0 : i32, i32
  }
}

module attributes {stable_mosaic.version = 11 : i64} {
  func.func @_fused_mm_kernel(%arg0: i32, %arg1: memref<2x512xbf16, #tpu.memory_space<vmem>>, %arg2: memref<512x256xbf16, #tpu.memory_space<vmem>>, %arg3: memref<1x256xf32, #tpu.memory_space<vmem>>, %arg4: memref<2x256xf32, #tpu.memory_space<vmem>>) attributes {dimension_semantics = [#tpu.dimension_semantics<arbitrary>], iteration_bounds = array<i64: 1>, scalar_prefetch = 0 : i64, scratch_operands = 0 : i64, tpu.core_type = #tpu.core_type<tc>, window_params = [{pipeline_mode = #tpu.pipeline_mode<synchronous>, transform_indices = @transform_0, window_bounds = array<i64: 2, 512>}, {pipeline_mode = #tpu.pipeline_mode<synchronous>, transform_indices = @transform_1, window_bounds = array<i64: 512, 256>}, {pipeline_mode = #tpu.pipeline_mode<synchronous>, transform_indices = @transform_2, window_bounds = array<i64: 1, 256>}, {pipeline_mode = #tpu.pipeline_mode<synchronous>, transform_indices = @transform_3, window_bounds = array<i64: 2, 256>}]} {
    %c0 = arith.constant 0 : index
    %c0_0 = arith.constant 0 : index
    %0 = vector.load %arg1[%c0, %c0_0] : memref<2x512xbf16, #tpu.memory_space<vmem>>, vector<2x512xbf16>
    %c0_1 = arith.constant 0 : index
    %c0_2 = arith.constant 0 : index
    %1 = vector.load %arg2[%c0_1, %c0_2] : memref<512x256xbf16, #tpu.memory_space<vmem>>, vector<512x256xbf16>
    %cst = arith.constant dense<0.000000e+00> : vector<2x256xf32>
    %2 = tpu.matmul %0, %1, %cst {dimension_numbers = #tpu.dot_dimension_numbers<[1], [0], [0], [1], [0, 0, 1, 1], [], []>} : vector<2x512xbf16>, vector<512x256xbf16>, vector<2x256xf32> -> vector<2x256xf32>
    %c0_3 = arith.constant 0 : index
    %c0_4 = arith.constant 0 : index
    %3 = vector.load %arg3[%c0_3, %c0_4] : memref<1x256xf32, #tpu.memory_space<vmem>>, vector<1x256xf32>
    %4 = vector.broadcast %3 : vector<1x256xf32> to vector<2x256xf32>
    %5 = arith.addf %2, %4 : vector<2x256xf32>
    %c0_5 = arith.constant 0 : index
    %c0_6 = arith.constant 0 : index
    %6 = vector.load %arg4[%c0_5, %c0_6] : memref<2x256xf32, #tpu.memory_space<vmem>>, vector<2x256xf32>
    tpu.vector_store %arg4[%c0_5, %c0_6], %5 {strides = array<i32>} : memref<2x256xf32, #tpu.memory_space<vmem>>, vector<2x256xf32>,
    return
  }
  func.func @transform_0(%arg0: i32) -> (i32, i32) {
    %c0_i32 = arith.constant 0 : i32
    %c0_i32_0 = arith.constant 0 : i32
    %c0_i32_1 = arith.constant 0 : i32
    return %c0_i32, %c0_i32_0 : i32, i32
  }
  func.func @transform_1(%arg0: i32) -> (i32, i32) {
    %c0_i32 = arith.constant 0 : i32
    %c0_i32_0 = arith.constant 0 : i32
    %c0_i32_1 = arith.constant 0 : i32
    return %c0_i32, %c0_i32_0 : i32, i32
  }
  func.func @transform_2(%arg0: i32) -> (i32, i32) {
    %c0_i32 = arith.constant 0 : i32
    %c0_i32_0 = arith.constant 0 : i32
    %c0_i32_1 = arith.constant 0 : i32
    return %c0_i32, %c0_i32_0 : i32, i32
  }
  func.func @transform_3(%arg0: i32) -> (i32, i32) {
    %c0_i32 = arith.constant 0 : i32
    %c0_i32_0 = arith.constant 0 : i32
    %c0_i32_1 = arith.constant 0 : i32
    return %c0_i32, %c0_i32_0 : i32, i32
  }
}

module attributes {stable_mosaic.version = 11 : i64} {
  func.func @_fused_mm_kernel(%arg0: i32, %arg1: memref<2x512xbf16, #tpu.memory_space<vmem>>, %arg2: memref<512x128xbf16, #tpu.memory_space<vmem>>, %arg3: memref<1x128xf32, #tpu.memory_space<vmem>>, %arg4: memref<1x128xf32, #tpu.memory_space<vmem>>, %arg5: memref<2x128xf32, #tpu.memory_space<vmem>>, %arg6: memref<2x128xf32, #tpu.memory_space<vmem>>) attributes {dimension_semantics = [#tpu.dimension_semantics<arbitrary>], iteration_bounds = array<i64: 1>, scalar_prefetch = 0 : i64, scratch_operands = 0 : i64, tpu.core_type = #tpu.core_type<tc>, window_params = [{pipeline_mode = #tpu.pipeline_mode<synchronous>, transform_indices = @transform_0, window_bounds = array<i64: 2, 512>}, {pipeline_mode = #tpu.pipeline_mode<synchronous>, transform_indices = @transform_1, window_bounds = array<i64: 512, 128>}, {pipeline_mode = #tpu.pipeline_mode<synchronous>, transform_indices = @transform_2, window_bounds = array<i64: 1, 128>}, {pipeline_mode = #tpu.pipeline_mode<synchronous>, transform_indices = @transform_3, window_bounds = array<i64: 1, 128>}, {pipeline_mode = #tpu.pipeline_mode<synchronous>, transform_indices = @transform_4, window_bounds = array<i64: 2, 128>}, {pipeline_mode = #tpu.pipeline_mode<synchronous>, transform_indices = @transform_5, window_bounds = array<i64: 2, 128>}]} {
    %c0 = arith.constant 0 : index
    %c0_0 = arith.constant 0 : index
    %0 = vector.load %arg1[%c0, %c0_0] : memref<2x512xbf16, #tpu.memory_space<vmem>>, vector<2x512xbf16>
    %c0_1 = arith.constant 0 : index
    %c0_2 = arith.constant 0 : index
    %1 = vector.load %arg2[%c0_1, %c0_2] : memref<512x128xbf16, #tpu.memory_space<vmem>>, vector<512x128xbf16>
    %cst = arith.constant dense<0.000000e+00> : vector<2x128xf32>
    %2 = tpu.matmul %0, %1, %cst {dimension_numbers = #tpu.dot_dimension_numbers<[1], [0], [0], [1], [0, 0, 1, 1], [], []>} : vector<2x512xbf16>, vector<512x128xbf16>, vector<2x128xf32> -> vector<2x128xf32>
    %c0_3 = arith.constant 0 : index
    %c0_4 = arith.constant 0 : index
    %3 = vector.load %arg3[%c0_3, %c0_4] : memref<1x128xf32, #tpu.memory_space<vmem>>, vector<1x128xf32>
    %4 = vector.broadcast %3 : vector<1x128xf32> to vector<2x128xf32>
    %5 = arith.mulf %2, %4 : vector<2x128xf32>
    %c0_5 = arith.constant 0 : index
    %c0_6 = arith.constant 0 : index
    %6 = vector.load %arg4[%c0_5, %c0_6] : memref<1x128xf32, #tpu.memory_space<vmem>>, vector<1x128xf32>
    %7 = vector.broadcast %6 : vector<1x128xf32> to vector<2x128xf32>
    %8 = arith.addf %5, %7 : vector<2x128xf32>
    %cst_7 = arith.constant 0.000000e+00 : f32
    %9 = vector.broadcast %cst_7 : f32 to vector<2x128xf32>
    %10 = arith.maximumf %8, %9 : vector<2x128xf32>
    %c0_8 = arith.constant 0 : index
    %c0_9 = arith.constant 0 : index
    %11 = vector.load %arg5[%c0_8, %c0_9] : memref<2x128xf32, #tpu.memory_space<vmem>>, vector<2x128xf32>
    %12 = arith.addf %10, %11 : vector<2x128xf32>
    %c0_10 = arith.constant 0 : index
    %c0_11 = arith.constant 0 : index
    %13 = vector.load %arg6[%c0_10, %c0_11] : memref<2x128xf32, #tpu.memory_space<vmem>>, vector<2x128xf32>
    tpu.vector_store %arg6[%c0_10, %c0_11], %12 {strides = array<i32>} : memref<2x128xf32, #tpu.memory_space<vmem>>, vector<2x128xf32>,
    return
  }
  func.func @transform_0(%arg0: i32) -> (i32, i32) {
    %c0_i32 = arith.constant 0 : i32
    %c0_i32_0 = arith.constant 0 : i32
    %c0_i32_1 = arith.constant 0 : i32
    return %c0_i32, %c0_i32_0 : i32, i32
  }
  func.func @transform_1(%arg0: i32) -> (i32, i32) {
    %c0_i32 = arith.constant 0 : i32
    %c0_i32_0 = arith.constant 0 : i32
    %c0_i32_1 = arith.constant 0 : i32
    return %c0_i32, %c0_i32_0 : i32, i32
  }
  func.func @transform_2(%arg0: i32) -> (i32, i32) {
    %c0_i32 = arith.constant 0 : i32
    %c0_i32_0 = arith.constant 0 : i32
    %c0_i32_1 = arith.constant 0 : i32
    return %c0_i32, %c0_i32_0 : i32, i32
  }
  func.func @transform_3(%arg0: i32) -> (i32, i32) {
    %c0_i32 = arith.constant 0 : i32
    %c0_i32_0 = arith.constant 0 : i32
    %c0_i32_1 = arith.constant 0 : i32
    return %c0_i32, %c0_i32_0 : i32, i32
  }
  func.func @transform_4(%arg0: i32) -> (i32, i32) {
    %c0_i32 = arith.constant 0 : i32
    %c0_i32_0 = arith.constant 0 : i32
    %c0_i32_1 = arith.constant 0 : i32
    return %c0_i32, %c0_i32_0 : i32, i32
  }
  func.func @transform_5(%arg0: i32) -> (i32, i32) {
    %c0_i32 = arith.constant 0 : i32
    %c0_i32_0 = arith.constant 0 : i32
    %c0_i32_1 = arith.constant 0 : i32
    return %c0_i32, %c0_i32_0 : i32, i32
  }
}

module attributes {stable_mosaic.version = 11 : i64} {
  func.func @_fused_mm_kernel(%arg0: i32, %arg1: memref<2x256xbf16, #tpu.memory_space<vmem>>, %arg2: memref<256x256xbf16, #tpu.memory_space<vmem>>, %arg3: memref<1x256xf32, #tpu.memory_space<vmem>>, %arg4: memref<1x256xf32, #tpu.memory_space<vmem>>, %arg5: memref<2x256xf32, #tpu.memory_space<vmem>>, %arg6: memref<2x256xf32, #tpu.memory_space<vmem>>) attributes {dimension_semantics = [#tpu.dimension_semantics<arbitrary>], iteration_bounds = array<i64: 1>, scalar_prefetch = 0 : i64, scratch_operands = 0 : i64, tpu.core_type = #tpu.core_type<tc>, window_params = [{pipeline_mode = #tpu.pipeline_mode<synchronous>, transform_indices = @transform_0, window_bounds = array<i64: 2, 256>}, {pipeline_mode = #tpu.pipeline_mode<synchronous>, transform_indices = @transform_1, window_bounds = array<i64: 256, 256>}, {pipeline_mode = #tpu.pipeline_mode<synchronous>, transform_indices = @transform_2, window_bounds = array<i64: 1, 256>}, {pipeline_mode = #tpu.pipeline_mode<synchronous>, transform_indices = @transform_3, window_bounds = array<i64: 1, 256>}, {pipeline_mode = #tpu.pipeline_mode<synchronous>, transform_indices = @transform_4, window_bounds = array<i64: 2, 256>}, {pipeline_mode = #tpu.pipeline_mode<synchronous>, transform_indices = @transform_5, window_bounds = array<i64: 2, 256>}]} {
    %c0 = arith.constant 0 : index
    %c0_0 = arith.constant 0 : index
    %0 = vector.load %arg1[%c0, %c0_0] : memref<2x256xbf16, #tpu.memory_space<vmem>>, vector<2x256xbf16>
    %c0_1 = arith.constant 0 : index
    %c0_2 = arith.constant 0 : index
    %1 = vector.load %arg2[%c0_1, %c0_2] : memref<256x256xbf16, #tpu.memory_space<vmem>>, vector<256x256xbf16>
    %cst = arith.constant dense<0.000000e+00> : vector<2x256xf32>
    %2 = tpu.matmul %0, %1, %cst {dimension_numbers = #tpu.dot_dimension_numbers<[1], [0], [0], [1], [0, 0, 1, 1], [], []>} : vector<2x256xbf16>, vector<256x256xbf16>, vector<2x256xf32> -> vector<2x256xf32>
    %c0_3 = arith.constant 0 : index
    %c0_4 = arith.constant 0 : index
    %3 = vector.load %arg3[%c0_3, %c0_4] : memref<1x256xf32, #tpu.memory_space<vmem>>, vector<1x256xf32>
    %4 = vector.broadcast %3 : vector<1x256xf32> to vector<2x256xf32>
    %5 = arith.mulf %2, %4 : vector<2x256xf32>
    %c0_5 = arith.constant 0 : index
    %c0_6 = arith.constant 0 : index
    %6 = vector.load %arg4[%c0_5, %c0_6] : memref<1x256xf32, #tpu.memory_space<vmem>>, vector<1x256xf32>
    %7 = vector.broadcast %6 : vector<1x256xf32> to vector<2x256xf32>
    %8 = arith.addf %5, %7 : vector<2x256xf32>
    %cst_7 = arith.constant 0.000000e+00 : f32
    %9 = vector.broadcast %cst_7 : f32 to vector<2x256xf32>
    %10 = arith.maximumf %8, %9 : vector<2x256xf32>
    %c0_8 = arith.constant 0 : index
    %c0_9 = arith.constant 0 : index
    %11 = vector.load %arg5[%c0_8, %c0_9] : memref<2x256xf32, #tpu.memory_space<vmem>>, vector<2x256xf32>
    %12 = arith.addf %10, %11 : vector<2x256xf32>
    %c0_10 = arith.constant 0 : index
    %c0_11 = arith.constant 0 : index
    %13 = vector.load %arg6[%c0_10, %c0_11] : memref<2x256xf32, #tpu.memory_space<vmem>>, vector<2x256xf32>
    tpu.vector_store %arg6[%c0_10, %c0_11], %12 {strides = array<i32>} : memref<2x256xf32, #tpu.memory_space<vmem>>, vector<2x256xf32>,
    return
  }
  func.func @transform_0(%arg0: i32) -> (i32, i32) {
    %c0_i32 = arith.constant 0 : i32
    %c0_i32_0 = arith.constant 0 : i32
    %c0_i32_1 = arith.constant 0 : i32
    return %c0_i32, %c0_i32_0 : i32, i32
  }
  func.func @transform_1(%arg0: i32) -> (i32, i32) {
    %c0_i32 = arith.constant 0 : i32
    %c0_i32_0 = arith.constant 0 : i32
    %c0_i32_1 = arith.constant 0 : i32
    return %c0_i32, %c0_i32_0 : i32, i32
  }
  func.func @transform_2(%arg0: i32) -> (i32, i32) {
    %c0_i32 = arith.constant 0 : i32
    %c0_i32_0 = arith.constant 0 : i32
    %c0_i32_1 = arith.constant 0 : i32
    return %c0_i32, %c0_i32_0 : i32, i32
  }
  func.func @transform_3(%arg0: i32) -> (i32, i32) {
    %c0_i32 = arith.constant 0 : i32
    %c0_i32_0 = arith.constant 0 : i32
    %c0_i32_1 = arith.constant 0 : i32
    return %c0_i32, %c0_i32_0 : i32, i32
  }
  func.func @transform_4(%arg0: i32) -> (i32, i32) {
    %c0_i32 = arith.constant 0 : i32
    %c0_i32_0 = arith.constant 0 : i32
    %c0_i32_1 = arith.constant 0 : i32
    return %c0_i32, %c0_i32_0 : i32, i32
  }
  func.func @transform_5(%arg0: i32) -> (i32, i32) {
    %c0_i32 = arith.constant 0 : i32
    %c0_i32_0 = arith.constant 0 : i32
    %c0_i32_1 = arith.constant 0 : i32
    return %c0_i32, %c0_i32_0 : i32, i32
  }
}

module attributes {stable_mosaic.version = 11 : i64} {
  func.func @_fused_mm_kernel(%arg0: i32, %arg1: memref<8x1152xbf16, #tpu.memory_space<vmem>>, %arg2: memref<1152x128xbf16, #tpu.memory_space<vmem>>, %arg3: memref<1x128xf32, #tpu.memory_space<vmem>>, %arg4: memref<1x128xf32, #tpu.memory_space<vmem>>, %arg5: memref<8x128xf32, #tpu.memory_space<vmem>>, %arg6: memref<8x128xf32, #tpu.memory_space<vmem>>) attributes {dimension_semantics = [#tpu.dimension_semantics<arbitrary>], iteration_bounds = array<i64: 1>, scalar_prefetch = 0 : i64, scratch_operands = 0 : i64, tpu.core_type = #tpu.core_type<tc>, window_params = [{pipeline_mode = #tpu.pipeline_mode<synchronous>, transform_indices = @transform_0, window_bounds = array<i64: 8, 1152>}, {pipeline_mode = #tpu.pipeline_mode<synchronous>, transform_indices = @transform_1, window_bounds = array<i64: 1152, 128>}, {pipeline_mode = #tpu.pipeline_mode<synchronous>, transform_indices = @transform_2, window_bounds = array<i64: 1, 128>}, {pipeline_mode = #tpu.pipeline_mode<synchronous>, transform_indices = @transform_3, window_bounds = array<i64: 1, 128>}, {pipeline_mode = #tpu.pipeline_mode<synchronous>, transform_indices = @transform_4, window_bounds = array<i64: 8, 128>}, {pipeline_mode = #tpu.pipeline_mode<synchronous>, transform_indices = @transform_5, window_bounds = array<i64: 8, 128>}]} {
    %c0 = arith.constant 0 : index
    %c0_0 = arith.constant 0 : index
    %0 = vector.load %arg1[%c0, %c0_0] : memref<8x1152xbf16, #tpu.memory_space<vmem>>, vector<8x1152xbf16>
    %c0_1 = arith.constant 0 : index
    %c0_2 = arith.constant 0 : index
    %1 = vector.load %arg2[%c0_1, %c0_2] : memref<1152x128xbf16, #tpu.memory_space<vmem>>, vector<1152x128xbf16>
    %cst = arith.constant dense<0.000000e+00> : vector<8x128xf32>
    %2 = tpu.matmul %0, %1, %cst {dimension_numbers = #tpu.dot_dimension_numbers<[1], [0], [0], [1], [0, 0, 1, 1], [], []>} : vector<8x1152xbf16>, vector<1152x128xbf16>, vector<8x128xf32> -> vector<8x128xf32>
    %c0_3 = arith.constant 0 : index
    %c0_4 = arith.constant 0 : index
    %3 = vector.load %arg3[%c0_3, %c0_4] : memref<1x128xf32, #tpu.memory_space<vmem>>, vector<1x128xf32>
    %4 = vector.broadcast %3 : vector<1x128xf32> to vector<8x128xf32>
    %5 = arith.mulf %2, %4 : vector<8x128xf32>
    %c0_5 = arith.constant 0 : index
    %c0_6 = arith.constant 0 : index
    %6 = vector.load %arg4[%c0_5, %c0_6] : memref<1x128xf32, #tpu.memory_space<vmem>>, vector<1x128xf32>
    %7 = vector.broadcast %6 : vector<1x128xf32> to vector<8x128xf32>
    %8 = arith.addf %5, %7 : vector<8x128xf32>
    %cst_7 = arith.constant 0.000000e+00 : f32
    %9 = vector.broadcast %cst_7 : f32 to vector<8x128xf32>
    %10 = arith.maximumf %8, %9 : vector<8x128xf32>
    %c0_8 = arith.constant 0 : index
    %c0_9 = arith.constant 0 : index
    %11 = vector.load %arg5[%c0_8, %c0_9] : memref<8x128xf32, #tpu.memory_space<vmem>>, vector<8x128xf32>
    %12 = arith.addf %10, %11 : vector<8x128xf32>
    %c0_10 = arith.constant 0 : index
    %c0_11 = arith.constant 0 : index
    %13 = vector.load %arg6[%c0_10, %c0_11] : memref<8x128xf32, #tpu.memory_space<vmem>>, vector<8x128xf32>
    tpu.vector_store %arg6[%c0_10, %c0_11], %12 {strides = array<i32>} : memref<8x128xf32, #tpu.memory_space<vmem>>, vector<8x128xf32>,
    return
  }
  func.func @transform_0(%arg0: i32) -> (i32, i32) {
    %c0_i32 = arith.constant 0 : i32
    %c0_i32_0 = arith.constant 0 : i32
    %c0_i32_1 = arith.constant 0 : i32
    return %c0_i32, %c0_i32_0 : i32, i32
  }
  func.func @transform_1(%arg0: i32) -> (i32, i32) {
    %c0_i32 = arith.constant 0 : i32
    %c0_i32_0 = arith.constant 0 : i32
    %c0_i32_1 = arith.constant 0 : i32
    return %c0_i32, %c0_i32_0 : i32, i32
  }
  func.func @transform_2(%arg0: i32) -> (i32, i32) {
    %c0_i32 = arith.constant 0 : i32
    %c0_i32_0 = arith.constant 0 : i32
    %c0_i32_1 = arith.constant 0 : i32
    return %c0_i32, %c0_i32_0 : i32, i32
  }
  func.func @transform_3(%arg0: i32) -> (i32, i32) {
    %c0_i32 = arith.constant 0 : i32
    %c0_i32_0 = arith.constant 0 : i32
    %c0_i32_1 = arith.constant 0 : i32
    return %c0_i32, %c0_i32_0 : i32, i32
  }
  func.func @transform_4(%arg0: i32) -> (i32, i32) {
    %c0_i32 = arith.constant 0 : i32
    %c0_i32_0 = arith.constant 0 : i32
    %c0_i32_1 = arith.constant 0 : i32
    return %c0_i32, %c0_i32_0 : i32, i32
  }
  func.func @transform_5(%arg0: i32) -> (i32, i32) {
    %c0_i32 = arith.constant 0 : i32
    %c0_i32_0 = arith.constant 0 : i32
    %c0_i32_1 = arith.constant 0 : i32
    return %c0_i32, %c0_i32_0 : i32, i32
  }
}

module attributes {stable_mosaic.version = 11 : i64} {
  func.func @_fused_mm_kernel(%arg0: i32, %arg1: memref<32x576xbf16, #tpu.memory_space<vmem>>, %arg2: memref<576x64xbf16, #tpu.memory_space<vmem>>, %arg3: memref<1x64xf32, #tpu.memory_space<vmem>>, %arg4: memref<1x64xf32, #tpu.memory_space<vmem>>, %arg5: memref<32x64xf32, #tpu.memory_space<vmem>>, %arg6: memref<32x64xf32, #tpu.memory_space<vmem>>) attributes {dimension_semantics = [#tpu.dimension_semantics<arbitrary>], iteration_bounds = array<i64: 1>, scalar_prefetch = 0 : i64, scratch_operands = 0 : i64, tpu.core_type = #tpu.core_type<tc>, window_params = [{pipeline_mode = #tpu.pipeline_mode<synchronous>, transform_indices = @transform_0, window_bounds = array<i64: 32, 576>}, {pipeline_mode = #tpu.pipeline_mode<synchronous>, transform_indices = @transform_1, window_bounds = array<i64: 576, 64>}, {pipeline_mode = #tpu.pipeline_mode<synchronous>, transform_indices = @transform_2, window_bounds = array<i64: 1, 64>}, {pipeline_mode = #tpu.pipeline_mode<synchronous>, transform_indices = @transform_3, window_bounds = array<i64: 1, 64>}, {pipeline_mode = #tpu.pipeline_mode<synchronous>, transform_indices = @transform_4, window_bounds = array<i64: 32, 64>}, {pipeline_mode = #tpu.pipeline_mode<synchronous>, transform_indices = @transform_5, window_bounds = array<i64: 32, 64>}]} {
    %c0 = arith.constant 0 : index
    %c0_0 = arith.constant 0 : index
    %0 = vector.load %arg1[%c0, %c0_0] : memref<32x576xbf16, #tpu.memory_space<vmem>>, vector<32x576xbf16>
    %c0_1 = arith.constant 0 : index
    %c0_2 = arith.constant 0 : index
    %1 = vector.load %arg2[%c0_1, %c0_2] : memref<576x64xbf16, #tpu.memory_space<vmem>>, vector<576x64xbf16>
    %cst = arith.constant dense<0.000000e+00> : vector<32x64xf32>
    %2 = tpu.matmul %0, %1, %cst {dimension_numbers = #tpu.dot_dimension_numbers<[1], [0], [0], [1], [0, 0, 1, 1], [], []>} : vector<32x576xbf16>, vector<576x64xbf16>, vector<32x64xf32> -> vector<32x64xf32>
    %c0_3 = arith.constant 0 : index
    %c0_4 = arith.constant 0 : index
    %3 = vector.load %arg3[%c0_3, %c0_4] : memref<1x64xf32, #tpu.memory_space<vmem>>, vector<1x64xf32>
    %4 = vector.broadcast %3 : vector<1x64xf32> to vector<32x64xf32>
    %5 = arith.mulf %2, %4 : vector<32x64xf32>
    %c0_5 = arith.constant 0 : index
    %c0_6 = arith.constant 0 : index
    %6 = vector.load %arg4[%c0_5, %c0_6] : memref<1x64xf32, #tpu.memory_space<vmem>>, vector<1x64xf32>
    %7 = vector.broadcast %6 : vector<1x64xf32> to vector<32x64xf32>
    %8 = arith.addf %5, %7 : vector<32x64xf32>
    %cst_7 = arith.constant 0.000000e+00 : f32
    %9 = vector.broadcast %cst_7 : f32 to vector<32x64xf32>
    %10 = arith.maximumf %8, %9 : vector<32x64xf32>
    %c0_8 = arith.constant 0 : index
    %c0_9 = arith.constant 0 : index
    %11 = vector.load %arg5[%c0_8, %c0_9] : memref<32x64xf32, #tpu.memory_space<vmem>>, vector<32x64xf32>
    %12 = arith.addf %10, %11 : vector<32x64xf32>
    %c0_10 = arith.constant 0 : index
    %c0_11 = arith.constant 0 : index
    %13 = vector.load %arg6[%c0_10, %c0_11] : memref<32x64xf32, #tpu.memory_space<vmem>>, vector<32x64xf32>
    tpu.vector_store %arg6[%c0_10, %c0_11], %12 {strides = array<i32>} : memref<32x64xf32, #tpu.memory_space<vmem>>, vector<32x64xf32>,
    return
  }
  func.func @transform_0(%arg0: i32) -> (i32, i32) {
    %c0_i32 = arith.constant 0 : i32
    %c0_i32_0 = arith.constant 0 : i32
    %c0_i32_1 = arith.constant 0 : i32
    return %c0_i32, %c0_i32_0 : i32, i32
  }
  func.func @transform_1(%arg0: i32) -> (i32, i32) {
    %c0_i32 = arith.constant 0 : i32
    %c0_i32_0 = arith.constant 0 : i32
    %c0_i32_1 = arith.constant 0 : i32
    return %c0_i32, %c0_i32_0 : i32, i32
  }
  func.func @transform_2(%arg0: i32) -> (i32, i32) {
    %c0_i32 = arith.constant 0 : i32
    %c0_i32_0 = arith.constant 0 : i32
    %c0_i32_1 = arith.constant 0 : i32
    return %c0_i32, %c0_i32_0 : i32, i32
  }
  func.func @transform_3(%arg0: i32) -> (i32, i32) {
    %c0_i32 = arith.constant 0 : i32
    %c0_i32_0 = arith.constant 0 : i32
    %c0_i32_1 = arith.constant 0 : i32
    return %c0_i32, %c0_i32_0 : i32, i32
  }
  func.func @transform_4(%arg0: i32) -> (i32, i32) {
    %c0_i32 = arith.constant 0 : i32
    %c0_i32_0 = arith.constant 0 : i32
    %c0_i32_1 = arith.constant 0 : i32
    return %c0_i32, %c0_i32_0 : i32, i32
  }
  func.func @transform_5(%arg0: i32) -> (i32, i32) {
    %c0_i32 = arith.constant 0 : i32
    %c0_i32_0 = arith.constant 0 : i32
    %c0_i32_1 = arith.constant 0 : i32
    return %c0_i32, %c0_i32_0 : i32, i32
  }
}

module attributes {stable_mosaic.version = 11 : i64} {
  func.func @_fused_mm_kernel(%arg0: i32, %arg1: memref<128x288xbf16, #tpu.memory_space<vmem>>, %arg2: memref<288x4xbf16, #tpu.memory_space<vmem>>, %arg3: memref<1x4xf32, #tpu.memory_space<vmem>>, %arg4: memref<128x4xf32, #tpu.memory_space<vmem>>) attributes {dimension_semantics = [#tpu.dimension_semantics<arbitrary>], iteration_bounds = array<i64: 1>, scalar_prefetch = 0 : i64, scratch_operands = 0 : i64, tpu.core_type = #tpu.core_type<tc>, window_params = [{pipeline_mode = #tpu.pipeline_mode<synchronous>, transform_indices = @transform_0, window_bounds = array<i64: 128, 288>}, {pipeline_mode = #tpu.pipeline_mode<synchronous>, transform_indices = @transform_1, window_bounds = array<i64: 288, 4>}, {pipeline_mode = #tpu.pipeline_mode<synchronous>, transform_indices = @transform_2, window_bounds = array<i64: 1, 4>}, {pipeline_mode = #tpu.pipeline_mode<synchronous>, transform_indices = @transform_3, window_bounds = array<i64: 128, 4>}]} {
    %c0 = arith.constant 0 : index
    %c0_0 = arith.constant 0 : index
    %0 = vector.load %arg1[%c0, %c0_0] : memref<128x288xbf16, #tpu.memory_space<vmem>>, vector<128x288xbf16>
    %c0_1 = arith.constant 0 : index
    %c0_2 = arith.constant 0 : index
    %1 = vector.load %arg2[%c0_1, %c0_2] : memref<288x4xbf16, #tpu.memory_space<vmem>>, vector<288x4xbf16>
    %cst = arith.constant dense<0.000000e+00> : vector<128x4xf32>
    %2 = tpu.matmul %0, %1, %cst {dimension_numbers = #tpu.dot_dimension_numbers<[1], [0], [0], [1], [0, 0, 1, 1], [], []>} : vector<128x288xbf16>, vector<288x4xbf16>, vector<128x4xf32> -> vector<128x4xf32>
    %c0_3 = arith.constant 0 : index
    %c0_4 = arith.constant 0 : index
    %3 = vector.load %arg3[%c0_3, %c0_4] : memref<1x4xf32, #tpu.memory_space<vmem>>, vector<1x4xf32>
    %4 = vector.broadcast %3 : vector<1x4xf32> to vector<128x4xf32>
    %5 = arith.addf %2, %4 : vector<128x4xf32>
    %c0_5 = arith.constant 0 : index
    %c0_6 = arith.constant 0 : index
    %6 = vector.load %arg4[%c0_5, %c0_6] : memref<128x4xf32, #tpu.memory_space<vmem>>, vector<128x4xf32>
    tpu.vector_store %arg4[%c0_5, %c0_6], %5 {strides = array<i32>} : memref<128x4xf32, #tpu.memory_space<vmem>>, vector<128x4xf32>,
    return
  }
  func.func @transform_0(%arg0: i32) -> (i32, i32) {
    %c0_i32 = arith.constant 0 : i32
    %c0_i32_0 = arith.constant 0 : i32
    %c0_i32_1 = arith.constant 0 : i32
    return %c0_i32, %c0_i32_0 : i32, i32
  }
  func.func @transform_1(%arg0: i32) -> (i32, i32) {
    %c0_i32 = arith.constant 0 : i32
    %c0_i32_0 = arith.constant 0 : i32
    %c0_i32_1 = arith.constant 0 : i32
    return %c0_i32, %c0_i32_0 : i32, i32
  }
  func.func @transform_2(%arg0: i32) -> (i32, i32) {
    %c0_i32 = arith.constant 0 : i32
    %c0_i32_0 = arith.constant 0 : i32
    %c0_i32_1 = arith.constant 0 : i32
    return %c0_i32, %c0_i32_0 : i32, i32
  }
  func.func @transform_3(%arg0: i32) -> (i32, i32) {
    %c0_i32 = arith.constant 0 : i32
    %c0_i32_0 = arith.constant 0 : i32
    %c0_i32_1 = arith.constant 0 : i32
    return %c0_i32, %c0_i32_0 : i32, i32
  }
}

</mosaic_0001>

<bundles_post_ra>
// kernel: unet_forward.14
= control target key start
LH: loop header
LB: loop body
LE: loop exit
PB: predicated region body
PF: predicated region fallthrough
CT: control target
= control target key end

     0   :  { %v135_v0 = vmov 0.0   ;;  %vm136_vm0 = vmmov 0   ;;  %vm55_vm1 = vcmask 523264   ;;  %vm100_vm2 = vcmask 517120   ;;  %s178_s1 = inlined_call_operand.vmem [shape: bf16[64,64], index: 1, kind: input, shape index: {}]   ;;  %s179_s0 = inlined_call_operand.vmem [shape: bf16[2,64], index: 0, kind: input, shape index: {}]   ;;  %s180_s2 = inlined_call_operand.vmem [shape: f32[1,64], index: 2, kind: input, shape index: {}]   ;;  %s181_s3 = inlined_call_operand.vmem [shape: f32[2,64], index: 3, kind: output, shape index: {}]  }
   0x1   :  { %117 = vmatprep.subr.bf16.mxu0 %v135_v0  ;;  %v131_v1 = vld [vmem:[%s178_s1 + $0x18] sm:$0xff]   ;;  %125 = vmatprep.mubr.msk.bf16.mxu0 %vm136_vm0, %v135_v0  ;;  %v132_v2 = vld [vmem:[%s178_s1 + $0x10] sm:$0xff]   ;;  %v133_v3 = vld [vmem:[%s178_s1 + $0x8] sm:$0xff]  }
   0x2   :  { %118 = vmatpush3.bf16.msra.mxu0 %v131_v1  ;;  %v134_v4 = vld [vmem:[%s178_s1] sm:$0xff]  }
   0x3   :  { %119 = vmatprep.subr.bf16.mxu0 %v135_v0  ;;  %v15_v5 = vld [vmem:[%s179_s0] sm:$0x1] }
   0x4   :  { %v106_v6 = vld [vmem:[%s180_s2] ss:$0 sm:$0xff] }
   0x6   :  { %120 = vmatpush3.bf16.msra.mxu0 %v132_v2 }
   0x7   :  { %121 = vmatprep.subr.bf16.mxu0 %v135_v0 }
   0xa   :  { %122 = vmatpush3.bf16.msra.mxu0 %v133_v3 }
   0xb   :  { %123 = vmatprep.subr.bf16.mxu0 %v135_v0 }
   0xe   :  { %124 = vmatpush3.bf16.msra.mxu0 %v134_v4 }
  0x11   :  { %126 = vmatmul.mubr.msk.bf16.vlgmr.msra.gmra.mxu0 %vm55_vm1, %v15_v5 }
  0xd1   :  { %v93_v7 = vpop.f32.mrf.mxu0 }
  0xd2   :  { %v94_v8 = vadd.f32 %v106_v6, %v93_v7 }
  0xd3   :  { %v127_v9 = vpop.f32.mrf.mxu0 }
  0xd4   :  { %v99_v10 = vmax.f32 %v94_v8, 0.0 }
  0xd5   :  { %v96_v11 = vpop.f32.mrf.mxu0 }
  0xd6   :  { %101 = vst.msk [vmem:[%s181_s3] sm:$0x3] %vm100_vm2, %v99_v10 }
  0xd7   :  { %v128_v12 = vpop.f32.mrf.mxu0 }

// kernel: unet_forward.15
= control target key start
LH: loop header
LB: loop body
LE: loop exit
PB: predicated region body
PF: predicated region fallthrough
CT: control target
= control target key end

     0   :  { %v701_v1 = vmov 0   ;;  %vm310_vm0 = vcmask 523264   ;;  %v60_v42 = vlaneseq  ;;  %v702_v51 = vmov 1983009808   ;;  %s890_s1 = inlined_call_operand.vmem [shape: bf16[64,1248], index: 1, kind: input, shape index: {}]   ;;  %s891_s0 = inlined_call_operand.vmem [shape: bf16[2,64], index: 0, kind: input, shape index: {}]   ;;  %s892_s2 = inlined_call_operand.vmem [shape: f32[1,1248], index: 2, kind: input, shape index: {}]   ;;  %s893_s3 = inlined_call_operand.vmem [shape: f32[2,1248], index: 3, kind: output, shape index: {}]  }
   0x1   :  { %v641_v0 = vld [vmem:[%s890_s1 + $0xf4] ss:$40 sps:$4 sm:$0xff]   ;;  %346 = vmatprep.mubr.bf16.mxu0 %v701_v1  ;;  %387 = vmatprep.mubr.bf16.mxu1 %v701_v1  ;;  %v645_v3 = vld [vmem:[%s890_s1 + $0xf0] ss:$40 sps:$4 sm:$0xff]   ;;  %v647_v5 = vld [vmem:[%s890_s1 + $0xa4] ss:$40 sps:$4 sm:$0xff]   ;;  %v542_v52 = vunpack.c.l.s4 %v702_v51 }
   0x2   :  { %v643_v2 = vld [vmem:[%s890_s1 + $0xfc] ss:$40 sps:$4 sm:$0xff]   ;;  %322 = vmatprep.subr.bf16.mxu0 %v641_v0  ;;  %v646_v4 = vld [vmem:[%s890_s1 + $0xf8] ss:$40 sps:$4 sm:$0xff]   ;;  %v649_v6 = vld [vmem:[%s890_s1 + $0xac] ss:$40 sps:$4 sm:$0xff]  }
   0x3   :  { %363 = vmatprep.subr.bf16.mxu1 %v643_v2  ;;  %323 = vmatpush1.bf16.msra.mxu0 %v645_v3  ;;  %v651_v7 = vld [vmem:[%s890_s1 + $0xa0] ss:$40 sps:$4 sm:$0xff]   ;;  %v653_v9 = vld [vmem:[%s890_s1 + $0x54] ss:$40 sps:$4 sm:$0xff]   ;;  %v657_v11 = vld [vmem:[%s890_s1 + $0x50] ss:$40 sps:$4 sm:$0xff]   ;;  %v543_v59 = vunpack.c.0.s8 %v542_v52 }
   0x4   :  { %364 = vmatpush1.bf16.msra.mxu1 %v646_v4  ;;  %324 = vmatprep.subr.bf16.mxu0 %v647_v5  ;;  %v652_v8 = vld [vmem:[%s890_s1 + $0xa8] ss:$40 sps:$4 sm:$0xff]   ;;  %v655_v10 = vld [vmem:[%s890_s1 + $0x5c] ss:$40 sps:$4 sm:$0xff]   ;;  %v658_v12 = vld [vmem:[%s890_s1 + $0x58] ss:$40 sps:$4 sm:$0xff]  }
   0x5   :  { %365 = vmatprep.subr.bf16.mxu1 %v649_v6  ;;  %v659_v13 = vld [vmem:[%s890_s1 + $0x4] ss:$40 sps:$4 sm:$0xff]   ;;  %v663_v15 = vld [vmem:[%s890_s1] ss:$40 sps:$4 sm:$0xff]   ;;  %v673_v22 = vld [vmem:[%s890_s1 + $0xb4] ss:$40 sps:$4 sm:$0xff]  }
   0x6   :  { %v661_v14 = vld [vmem:[%s890_s1 + $0xc] ss:$40 sps:$4 sm:$0xff]   ;;  %v664_v16 = vld [vmem:[%s890_s1 + $0x8] ss:$40 sps:$4 sm:$0xff]   ;;  %v15_v19 = vld [vmem:[%s891_s0] sm:$0x1] }
   0x7   :  { %325 = vmatpush1.bf16.msra.mxu0 %v651_v7  ;;  %v667_v17 = vld [vmem:[%s890_s1 + $0x104] ss:$40 sps:$4 sm:$0xff]   ;;  %v665_v20 = vld [vmem:[%s890_s1 + $0x100] ss:$40 sps:$4 sm:$0xff]   ;;  %v671_v24 = vld [vmem:[%s890_s1 + $0xb0] ss:$40 sps:$4 sm:$0xff]  }
   0x8   :  { %366 = vmatpush1.bf16.msra.mxu1 %v652_v8  ;;  %326 = vmatprep.subr.bf16.mxu0 %v653_v9  ;;  %v670_v18 = vld [vmem:[%s890_s1 + $0x10c] ss:$40 sps:$4 sm:$0xff]   ;;  %v668_v21 = vld [vmem:[%s890_s1 + $0x108] ss:$40 sps:$4 sm:$0xff]   ;;  %v676_v23 = vld [vmem:[%s890_s1 + $0xbc] ss:$40 sps:$4 sm:$0xff]  }
   0x9   :  { %367 = vmatprep.subr.bf16.mxu1 %v655_v10  ;;  %v674_v25 = vld [vmem:[%s890_s1 + $0xb8] ss:$40 sps:$4 sm:$0xff]   ;;  %v679_v26 = vld [vmem:[%s890_s1 + $0x64] ss:$40 sps:$4 sm:$0xff]   ;;  %v680_v29 = vld [vmem:[%s890_s1 + $0x68] ss:$40 sps:$4 sm:$0xff]  }
   0xa   :  { %v682_v27 = vld [vmem:[%s890_s1 + $0x6c] ss:$40 sps:$4 sm:$0xff]   ;;  %v677_v28 = vld [vmem:[%s890_s1 + $0x60] ss:$40 sps:$4 sm:$0xff]   ;;  %v688_v31 = vld [vmem:[%s890_s1 + $0x1c] ss:$40 sps:$4 sm:$0xff]  }
   0xb   :  { %327 = vmatpush1.bf16.msra.mxu0 %v657_v11  ;;  %v685_v30 = vld [vmem:[%s890_s1 + $0x14] ss:$40 sps:$4 sm:$0xff]   ;;  %v683_v32 = vld [vmem:[%s890_s1 + $0x10] ss:$40 sps:$4 sm:$0xff]   ;;  %v694_v36 = vld [vmem:[%s890_s1 + $0xc4] ss:$40 sps:$4 sm:$0xff]  }
   0xc   :  { %368 = vmatpush1.bf16.msra.mxu1 %v658_v12  ;;  %328 = vmatprep.subr.bf16.mxu0 %v659_v13  ;;  %v686_v33 = vld [vmem:[%s890_s1 + $0x18] ss:$40 sps:$4 sm:$0xff]   ;;  %v691_v34 = vld [vmem:[%s890_s1 + $0x114] ss:$40 sps:$4 sm:$0xff]   ;;  %v700_v40 = vld [vmem:[%s890_s1 + $0x24] ss:$40 sps:$4 sm:$0xff]  }
   0xd   :  { %369 = vmatprep.subr.bf16.mxu1 %v661_v14  ;;  %v689_v35 = vld [vmem:[%s890_s1 + $0x110] ss:$40 sps:$4 sm:$0xff]   ;;  %v692_v37 = vld [vmem:[%s890_s1 + $0xc0] ss:$40 sps:$4 sm:$0xff]   ;;  %v697_v38 = vld [vmem:[%s890_s1 + $0x74] ss:$40 sps:$4 sm:$0xff]  }
   0xe   :  { %v695_v39 = vld [vmem:[%s890_s1 + $0x70] ss:$40 sps:$4 sm:$0xff]   ;;  %v698_v41 = vld [vmem:[%s890_s1 + $0x20] ss:$40 sps:$4 sm:$0xff]   ;;  %v856_v43 = vshrl.u32 %v60_v42, 7  ;;  %vm586_vm1 = vcmask 1041408  }
   0xf   :  { %329 = vmatpush1.bf16.msra.mxu0 %v663_v15  ;;  %v56_v46 = vld [vmem:[%s892_s2] sm:$0xff]  ;;  %v57_v42 = vld [vmem:[%s892_s2 + $0x8] sm:$0x3]  ;;  %vm587_vm2 = vcmask 781314  }
  0x10   :  { %370 = vmatpush1.bf16.msra.mxu1 %v664_v16  ;;  %404 = vmatprep.subr.bf16.mxu0 %v667_v17  ;;  %v62_v44 = vsub.s32 0, %v856_v43  ;;  %v70_v45 = vsub.s32 2, %v856_v43  ;;  %v66_v47 = vsub.s32 1, %v856_v43  ;;  %v74_v48 = vsub.s32 3, %v856_v43  ;;  %vm588_vm3 = vmor %vm587_vm2, %vm586_vm1 }
  0x11   :  { %445 = vmatprep.subr.bf16.mxu1 %v670_v18  ;;  %v546_v5 = vsub.s32 %v543_v59, %v856_v43  ;;  %v78_v13 = vsub.s32 4, %v856_v43  ;;  %v86_v14 = vsub.s32 6, %v856_v43  ;;  %v82_v16 = vsub.s32 5, %v856_v43 }
  0x12   :  { %634 = vmatmul.mubr.msk.bf16.vlgmr.msra.gmra.mxu0 %vm310_vm0, %v15_v19  ;;  %v63_v49 = vrot.slane %v56_v46, %v62_v44  ;;  %v71_v50 = vrot.slane %v56_v46, %v70_v45  ;;  %v67_v53 = vrot.slane %v56_v46, %v66_v47  ;;  %v75_v54 = vrot.slane %v56_v46, %v74_v48 }
  0x13   :  { %635 = vmatmul.mubr.msk.bf16.vlgmr.msra.gmra.mxu1 %vm310_vm0, %v15_v19  ;;  %405 = vmatpush1.bf16.msra.mxu0 %v665_v20  ;;  %v90_v17 = vsub.s32 7, %v856_v43  ;;  %v79_v18 = vrot.slane %v56_v46, %v78_v13  ;;  %v83_v20 = vrot.slane %v56_v46, %v82_v16  ;;  %v99_v48 = vrot.slane %v57_v42, %v66_v47 }
  0x14   :  { %446 = vmatpush1.bf16.msra.mxu1 %v668_v21  ;;  %406 = vmatprep.subr.bf16.mxu0 %v673_v22 }
  0x15   :  { %447 = vmatprep.subr.bf16.mxu1 %v676_v23  ;;  %428 = vmatprep.mubr.bf16.mxu0 %v701_v1  ;;  %v91_v21 = vrot.slane %v56_v46, %v90_v17 }
  0x16   :  { %469 = vmatprep.mubr.bf16.mxu1 %v701_v1 }
  0x17   :  { %407 = vmatpush1.bf16.msra.mxu0 %v671_v24 }
  0x18   :  { %448 = vmatpush1.bf16.msra.mxu1 %v674_v25  ;;  %408 = vmatprep.subr.bf16.mxu0 %v679_v26 }
  0x19   :  { %449 = vmatprep.subr.bf16.mxu1 %v682_v27 }
  0x1b   :  { %409 = vmatpush1.bf16.msra.mxu0 %v677_v28 }
  0x1c   :  { %450 = vmatpush1.bf16.msra.mxu1 %v680_v29  ;;  %410 = vmatprep.subr.bf16.mxu0 %v685_v30 }
  0x1d   :  { %451 = vmatprep.subr.bf16.mxu1 %v688_v31 }
  0x1f   :  { %411 = vmatpush1.bf16.msra.mxu0 %v683_v32 }
  0x20   :  { %452 = vmatpush1.bf16.msra.mxu1 %v686_v33  ;;  %486 = vmatprep.subr.bf16.mxu0 %v691_v34 }
  0x22   :  { %636 = vmatmul.mubr.msk.bf16.vlgmr.msra.gmra.mxu0 %vm310_vm0, %v15_v19 }
  0x23   :  { %637 = vmatmul.mubr.msk.bf16.vlgmr.msra.gmra.mxu1 %vm310_vm0, %v15_v19  ;;  %487 = vmatpush1.bf16.msra.mxu0 %v689_v35 }
  0x24   :  { %510 = vmatprep.mubr.bf16.mxu0 %v701_v1  ;;  %488 = vmatprep.subr.bf16.mxu0 %v694_v36 }
  0x27   :  { %489 = vmatpush1.bf16.msra.mxu0 %v692_v37 }
  0x28   :  { %490 = vmatprep.subr.bf16.mxu0 %v697_v38 }
  0x2b   :  { %491 = vmatpush1.bf16.msra.mxu0 %v695_v39 }
  0x2c   :  { %492 = vmatprep.subr.bf16.mxu0 %v700_v40 }
  0x2f   :  { %493 = vmatpush1.bf16.msra.mxu0 %v698_v41 }
  0x32   :  { %638 = vmatmul.mubr.msk.bf16.vlgmr.msra.gmra.mxu0 %vm310_vm0, %v15_v19  ;;  %v87_v19 = vrot.slane %v56_v46, %v86_v14  ;;  %v95_v46 = vrot.slane %v57_v42, %v62_v44 }
  0xd2   :  { %v348_v55 = vpop.f32.mrf.mxu0 }
  0xd3   :  { %v389_v56 = vpop.f32.mrf.mxu1  ;;  %v349_v57 = vadd.f32 %v348_v55, %v63_v49 }
  0xd4   :  { %v390_v58 = vadd.f32 %v389_v56, %v71_v50  ;;  %v350_v60 = vpop.f32.mrf.mxu0 }
  0xd5   :  { %v391_v61 = vpop.f32.mrf.mxu1  ;;  %v519_v62 = vmax.f32 %v349_v57, 0.0  ;;  %v351_v0 = vadd.f32 %v350_v60, %v67_v53 }
  0xd6   :  { %v521_v63 = vmax.f32 %v390_v58, 0.0  ;;  %v392_v1 = vadd.f32 %v391_v61, %v75_v54  ;;  %v352_v2 = vpop.f32.mrf.mxu0 }
  0xd7   :  { %v393_v3 = vpop.f32.mrf.mxu1  ;;  %v520_v4 = vmax.f32 %v351_v0, 0.0 }
  0xd8   :  { %v522_v6 = vmax.f32 %v392_v1, 0.0  ;;  %v353_v7 = vpop.f32.mrf.mxu0 }
  0xd9   :  { %v394_v8 = vpop.f32.mrf.mxu1  ;;  %v539_v9 = vcombine.low %v519_v62, %v520_v4 }
  0xda   :  { %v540_v10 = vcombine.low %v521_v63, %v522_v6 }
  0xdb   :  { %v547_v11 = vrot.slane %v539_v9, %v546_v5 }
  0xdc   :  { %v554_v12 = vrot.slane %v540_v10, %v546_v5 }
  0xde   :  { %v555_v15 = vcombine.low %v547_v11, %v554_v12 }
  0xe0   :  { %584 = vst [vmem:[%s893_s3] sm:$0xff] %v555_v15 }
  0xe2   :  { %v430_v22 = vpop.f32.mrf.mxu0 }
  0xe3   :  { %v471_v23 = vpop.f32.mrf.mxu1  ;;  %v431_v24 = vadd.f32 %v430_v22, %v79_v18 }
  0xe4   :  { %v472_v25 = vadd.f32 %v471_v23, %v87_v19  ;;  %v432_v26 = vpop.f32.mrf.mxu0 }
  0xe5   :  { %v473_v27 = vpop.f32.mrf.mxu1  ;;  %v523_v28 = vmax.f32 %v431_v24, 0.0  ;;  %v433_v30 = vadd.f32 %v432_v26, %v83_v20 }
  0xe6   :  { %v525_v29 = vmax.f32 %v472_v25, 0.0  ;;  %v474_v31 = vadd.f32 %v473_v27, %v91_v21  ;;  %v434_v32 = vpop.f32.mrf.mxu0 }
  0xe7   :  { %v475_v33 = vpop.f32.mrf.mxu1  ;;  %v524_v34 = vmax.f32 %v433_v30, 0.0 }
  0xe8   :  { %v526_v35 = vmax.f32 %v474_v31, 0.0  ;;  %v435_v36 = vpop.f32.mrf.mxu0 }
  0xe9   :  { %v476_v37 = vpop.f32.mrf.mxu1  ;;  %v556_v38 = vcombine.low %v523_v28, %v524_v34 }
  0xea   :  { %v557_v39 = vcombine.low %v525_v29, %v526_v35 }
  0xeb   :  { %v564_v40 = vrot.slane %v556_v38, %v546_v5 }
  0xec   :  { %v571_v41 = vrot.slane %v557_v39, %v546_v5 }
  0xee   :  { %v572_v45 = vcombine.low %v564_v40, %v571_v41 }
  0xf0   :  { %585 = vst [vmem:[%s893_s3 + $0x8] sm:$0xff] %v572_v45 }
  0xf2   :  { %v512_v49 = vpop.f32.mrf.mxu0 }
  0xf3   :  { %v513_v50 = vadd.f32 %v512_v49, %v95_v46 }
  0xf4   :  { %v514_v51 = vpop.f32.mrf.mxu0 }
  0xf5   :  { %v515_v52 = vadd.f32 %v514_v51, %v99_v48  ;;  %v527_v54 = vmax.f32 %v513_v50, 0.0 }
  0xf6   :  { %v516_v53 = vpop.f32.mrf.mxu0 }
  0xf7   :  { %v528_v55 = vmax.f32 %v515_v52, 0.0 }
  0xf8   :  { %v517_v56 = vpop.f32.mrf.mxu0 }
  0xf9   :  { %v573_v57 = vcombine.low %v527_v54, %v528_v55 }
  0xfb   :  { %v580_v58 = vrot.slane %v573_v57, %v546_v5 }
  0xfd   :  { %589 = vst.msk [vmem:[%s893_s3 + $0x10] sm:$0xf] %vm588_vm3, %v580_v58 }

// kernel: unet_forward.16
= control target key start
LH: loop header
LB: loop body
LE: loop exit
PB: predicated region body
PF: predicated region fallthrough
CT: control target
= control target key end

     0   :  { %vm130_vm0 = vcmask 1040384   ;;  %vm105_vm1 = vcmask 408576   ;;  %vm357_vm2 = vcmask 130048   ;;  %s687_s1 = inlined_call_operand.vmem [shape: bf16[50,16], index: 1, kind: input, shape index: {}]   ;;  %s688_s0 = inlined_call_operand.vmem [shape: bf16[128,50], index: 0, kind: input, shape index: {}]   ;;  %s689_s2 = inlined_call_operand.vmem [shape: f32[1,16], index: 2, kind: input, shape index: {}]   ;;  %s690_s3 = inlined_call_operand.vmem [shape: f32[1,16], index: 3, kind: input, shape index: {}]   ;;  %s691_s4 = inlined_call_operand.vmem [shape: f32[128,16], index: 4, kind: input, shape index: {}]   ;;  %s692_s5 = inlined_call_operand.vmem [shape: f32[128,16], index: 5, kind: output, shape index: {}]  }
   0x1   :  { %v446_v0 = vld [vmem:[%s687_s1 + $0x18] ss:$0 sps:$4 sm:$0x11]   ;;  %v447_v1 = vld [vmem:[%s687_s1 + $0x10] sm:$0xff]   ;;  %v448_v3 = vld [vmem:[%s687_s1 + $0x8] sm:$0xff]  }
   0x2   :  { %444 = vmatprep.subr.msk.bf16.mxu0 %vm130_vm0, %v446_v0  ;;  %445 = vmatprep.subr.msk.bf16.mxu1 %vm130_vm0, %v446_v0  ;;  %v132_v2 = vsel %vm130_vm0, %v446_v0, 0  ;;  %v450_v4 = vld [vmem:[%s688_s0] sm:$0xff]   ;;  %v452_v7 = vld [vmem:[%s688_s0 + $0x8] sm:$0xff]   ;;  %v454_v9 = vld [vmem:[%s688_s0 + $0x10] sm:$0xff]  }
   0x3   :  { %413 = vmatpush3.bf16.msra.mxu0 %v132_v2  ;;  %440 = vmatpush3.bf16.msra.mxu1 %v132_v2  ;;  %v451_v5 = vld [vmem:[%s688_s0 + $0x20] sm:$0xff]   ;;  %v453_v8 = vld [vmem:[%s688_s0 + $0x28] sm:$0xff]   ;;  %v455_v10 = vld [vmem:[%s688_s0 + $0x30] sm:$0xff]  }
   0x4   :  { %414 = vmatprep.subr.bf16.mxu0 %v447_v1  ;;  %437 = vmatprep.subr.bf16.mxu1 %v447_v1  ;;  %v449_v6 = vld [vmem:[%s687_s1] sm:$0xff]   ;;  %v456_v11 = vld [vmem:[%s688_s0 + $0x18] sm:$0xff]   ;;  %v327_v25 = vld [vmem:[%s691_s4 + $0x10] sm:$0xff] }
   0x5   :  { %420 = vmatprep.mubr.msk.bf16.mxu0 %vm105_vm1, %v450_v4  ;;  %428 = vmatprep.mubr.msk.bf16.mxu1 %vm105_vm1, %v451_v5  ;;  %v457_v12 = vld [vmem:[%s688_s0 + $0x38] sm:$0xff]   ;;  %v535_v13 = vld [vmem:[%s689_s2] ss:$0 sm:$0xff]  ;;  %v335_v26 = vld [vmem:[%s691_s4 + $0x50] sm:$0xff] }
   0x6   :  { %v540_v15 = vld [vmem:[%s690_s3] ss:$0 sm:$0xff]  ;;  %v328_v60 = vld [vmem:[%s691_s4 + $0x18] sm:$0xff]  ;;  %v326_v0 = vld [vmem:[%s691_s4 + $0x8] sm:$0xff] }
   0x7   :  { %415 = vmatpush3.bf16.msra.mxu0 %v447_v1  ;;  %441 = vmatpush3.bf16.msra.mxu1 %v447_v1  ;;  %v325_v44 = vld [vmem:[%s691_s4] sm:$0xff]  ;;  %v336_v63 = vld [vmem:[%s691_s4 + $0x58] sm:$0xff] }
   0x8   :  { %416 = vmatprep.subr.bf16.mxu0 %v448_v3  ;;  %438 = vmatprep.subr.bf16.mxu1 %v448_v3  ;;  %v333_v48 = vld [vmem:[%s691_s4 + $0x40] sm:$0xff] }
   0xb   :  { %417 = vmatpush3.bf16.msra.mxu0 %v448_v3  ;;  %442 = vmatpush3.bf16.msra.mxu1 %v448_v3 }
   0xc   :  { %418 = vmatprep.subr.bf16.mxu0 %v449_v6  ;;  %439 = vmatprep.subr.bf16.mxu1 %v449_v6 }
   0xf   :  { %419 = vmatpush3.bf16.msra.mxu0 %v449_v6  ;;  %443 = vmatpush3.bf16.msra.mxu1 %v449_v6  ;;  %v334_v6 = vld [vmem:[%s691_s4 + $0x48] sm:$0xff] }
  0x12   :  { %421 = vmatmul.mubr.msk.bf16.vlgmr.msra.gmra.mxu0 %vm105_vm1, %v452_v7  ;;  %429 = vmatmul.mubr.msk.bf16.vlgmr.msra.gmra.mxu1 %vm105_vm1, %v453_v8 }
  0x13   :  { %424 = vmatprep.mubr.msk.bf16.mxu0 %vm105_vm1, %v454_v9  ;;  %432 = vmatprep.mubr.msk.bf16.mxu1 %vm105_vm1, %v455_v10 }
  0x1a   :  { %425 = vmatmul.mubr.msk.bf16.gmra.mxu0 %vm105_vm1, %v456_v11  ;;  %433 = vmatmul.mubr.msk.bf16.gmra.mxu1 %vm105_vm1, %v457_v12 }
  0xd2   :  { %v422_v14 = vpop.f32.mrf.mxu0  ;;  %v430_v16 = vpop.f32.mrf.mxu1 }
  0xd3   :  { %v240_v17 = vmul.f32 %v422_v14, %v535_v13  ;;  %v248_v18 = vmul.f32 %v430_v16, %v535_v13 }
  0xd4   :  { %v168_v19 = vpop.f32.mrf.mxu0  ;;  %v200_v20 = vpop.f32.mrf.mxu1 }
  0xd5   :  { %v263_v21 = vadd.f32 %v540_v15, %v240_v17  ;;  %v271_v22 = vadd.f32 %v540_v15, %v248_v18  ;;  %v238_v23 = vmul.f32 %v535_v13, %v168_v19  ;;  %v246_v24 = vmul.f32 %v535_v13, %v200_v20 }
  0xd6   :  { %v423_v27 = vpop.f32.mrf.mxu0  ;;  %v431_v28 = vpop.f32.mrf.mxu1 }
  0xd7   :  { %vm279_vm3 = vcmp.ge.f32.partialorder %v263_v21, 0.0  ;;  %v295_v29 = vmul.f32 0.2, %v263_v21  ;;  %vm287_vm4 = vcmp.ge.f32.partialorder %v271_v22, 0.0  ;;  %v303_v30 = vmul.f32 0.2, %v271_v22 }
  0xd8   :  { %v261_v31 = vadd.f32 %v540_v15, %v238_v23  ;;  %v269_v32 = vadd.f32 %v540_v15, %v246_v24  ;;  %v241_v33 = vmul.f32 %v423_v27, %v535_v13  ;;  %v249_v34 = vmul.f32 %v431_v28, %v535_v13  ;;  %v171_v35 = vpop.f32.mrf.mxu0  ;;  %v203_v36 = vpop.f32.mrf.mxu1 }
  0xd9   :  { %v311_v37 = vsel %vm279_vm3, %v263_v21, %v295_v29  ;;  %v319_v38 = vsel %vm287_vm4, %v271_v22, %v303_v30  ;;  %v239_v39 = vmul.f32 %v535_v13, %v171_v35  ;;  %v247_v40 = vmul.f32 %v535_v13, %v203_v36  ;;  %v331_v22 = vld [vmem:[%s691_s4 + $0x30] sm:$0xff]  ;;  %v329_v35 = vld [vmem:[%s691_s4 + $0x20] sm:$0xff] }
  0xda   :  { %v343_v41 = vadd.f32 %v327_v25, %v311_v37  ;;  %v351_v42 = vadd.f32 %v335_v26, %v319_v38  ;;  %vm277_vm5 = vcmp.ge.f32.partialorder %v261_v31, 0.0  ;;  %v293_v43 = vmul.f32 0.2, %v261_v31  ;;  %v426_v45 = vpop.f32.mrf.mxu0  ;;  %v434_v46 = vpop.f32.mrf.mxu1 }
  0xdb   :  { %vm285_vm6 = vcmp.ge.f32.partialorder %v269_v32, 0.0  ;;  %v301_v47 = vmul.f32 0.2, %v269_v32  ;;  %v264_v49 = vadd.f32 %v540_v15, %v241_v33  ;;  %v272_v50 = vadd.f32 %v540_v15, %v249_v34  ;;  %v339_v33 = vld [vmem:[%s691_s4 + $0x70] sm:$0xff] }
  0xdc   :  { %360 = vst.msk [vmem:[%s692_s5 + $0x10] sm:$0xff] %vm357_vm2, %v343_v41  ;;  %368 = vst.msk [vmem:[%s692_s5 + $0x50] sm:$0xff] %vm357_vm2, %v351_v42  ;;  %v309_v51 = vsel %vm277_vm5, %v261_v31, %v293_v43  ;;  %v262_v52 = vadd.f32 %v540_v15, %v239_v39  ;;  %v270_v53 = vadd.f32 %v540_v15, %v247_v40  ;;  %v184_v55 = vpop.f32.mrf.mxu0  ;;  %v216_v56 = vpop.f32.mrf.mxu1 }
  0xdd   :  { %v244_v54 = vmul.f32 %v426_v45, %v535_v13  ;;  %v341_v57 = vadd.f32 %v325_v44, %v309_v51  ;;  %v317_v58 = vsel %vm285_vm6, %v269_v32, %v301_v47  ;;  %vm280_vm7 = vcmp.ge.f32.partialorder %v264_v49, 0.0  ;;  %v337_v44 = vld [vmem:[%s691_s4 + $0x60] sm:$0xff]  ;;  %v332_v47 = vld [vmem:[%s691_s4 + $0x38] sm:$0xff]  ;;  %v330_v51 = vld [vmem:[%s691_s4 + $0x28] sm:$0xff] }
  0xde   :  { %v296_v59 = vmul.f32 0.2, %v264_v49  ;;  %v349_v61 = vadd.f32 %v333_v48, %v317_v58  ;;  %vm288_vm8 = vcmp.ge.f32.partialorder %v272_v50, 0.0  ;;  %v304_v62 = vmul.f32 0.2, %v272_v50  ;;  %v427_v1 = vpop.f32.mrf.mxu0  ;;  %v435_v2 = vpop.f32.mrf.mxu1 }
  0xdf   :  { %vm278_vm9 = vcmp.ge.f32.partialorder %v262_v52, 0.0  ;;  %358 = vst.msk [vmem:[%s692_s5] sm:$0xff] %vm357_vm2, %v341_v57  ;;  %v294_v4 = vmul.f32 0.2, %v262_v52  ;;  %vm286_vm10 = vcmp.ge.f32.partialorder %v270_v53, 0.0  ;;  %v267_v9 = vadd.f32 %v540_v15, %v244_v54 }
  0xe0   :  { %v312_v3 = vsel %vm280_vm7, %v264_v49, %v296_v59  ;;  %v302_v5 = vmul.f32 0.2, %v270_v53  ;;  %366 = vst.msk [vmem:[%s692_s5 + $0x40] sm:$0xff] %vm357_vm2, %v349_v61  ;;  %v320_v8 = vsel %vm288_vm8, %v272_v50, %v304_v62  ;;  %v252_v10 = vmul.f32 %v434_v46, %v535_v13  ;;  %v187_v17 = vpop.f32.mrf.mxu0  ;;  %v219_v18 = vpop.f32.mrf.mxu1 }
  0xe1   :  { %v344_v7 = vadd.f32 %v328_v60, %v312_v3  ;;  %v352_v11 = vadd.f32 %v336_v63, %v320_v8  ;;  %v310_v12 = vsel %vm278_vm9, %v262_v52, %v294_v4  ;;  %v242_v16 = vmul.f32 %v535_v13, %v184_v55  ;;  %v338_v55 = vld [vmem:[%s691_s4 + $0x68] sm:$0xff] }
  0xe2   :  { %v318_v14 = vsel %vm286_vm10, %v270_v53, %v302_v5  ;;  %v342_v19 = vadd.f32 %v326_v0, %v310_v12  ;;  %vm283_vm11 = vcmp.ge.f32.partialorder %v267_v9, 0.0  ;;  %v299_v21 = vmul.f32 0.2, %v267_v9 }
  0xe3   :  { %361 = vst.msk [vmem:[%s692_s5 + $0x18] sm:$0xff] %vm357_vm2, %v344_v7  ;;  %v350_v20 = vadd.f32 %v334_v6, %v318_v14  ;;  %369 = vst.msk [vmem:[%s692_s5 + $0x58] sm:$0xff] %vm357_vm2, %v352_v11  ;;  %v275_v23 = vadd.f32 %v540_v15, %v252_v10  ;;  %v265_v24 = vadd.f32 %v540_v15, %v242_v16 }
  0xe4   :  { %v250_v25 = vmul.f32 %v535_v13, %v216_v56  ;;  %v245_v26 = vmul.f32 %v427_v1, %v535_v13  ;;  %359 = vst.msk [vmem:[%s692_s5 + $0x8] sm:$0xff] %vm357_vm2, %v342_v19  ;;  %v315_v27 = vsel %vm283_vm11, %v267_v9, %v299_v21  ;;  %v253_v28 = vmul.f32 %v435_v2, %v535_v13 }
  0xe5   :  { %367 = vst.msk [vmem:[%s692_s5 + $0x48] sm:$0xff] %vm357_vm2, %v350_v20  ;;  %v243_v29 = vmul.f32 %v535_v13, %v187_v17  ;;  %v251_v30 = vmul.f32 %v535_v13, %v219_v18  ;;  %v347_v31 = vadd.f32 %v331_v22, %v315_v27  ;;  %vm291_vm12 = vcmp.ge.f32.partialorder %v275_v23, 0.0 }
  0xe6   :  { %v307_v32 = vmul.f32 0.2, %v275_v23  ;;  %vm281_vm13 = vcmp.ge.f32.partialorder %v265_v24, 0.0  ;;  %v297_v34 = vmul.f32 0.2, %v265_v24  ;;  %v273_v36 = vadd.f32 %v540_v15, %v250_v25 }
  0xe7   :  { %v268_v37 = vadd.f32 %v540_v15, %v245_v26  ;;  %v276_v38 = vadd.f32 %v540_v15, %v253_v28  ;;  %364 = vst.msk [vmem:[%s692_s5 + $0x30] sm:$0xff] %vm357_vm2, %v347_v31  ;;  %v266_v39 = vadd.f32 %v540_v15, %v243_v29  ;;  %v274_v40 = vadd.f32 %v540_v15, %v251_v30  ;;  %v340_v15 = vld [vmem:[%s691_s4 + $0x78] sm:$0xff] }
  0xe8   :  { %v323_v13 = vsel %vm291_vm12, %v275_v23, %v307_v32  ;;  %v313_v42 = vsel %vm281_vm13, %v265_v24, %v297_v34  ;;  %vm289_vm14 = vcmp.ge.f32.partialorder %v273_v36, 0.0  ;;  %v305_v43 = vmul.f32 0.2, %v273_v36 }
  0xe9   :  { %v355_v41 = vadd.f32 %v339_v33, %v323_v13  ;;  %v345_v45 = vadd.f32 %v329_v35, %v313_v42  ;;  %vm284_vm15 = vcmp.ge.f32.partialorder %v268_v37, 0.0  ;;  %v300_v46 = vmul.f32 0.2, %v268_v37 }
  0xea   :  { %vm292_vm0 = vcmp.ge.f32.partialorder %v276_v38, 0.0  ;;  %v321_v48 = vsel %vm289_vm14, %v273_v36, %v305_v43  ;;  %v308_v49 = vmul.f32 0.2, %v276_v38  ;;  %vm282_vm1 = vcmp.ge.f32.partialorder %v266_v39, 0.0 }
  0xeb   :  { %372 = vst.msk [vmem:[%s692_s5 + $0x70] sm:$0xff] %vm357_vm2, %v355_v41  ;;  %v298_v50 = vmul.f32 0.2, %v266_v39  ;;  %362 = vst.msk [vmem:[%s692_s5 + $0x20] sm:$0xff] %vm357_vm2, %v345_v45  ;;  %v353_v52 = vadd.f32 %v337_v44, %v321_v48  ;;  %v316_v53 = vsel %vm284_vm15, %v268_v37, %v300_v46  ;;  %vm290_vm3 = vcmp.ge.f32.partialorder %v274_v40, 0.0 }
  0xec   :  { %v306_v54 = vmul.f32 0.2, %v274_v40  ;;  %v348_v56 = vadd.f32 %v332_v47, %v316_v53  ;;  %v324_v57 = vsel %vm292_vm0, %v276_v38, %v308_v49 }
  0xed   :  { %v314_v58 = vsel %vm282_vm1, %v266_v39, %v298_v50  ;;  %370 = vst.msk [vmem:[%s692_s5 + $0x60] sm:$0xff] %vm357_vm2, %v353_v52  ;;  %v356_v59 = vadd.f32 %v340_v15, %v324_v57 }
  0xee   :  { %v346_v60 = vadd.f32 %v330_v51, %v314_v58  ;;  %v322_v61 = vsel %vm290_vm3, %v274_v40, %v306_v54  ;;  %365 = vst.msk [vmem:[%s692_s5 + $0x38] sm:$0xff] %vm357_vm2, %v348_v56 }
  0xef   :  { %v354_v62 = vadd.f32 %v338_v55, %v322_v61  ;;  %373 = vst.msk [vmem:[%s692_s5 + $0x78] sm:$0xff] %vm357_vm2, %v356_v59 }
  0xf0   :  { %363 = vst.msk [vmem:[%s692_s5 + $0x28] sm:$0xff] %vm357_vm2, %v346_v60 }
  0xf1   :  { %371 = vst.msk [vmem:[%s692_s5 + $0x68] sm:$0xff] %vm357_vm2, %v354_v62 }

// kernel: unet_forward.17
= control target key start
LH: loop header
LB: loop body
LE: loop exit
PB: predicated region body
PF: predicated region fallthrough
CT: control target
= control target key end

     0   :  { %v526_v0 = vmov 0   ;;  %vm267_vm0 = vcmask 130048   ;;  %vm414_vm2 = vcmask 261120   ;;  %s701_s1 = inlined_call_operand.vmem [shape: bf16[400,32], index: 1, kind: input, shape index: {}]   ;;  %s702_s0 = inlined_call_operand.vmem [shape: bf16[32,400], index: 0, kind: input, shape index: {}]   ;;  %s703_s2 = inlined_call_operand.vmem [shape: f32[1,32], index: 2, kind: input, shape index: {}]   ;;  %s704_s3 = inlined_call_operand.vmem [shape: f32[1,32], index: 3, kind: input, shape index: {}]   ;;  %s705_s4 = inlined_call_operand.vmem [shape: f32[32,32], index: 4, kind: input, shape index: {}]   ;;  %s706_s5 = inlined_call_operand.vmem [shape: f32[32,32], index: 5, kind: output, shape index: {}]  }
   0x1   :  { %323 = vmatprep.subr.bf16.mxu1 %v526_v0  ;;  %v489_v1 = vld [vmem:[%s701_s1 + $0x78] sm:$0xff]   ;;  %v492_v4 = vld [vmem:[%s701_s1 + $0x70] sm:$0xff]   ;;  %v495_v7 = vld [vmem:[%s701_s1 + $0x68] sm:$0xff]  }
   0x2   :  { %v490_v2 = vld [vmem:[%s701_s1 + $0xb8] sm:$0xff]   ;;  %460 = vmatprep.subr.bf16.mxu0 %v489_v1  ;;  %v493_v5 = vld [vmem:[%s701_s1 + $0xb0] sm:$0xff]   ;;  %v496_v8 = vld [vmem:[%s701_s1 + $0xa8] sm:$0xff]  }
   0x3   :  { %v491_v3 = vld [vmem:[%s701_s1 + $0x38] sm:$0xff]   ;;  %324 = vmatpush1.bf16.msra.mxu1 %v490_v2  ;;  %v494_v6 = vld [vmem:[%s701_s1 + $0x30] sm:$0xff]   ;;  %v497_v9 = vld [vmem:[%s701_s1 + $0x28] sm:$0xff]  }
   0x4   :  { %461 = vmatpush3.bf16.msra.mxu0 %v491_v3  ;;  %325 = vmatprep.subr.bf16.mxu1 %v526_v0  ;;  %v498_v10 = vld [vmem:[%s701_s1 + $0x60] sm:$0xff]   ;;  %v501_v13 = vld [vmem:[%s701_s1 + $0x58] sm:$0xff]   ;;  %v504_v16 = vld [vmem:[%s701_s1 + $0x50] sm:$0xff]  }
   0x5   :  { %462 = vmatprep.subr.bf16.mxu0 %v492_v4  ;;  %v499_v11 = vld [vmem:[%s701_s1 + $0xa0] sm:$0xff]   ;;  %v502_v14 = vld [vmem:[%s701_s1 + $0x98] sm:$0xff]   ;;  %v505_v17 = vld [vmem:[%s701_s1 + $0x90] sm:$0xff]  }
   0x6   :  { %v500_v12 = vld [vmem:[%s701_s1 + $0x20] sm:$0xff]   ;;  %v503_v15 = vld [vmem:[%s701_s1 + $0x18] sm:$0xff]   ;;  %v506_v18 = vld [vmem:[%s701_s1 + $0x10] sm:$0xff]  }
   0x7   :  { %326 = vmatpush1.bf16.msra.mxu1 %v493_v5  ;;  %v507_v19 = vld [vmem:[%s701_s1 + $0x48] sm:$0xff]   ;;  %v510_v22 = vld [vmem:[%s701_s1 + $0x40] sm:$0xff]  }
   0x8   :  { %463 = vmatpush3.bf16.msra.mxu0 %v494_v6  ;;  %327 = vmatprep.subr.bf16.mxu1 %v526_v0  ;;  %v508_v20 = vld [vmem:[%s701_s1 + $0x88] sm:$0xff]   ;;  %v515_v23 = vld [vmem:[%s702_s0 + $0x4] ss:$16 sps:$4 sm:$0xff]   ;;  %v513_v27 = vld [vmem:[%s702_s0] ss:$16 sps:$4 sm:$0xff]  }
   0x9   :  { %464 = vmatprep.subr.bf16.mxu0 %v495_v7  ;;  %v509_v21 = vld [vmem:[%s701_s1 + $0x8] sm:$0xff]   ;;  %v511_v24 = vld [vmem:[%s701_s1 + $0x80] sm:$0xff]   ;;  %306 = vmatprep.mubr.bf16.mxu0 %v515_v23 }
   0xa   :  { %v519_v25 = vld [vmem:[%s702_s0 + $0xc] ss:$16 sps:$4 sm:$0xff]   ;;  %v512_v26 = vld [vmem:[%s701_s1] sm:$0xff]   ;;  %v517_v30 = vld [vmem:[%s702_s0 + $0x8] ss:$16 sps:$4 sm:$0xff]  }
   0xb   :  { %328 = vmatpush1.bf16.msra.mxu1 %v496_v8  ;;  %456 = vmatprep.mubr.msk.bf16.mxu1 %vm267_vm0, %v519_v25  ;;  %v516_v28 = vld [vmem:[%s701_s1 + $0xc0] sm:$0xff]   ;;  %v523_v31 = vld [vmem:[%s702_s0 + $0x2c] ss:$16 sps:$4 sm:$0xff]   ;;  %v525_v33 = vld [vmem:[%s702_s0 + $0x28] ss:$16 sps:$4 sm:$0xff]  }
   0xc   :  { %465 = vmatpush3.bf16.msra.mxu0 %v497_v9  ;;  %329 = vmatprep.subr.bf16.mxu1 %v526_v0  ;;  %v520_v29 = vld [vmem:[%s702_s0 + $0x24] ss:$16 sps:$4 sm:$0xff]   ;;  %v522_v32 = vld [vmem:[%s702_s0 + $0x20] ss:$16 sps:$4 sm:$0xff]   ;;  %v407_v1 = vld [vmem:[%s705_s4 + $0x8] sm:$0xff] }
   0xd   :  { %466 = vmatprep.subr.bf16.mxu0 %v498_v10  ;;  %v458_v38 = vld [vmem:[%s703_s2] ss:$0 sm:$0xff] }
   0xe   :  { %v459_v42 = vld [vmem:[%s704_s3] ss:$0 sm:$0xff] }
   0xf   :  { %330 = vmatpush1.bf16.msra.mxu1 %v499_v11  ;;  %v406_v53 = vld [vmem:[%s705_s4] sm:$0xff]  ;;  %v408_v11 = vld [vmem:[%s705_s4 + $0x10] sm:$0xff] }
  0x10   :  { %467 = vmatpush3.bf16.msra.mxu0 %v500_v12  ;;  %331 = vmatprep.subr.bf16.mxu1 %v526_v0 }
  0x11   :  { %468 = vmatprep.subr.bf16.mxu0 %v501_v13 }
  0x13   :  { %332 = vmatpush1.bf16.msra.mxu1 %v502_v14 }
  0x14   :  { %469 = vmatpush3.bf16.msra.mxu0 %v503_v15  ;;  %333 = vmatprep.subr.bf16.mxu1 %v526_v0 }
  0x15   :  { %470 = vmatprep.subr.bf16.mxu0 %v504_v16 }
  0x17   :  { %334 = vmatpush1.bf16.msra.mxu1 %v505_v17  ;;  %v409_v17 = vld [vmem:[%s705_s4 + $0x18] sm:$0xff] }
  0x18   :  { %471 = vmatpush3.bf16.msra.mxu0 %v506_v18  ;;  %335 = vmatprep.subr.bf16.mxu1 %v526_v0 }
  0x19   :  { %472 = vmatprep.subr.bf16.mxu0 %v507_v19 }
  0x1b   :  { %336 = vmatpush1.bf16.msra.mxu1 %v508_v20 }
  0x1c   :  { %473 = vmatpush3.bf16.msra.mxu0 %v509_v21  ;;  %337 = vmatprep.subr.bf16.mxu1 %v526_v0 }
  0x1d   :  { %474 = vmatprep.subr.bf16.mxu0 %v510_v22 }
  0x1f   :  { %338 = vmatpush1.bf16.msra.mxu1 %v511_v24 }
  0x20   :  { %475 = vmatpush3.bf16.msra.mxu0 %v512_v26  ;;  %353 = vmatprep.subr.bf16.mxu1 %v526_v0 }
  0x23   :  { %307 = vmatmul.mubr.bf16.vlgmr.msra.gmra.mxu0 %v513_v27  ;;  %354 = vmatpush2.bf16.msra.mxu1 %v516_v28 }
  0x24   :  { %314 = vmatprep.mubr.bf16.mxu0 %v520_v29 }
  0x26   :  { %356 = vmatmul.mubr.bf16.vlgmr.msra.gmra.mxu1 %v517_v30 }
  0x27   :  { %457 = vmatprep.mubr.msk.bf16.mxu1 %vm267_vm0, %v523_v31 }
  0x2b   :  { %315 = vmatmul.mubr.bf16.gmra.mxu0 %v522_v32 }
  0x2e   :  { %364 = vmatmul.mubr.bf16.gmra.mxu1 %v525_v33 }
  0xe3   :  { %v476_v34 = vpop.f32.mrf.mxu0 }
  0xe5   :  { %v477_v35 = vpop.f32.mrf.mxu0 }
  0xe6   :  { %v478_v36 = vadd.f32 %v477_v35, %v476_v34  ;;  %v357_v37 = vpop.f32.mrf.mxu1 }
  0xe7   :  { %v479_v39 = vpop.f32.mrf.mxu0 }
  0xe8   :  { %v358_v40 = vadd.f32 %v478_v36, %v357_v37  ;;  %v359_v41 = vpop.f32.mrf.mxu1 }
  0xe9   :  { %v480_v43 = vpop.f32.mrf.mxu0 }
  0xea   :  { %v379_v44 = vmul.f32 %v458_v38, %v358_v40  ;;  %v481_v45 = vadd.f32 %v480_v43, %v479_v39  ;;  %v360_v46 = vpop.f32.mrf.mxu1 }
  0xeb   :  { %v482_v47 = vpop.f32.mrf.mxu0 }
  0xec   :  { %v390_v48 = vadd.f32 %v459_v42, %v379_v44  ;;  %v361_v49 = vadd.f32 %v481_v45, %v360_v46  ;;  %v362_v50 = vpop.f32.mrf.mxu1 }
  0xed   :  { %v483_v51 = vpop.f32.mrf.mxu0 }
  0xee   :  { %vm394_vm1 = vcmp.ge.f32.partialorder %v390_v48, 0.0  ;;  %v398_v52 = vmul.f32 0.2, %v390_v48  ;;  %v380_v54 = vmul.f32 %v458_v38, %v361_v49  ;;  %v484_v55 = vadd.f32 %v483_v51, %v482_v47  ;;  %v365_v56 = vpop.f32.mrf.mxu1 }
  0xef   :  { %v485_v57 = vpop.f32.mrf.mxu0 }
  0xf0   :  { %v402_v58 = vsel %vm394_vm1, %v390_v48, %v398_v52  ;;  %v391_v59 = vadd.f32 %v459_v42, %v380_v54  ;;  %v366_v60 = vadd.f32 %v484_v55, %v365_v56  ;;  %v367_v61 = vpop.f32.mrf.mxu1 }
  0xf1   :  { %v410_v62 = vadd.f32 %v406_v53, %v402_v58  ;;  %v486_v63 = vpop.f32.mrf.mxu0 }
  0xf2   :  { %vm395_vm3 = vcmp.ge.f32.partialorder %v391_v59, 0.0  ;;  %v399_v0 = vmul.f32 0.2, %v391_v59  ;;  %v381_v2 = vmul.f32 %v458_v38, %v366_v60  ;;  %v487_v3 = vadd.f32 %v486_v63, %v485_v57  ;;  %v368_v4 = vpop.f32.mrf.mxu1 }
  0xf3   :  { %415 = vst.msk [vmem:[%s706_s5] sm:$0xff] %vm414_vm2, %v410_v62 }
  0xf4   :  { %v403_v5 = vsel %vm395_vm3, %v391_v59, %v399_v0  ;;  %v392_v6 = vadd.f32 %v459_v42, %v381_v2  ;;  %v369_v7 = vadd.f32 %v487_v3, %v368_v4  ;;  %v370_v8 = vpop.f32.mrf.mxu1 }
  0xf5   :  { %v411_v9 = vadd.f32 %v407_v1, %v403_v5 }
  0xf6   :  { %vm396_vm4 = vcmp.ge.f32.partialorder %v392_v6, 0.0  ;;  %v400_v10 = vmul.f32 0.2, %v392_v6  ;;  %v382_v12 = vmul.f32 %v458_v38, %v369_v7 }
  0xf7   :  { %416 = vst.msk [vmem:[%s706_s5 + $0x8] sm:$0xff] %vm414_vm2, %v411_v9 }
  0xf8   :  { %v404_v13 = vsel %vm396_vm4, %v392_v6, %v400_v10  ;;  %v393_v14 = vadd.f32 %v459_v42, %v382_v12 }
  0xf9   :  { %v412_v15 = vadd.f32 %v408_v11, %v404_v13 }
  0xfa   :  { %vm397_vm5 = vcmp.ge.f32.partialorder %v393_v14, 0.0  ;;  %v401_v16 = vmul.f32 0.2, %v393_v14 }
  0xfb   :  { %417 = vst.msk [vmem:[%s706_s5 + $0x10] sm:$0xff] %vm414_vm2, %v412_v15 }
  0xfc   :  { %v405_v18 = vsel %vm397_vm5, %v393_v14, %v401_v16 }
  0xfd   :  { %v413_v19 = vadd.f32 %v409_v17, %v405_v18 }
  0xff   :  { %418 = vst.msk [vmem:[%s706_s5 + $0x18] sm:$0xff] %vm414_vm2, %v413_v19 }

// kernel: unet_forward.18
= control target key start
LH: loop header
LB: loop body
LE: loop exit
PB: predicated region body
PF: predicated region fallthrough
CT: control target
= control target key end

     0   :  { %v836_v39 = vmov 0.0   ;;  %vm837_vm0 = vmmov 0   ;;  %vm449_vm1 = vcmask 261120   ;;  %vm634_vm3 = vcmask 523264   ;;  %s1042_s1 = inlined_call_operand.vmem [shape: bf16[800,64], index: 1, kind: input, shape index: {}]   ;;  %s1043_s0 = inlined_call_operand.vmem [shape: bf16[8,800], index: 0, kind: input, shape index: {}]   ;;  %s1044_s2 = inlined_call_operand.vmem [shape: f32[1,64], index: 2, kind: input, shape index: {}]   ;;  %s1045_s3 = inlined_call_operand.vmem [shape: f32[1,64], index: 3, kind: input, shape index: {}]   ;;  %s1046_s4 = inlined_call_operand.vmem [shape: f32[8,64], index: 4, kind: input, shape index: {}]   ;;  %s1047_s5 = inlined_call_operand.vmem [shape: f32[8,64], index: 5, kind: output, shape index: {}]  }
   0x1   :  { %v779_v0 = vld [vmem:[%s1042_s1 + $0x78] sm:$0xff]   ;;  %v783_v4 = vld [vmem:[%s1042_s1 + $0x70] sm:$0xff]   ;;  %v787_v8 = vld [vmem:[%s1042_s1 + $0x68] sm:$0xff]  }
   0x2   :  { %v780_v1 = vld [vmem:[%s1042_s1 + $0xf8] sm:$0xff]   ;;  %700 = vmatprep.subr.bf16.mxu0 %v779_v0  ;;  %v784_v5 = vld [vmem:[%s1042_s1 + $0xf0] sm:$0xff]   ;;  %v788_v9 = vld [vmem:[%s1042_s1 + $0xe8] sm:$0xff]  }
   0x3   :  { %v781_v2 = vld [vmem:[%s1042_s1 + $0x38] sm:$0xff]   ;;  %722 = vmatprep.subr.bf16.mxu1 %v780_v1  ;;  %v785_v6 = vld [vmem:[%s1042_s1 + $0x30] sm:$0xff]   ;;  %v789_v10 = vld [vmem:[%s1042_s1 + $0x28] sm:$0xff]  }
   0x4   :  { %v782_v3 = vld [vmem:[%s1042_s1 + $0xb8] sm:$0xff]   ;;  %701 = vmatpush3.bf16.msra.mxu0 %v781_v2  ;;  %v786_v7 = vld [vmem:[%s1042_s1 + $0xb0] sm:$0xff]   ;;  %v790_v11 = vld [vmem:[%s1042_s1 + $0xa8] sm:$0xff]  }
   0x5   :  { %723 = vmatpush3.bf16.msra.mxu1 %v782_v3  ;;  %702 = vmatprep.subr.bf16.mxu0 %v783_v4  ;;  %v791_v12 = vld [vmem:[%s1042_s1 + $0x60] sm:$0xff]   ;;  %v795_v16 = vld [vmem:[%s1042_s1 + $0x58] sm:$0xff]   ;;  %v799_v20 = vld [vmem:[%s1042_s1 + $0x50] sm:$0xff]  }
   0x6   :  { %724 = vmatprep.subr.bf16.mxu1 %v784_v5  ;;  %v792_v13 = vld [vmem:[%s1042_s1 + $0xe0] sm:$0xff]   ;;  %v796_v17 = vld [vmem:[%s1042_s1 + $0xd8] sm:$0xff]   ;;  %v800_v21 = vld [vmem:[%s1042_s1 + $0xd0] sm:$0xff]  }
   0x7   :  { %v793_v14 = vld [vmem:[%s1042_s1 + $0x20] sm:$0xff]   ;;  %v797_v18 = vld [vmem:[%s1042_s1 + $0x18] sm:$0xff]   ;;  %v801_v22 = vld [vmem:[%s1042_s1 + $0x10] sm:$0xff]  }
   0x8   :  { %703 = vmatpush3.bf16.msra.mxu0 %v785_v6  ;;  %v794_v15 = vld [vmem:[%s1042_s1 + $0xa0] sm:$0xff]   ;;  %v798_v19 = vld [vmem:[%s1042_s1 + $0x98] sm:$0xff]   ;;  %v802_v23 = vld [vmem:[%s1042_s1 + $0x90] sm:$0xff]  }
   0x9   :  { %725 = vmatpush3.bf16.msra.mxu1 %v786_v7  ;;  %704 = vmatprep.subr.bf16.mxu0 %v787_v8  ;;  %v803_v24 = vld [vmem:[%s1042_s1 + $0x48] sm:$0xff]   ;;  %v807_v28 = vld [vmem:[%s1042_s1 + $0x40] sm:$0xff]   ;;  %v816_v38 = vld [vmem:[%s1042_s1 + $0x178] sm:$0xff]  }
   0xa   :  { %726 = vmatprep.subr.bf16.mxu1 %v788_v9  ;;  %v804_v25 = vld [vmem:[%s1042_s1 + $0xc8] sm:$0xff]   ;;  %v808_v29 = vld [vmem:[%s1042_s1 + $0xc0] sm:$0xff]   ;;  %v817_v40 = vld [vmem:[%s1042_s1 + $0x138] sm:$0xff]  }
   0xb   :  { %v805_v26 = vld [vmem:[%s1042_s1 + $0x8] sm:$0xff]   ;;  %v809_v30 = vld [vmem:[%s1042_s1] sm:$0xff]   ;;  %v818_v41 = vld [vmem:[%s1042_s1 + $0x170] sm:$0xff]  }
   0xc   :  { %705 = vmatpush3.bf16.msra.mxu0 %v789_v10  ;;  %v806_v27 = vld [vmem:[%s1042_s1 + $0x88] sm:$0xff]   ;;  %v810_v31 = vld [vmem:[%s1042_s1 + $0x80] sm:$0xff]   ;;  %v819_v42 = vld [vmem:[%s1042_s1 + $0x130] sm:$0xff]  }
   0xd   :  { %727 = vmatpush3.bf16.msra.mxu1 %v790_v11  ;;  %706 = vmatprep.subr.bf16.mxu0 %v791_v12  ;;  %v21_v32 = vld [vmem:[%s1043_s0] sm:$0xff]  ;;  %v22_v35 = vld [vmem:[%s1043_s0 + $0x8] sm:$0xff]  ;;  %v824_v47 = vld [vmem:[%s1042_s1 + $0x158] sm:$0xff]  }
   0xe   :  { %728 = vmatprep.subr.bf16.mxu1 %v792_v13  ;;  %v640_v33 = vcombine.low %v21_v32, %v21_v32  ;;  %v641_v34 = vcombine.high %v21_v32, %v21_v32  ;;  %v642_v36 = vcombine.low %v22_v35, %v22_v35  ;;  %v643_v37 = vcombine.high %v22_v35, %v22_v35  ;;  %v820_v43 = vld [vmem:[%s1042_s1 + $0x168] sm:$0xff]   ;;  %v822_v45 = vld [vmem:[%s1042_s1 + $0x160] sm:$0xff]   ;;  %v825_v49 = vld [vmem:[%s1042_s1 + $0x118] sm:$0xff]  }
   0xf   :  { %v821_v44 = vld [vmem:[%s1042_s1 + $0x128] sm:$0xff]   ;;  %v823_v46 = vld [vmem:[%s1042_s1 + $0x120] sm:$0xff]   ;;  %v826_v50 = vld [vmem:[%s1042_s1 + $0x150] sm:$0xff]  }
  0x10   :  { %707 = vmatpush3.bf16.msra.mxu0 %v793_v14  ;;  %485 = vmatprep.mubr.bf16.mxu0 %v641_v34  ;;  %v830_v48 = vld [vmem:[%s1042_s1 + $0x188] sm:$0xff]   ;;  %v833_v51 = vld [vmem:[%s1042_s1 + $0x180] sm:$0xff]   ;;  %v23_v52 = vld [vmem:[%s1043_s0 + $0x10] sm:$0xff] }
  0x11   :  { %729 = vmatpush3.bf16.msra.mxu1 %v794_v15  ;;  %708 = vmatprep.subr.bf16.mxu0 %v795_v16  ;;  %v645_v53 = vcombine.high %v23_v52, %v23_v52  ;;  %v813_v54 = vld [vmem:[%s1043_s0 + $0x18] ss:$0 sps:$4 sm:$0xff]   ;;  %v827_v55 = vld [vmem:[%s1042_s1 + $0x110] sm:$0xff]   ;;  %v828_v56 = vld [vmem:[%s1042_s1 + $0x148] sm:$0xff]   ;;  %v644_v60 = vcombine.low %v23_v52, %v23_v52 }
  0x12   :  { %730 = vmatprep.subr.bf16.mxu1 %v796_v17  ;;  %525 = vmatprep.mubr.bf16.mxu1 %v643_v37  ;;  %v829_v57 = vld [vmem:[%s1042_s1 + $0x108] sm:$0xff]   ;;  %v831_v58 = vld [vmem:[%s1042_s1 + $0x140] sm:$0xff]  }
  0x13   :  { %v832_v59 = vld [vmem:[%s1042_s1 + $0x100] sm:$0xff]  }
  0x14   :  { %709 = vmatpush3.bf16.msra.mxu0 %v797_v18  ;;  %v698_v17 = vld [vmem:[%s1044_s2] ss:$0 sm:$0xff] }
  0x15   :  { %731 = vmatpush3.bf16.msra.mxu1 %v798_v19  ;;  %710 = vmatprep.subr.bf16.mxu0 %v799_v20  ;;  %v699_v20 = vld [vmem:[%s1045_s3] ss:$0 sm:$0xff] }
  0x16   :  { %732 = vmatprep.subr.bf16.mxu1 %v800_v21 }
  0x18   :  { %711 = vmatpush3.bf16.msra.mxu0 %v801_v22 }
  0x19   :  { %733 = vmatpush3.bf16.msra.mxu1 %v802_v23  ;;  %712 = vmatprep.subr.bf16.mxu0 %v803_v24  ;;  %v632_v24 = vld [vmem:[%s1046_s4] sm:$0xff] }
  0x1a   :  { %734 = vmatprep.subr.bf16.mxu1 %v804_v25 }
  0x1c   :  { %713 = vmatpush3.bf16.msra.mxu0 %v805_v26 }
  0x1d   :  { %735 = vmatpush3.bf16.msra.mxu1 %v806_v27  ;;  %714 = vmatprep.subr.bf16.mxu0 %v807_v28 }
  0x1e   :  { %736 = vmatprep.subr.bf16.mxu1 %v808_v29 }
  0x20   :  { %715 = vmatpush3.bf16.msra.mxu0 %v809_v30 }
  0x21   :  { %737 = vmatpush3.bf16.msra.mxu1 %v810_v31  ;;  %744 = vmatprep.subr.bf16.mxu0 %v816_v38 }
  0x22   :  { %769 = vmatprep.subr.bf16.mxu1 %v836_v39 }
  0x23   :  { %486 = vmatmul.mubr.bf16.vlgmr.msra.gmra.mxu0 %v640_v33 }
  0x24   :  { %526 = vmatmul.mubr.bf16.vlgmr.msra.gmra.mxu1 %v642_v36  ;;  %745 = vmatpush3.bf16.msra.mxu0 %v817_v40 }
  0x25   :  { %773 = vmatprep.mubr.msk.bf16.mxu1 %vm837_vm0, %v836_v39  ;;  %746 = vmatprep.subr.bf16.mxu0 %v818_v41 }
  0x26   :  { %770 = vmatpush3.bf16.msra.mxu1 %v830_v48  ;;  %565 = vmatprep.mubr.bf16.mxu0 %v645_v53 }
  0x27   :  { %771 = vmatprep.subr.bf16.mxu1 %v836_v39 }
  0x28   :  { %747 = vmatpush3.bf16.msra.mxu0 %v819_v42 }
  0x29   :  { %748 = vmatprep.subr.bf16.mxu0 %v820_v43 }
  0x2a   :  { %772 = vmatpush3.bf16.msra.mxu1 %v833_v51 }
  0x2c   :  { %749 = vmatpush3.bf16.msra.mxu0 %v821_v44 }
  0x2d   :  { %750 = vmatprep.subr.bf16.mxu0 %v822_v45  ;;  %774 = vmatmul.mubr.msk.bf16.vlgmr.msra.gmra.mxu1 %vm449_vm1, %v813_v54 }
  0x30   :  { %751 = vmatpush3.bf16.msra.mxu0 %v823_v46 }
  0x31   :  { %752 = vmatprep.subr.bf16.mxu0 %v824_v47 }
  0x34   :  { %753 = vmatpush3.bf16.msra.mxu0 %v825_v49 }
  0x35   :  { %754 = vmatprep.subr.bf16.mxu0 %v826_v50 }
  0x38   :  { %755 = vmatpush3.bf16.msra.mxu0 %v827_v55 }
  0x39   :  { %756 = vmatprep.subr.bf16.mxu0 %v828_v56 }
  0x3c   :  { %757 = vmatpush3.bf16.msra.mxu0 %v829_v57 }
  0x3d   :  { %758 = vmatprep.subr.bf16.mxu0 %v831_v58 }
  0x40   :  { %759 = vmatpush3.bf16.msra.mxu0 %v832_v59 }
  0x43   :  { %566 = vmatmul.mubr.bf16.vlgmr.msra.gmra.mxu0 %v644_v60 }
  0xe3   :  { %v716_v61 = vpop.f32.mrf.mxu0 }
  0xe4   :  { %v738_v62 = vpop.f32.mrf.mxu1 }
  0xe5   :  { %v717_v63 = vpop.f32.mrf.mxu0 }
  0xe6   :  { %v739_v0 = vpop.f32.mrf.mxu1  ;;  %v718_v9 = vadd.f32 %v717_v63, %v716_v61 }
  0xe7   :  { %v719_v1 = vpop.f32.mrf.mxu0  ;;  %v740_v10 = vadd.f32 %v739_v0, %v738_v62 }
  0xe8   :  { %v741_v2 = vpop.f32.mrf.mxu1 }
  0xe9   :  { %v720_v3 = vpop.f32.mrf.mxu0  ;;  %v528_v13 = vadd.f32 %v740_v10, %v718_v9 }
  0xea   :  { %v742_v4 = vpop.f32.mrf.mxu1 }
  0xed   :  { %v607_v5 = vpop.f32.mrf.mxu1 }
  0xef   :  { %v775_v6 = vpop.f32.mrf.mxu1 }
  0xf1   :  { %v610_v7 = vpop.f32.mrf.mxu1 }
  0xf3   :  { %v776_v8 = vpop.f32.mrf.mxu1 }
 0x103   :  { %v760_v11 = vpop.f32.mrf.mxu0 }
 0x105   :  { %v761_v12 = vpop.f32.mrf.mxu0 }
 0x106   :  { %v762_v14 = vadd.f32 %v761_v12, %v760_v11 }
 0x107   :  { %v763_v15 = vpop.f32.mrf.mxu0 }
 0x108   :  { %v568_v16 = vadd.f32 %v762_v14, %v528_v13 }
 0x109   :  { %v764_v18 = vpop.f32.mrf.mxu0 }
 0x10a   :  { %v608_v19 = vadd.f32 %v607_v5, %v568_v16 }
 0x10c   :  { %v620_v21 = vmul.f32 %v698_v17, %v608_v19 }
 0x10e   :  { %v628_v22 = vadd.f32 %v699_v20, %v620_v21 }
 0x110   :  { %vm629_vm2 = vcmp.ge.f32.partialorder %v628_v22, 0.0  ;;  %v630_v23 = vmul.f32 0.2, %v628_v22 }
 0x112   :  { %v631_v25 = vsel %vm629_vm2, %v628_v22, %v630_v23 }
 0x113   :  { %v633_v26 = vadd.f32 %v632_v24, %v631_v25 }
 0x115   :  { %635 = vst.msk [vmem:[%s1047_s5] sm:$0xff] %vm634_vm3, %v633_v26 }

// kernel: unet_forward.20
= control target key start
LH: loop header
LB: loop body
LE: loop exit
PB: predicated region body
PF: predicated region fallthrough
CT: control target
= control target key end

     0   :  { %v266_v1 = vmov 0   ;;  %v161_v18 = vlaneseq  ;;  %s360_s1 = inlined_call_operand.vmem [shape: bf16[128,256], index: 1, kind: input, shape index: {}]   ;;  %s361_s0 = inlined_call_operand.vmem [shape: bf16[2,128], index: 0, kind: input, shape index: {}]   ;;  %s362_s2 = inlined_call_operand.vmem [shape: f32[1,256], index: 2, kind: input, shape index: {}]   ;;  %s363_s3 = inlined_call_operand.vmem [shape: f32[1,256], index: 3, kind: input, shape index: {}]   ;;  %s364_s4 = inlined_call_operand.vmem [shape: f32[2,256], index: 4, kind: input, shape index: {}]   ;;  %s365_s5 = inlined_call_operand.vmem [shape: f32[2,256], index: 5, kind: output, shape index: {}]  }
   0x1   :  { %v242_v0 = vld [vmem:[%s360_s1 + $0x74] ss:$8 sps:$4 sm:$0xff]   ;;  %150 = vmatprep.mubr.bf16.mxu0 %v266_v1  ;;  %v244_v2 = vld [vmem:[%s360_s1 + $0x70] ss:$8 sps:$4 sm:$0xff]   ;;  %v245_v3 = vld [vmem:[%s360_s1 + $0x64] ss:$8 sps:$4 sm:$0xff]  }
   0x2   :  { %118 = vmatprep.subr.bf16.mxu0 %v242_v0  ;;  %v247_v4 = vld [vmem:[%s360_s1 + $0x60] ss:$8 sps:$4 sm:$0xff]   ;;  %v248_v5 = vld [vmem:[%s360_s1 + $0x54] ss:$8 sps:$4 sm:$0xff]   ;;  %v250_v6 = vld [vmem:[%s360_s1 + $0x50] ss:$8 sps:$4 sm:$0xff]  }
   0x3   :  { %119 = vmatpush1.bf16.msra.mxu0 %v244_v2  ;;  %v251_v7 = vld [vmem:[%s360_s1 + $0x44] ss:$8 sps:$4 sm:$0xff]   ;;  %v253_v8 = vld [vmem:[%s360_s1 + $0x40] ss:$8 sps:$4 sm:$0xff]   ;;  %v254_v9 = vld [vmem:[%s360_s1 + $0x34] ss:$8 sps:$4 sm:$0xff]  }
   0x4   :  { %120 = vmatprep.subr.bf16.mxu0 %v245_v3  ;;  %v256_v10 = vld [vmem:[%s360_s1 + $0x30] ss:$8 sps:$4 sm:$0xff]   ;;  %v257_v11 = vld [vmem:[%s360_s1 + $0x24] ss:$8 sps:$4 sm:$0xff]   ;;  %v259_v12 = vld [vmem:[%s360_s1 + $0x20] ss:$8 sps:$4 sm:$0xff]  }
   0x5   :  { %v260_v13 = vld [vmem:[%s360_s1 + $0x14] ss:$8 sps:$4 sm:$0xff]   ;;  %v262_v14 = vld [vmem:[%s360_s1 + $0x10] ss:$8 sps:$4 sm:$0xff]   ;;  %v263_v15 = vld [vmem:[%s360_s1 + $0x4] ss:$8 sps:$4 sm:$0xff]  }
   0x6   :  { %v265_v16 = vld [vmem:[%s360_s1] ss:$8 sps:$4 sm:$0xff]   ;;  %v162_v19 = vshrl.u32 %v161_v18, 7 }
   0x7   :  { %121 = vmatpush1.bf16.msra.mxu0 %v247_v4  ;;  %v21_v17 = vld [vmem:[%s361_s0] sm:$0x1] }
   0x8   :  { %122 = vmatprep.subr.bf16.mxu0 %v248_v5  ;;  %v163_v20 = vsub.s32 0, %v162_v19  ;;  %v159_v21 = vld [vmem:[%s362_s2] sm:$0x3]  ;;  %v167_v22 = vsub.s32 1, %v162_v19 }
   0x9   :  { %v173_v23 = vld [vmem:[%s363_s3] sm:$0x3] }
   0xa   :  { %v164_v24 = vrot.slane %v159_v21, %v163_v20  ;;  %v178_v25 = vrot.slane %v173_v23, %v163_v20  ;;  %v168_v26 = vrot.slane %v159_v21, %v167_v22  ;;  %v182_v29 = vrot.slane %v173_v23, %v167_v22  ;;  %v239_v32 = vld.sshfl [vmem:[%s364_s4] sm:$0x33 pattern:$0x76325410] }
   0xb   :  { %123 = vmatpush1.bf16.msra.mxu0 %v250_v6  ;;  %v202_v37 = vcombine.high %v239_v32, %v239_v32 }
   0xc   :  { %124 = vmatprep.subr.bf16.mxu0 %v251_v7 }
   0xf   :  { %125 = vmatpush1.bf16.msra.mxu0 %v253_v8 }
  0x10   :  { %126 = vmatprep.subr.bf16.mxu0 %v254_v9 }
  0x13   :  { %127 = vmatpush1.bf16.msra.mxu0 %v256_v10 }
  0x14   :  { %128 = vmatprep.subr.bf16.mxu0 %v257_v11 }
  0x17   :  { %129 = vmatpush1.bf16.msra.mxu0 %v259_v12 }
  0x18   :  { %130 = vmatprep.subr.bf16.mxu0 %v260_v13 }
  0x1b   :  { %131 = vmatpush1.bf16.msra.mxu0 %v262_v14 }
  0x1c   :  { %132 = vmatprep.subr.bf16.mxu0 %v263_v15 }
  0x1f   :  { %133 = vmatpush1.bf16.msra.mxu0 %v265_v16 }
  0x22   :  { %151 = vmatmul.mubr.bf16.vlgmr.msra.gmra.mxu0 %v21_v17 }
  0xe2   :  { %v152_v27 = vpop.f32.mrf.mxu0 }
  0xe3   :  { %v171_v28 = vmul.f32 %v164_v24, %v152_v27 }
  0xe4   :  { %v154_v30 = vpop.f32.mrf.mxu0 }
  0xe5   :  { %v185_v31 = vadd.f32 %v178_v25, %v171_v28  ;;  %v172_v33 = vmul.f32 %v168_v26, %v154_v30 }
  0xe6   :  { %v156_v34 = vpop.f32.mrf.mxu0 }
  0xe7   :  { %vm187_vm0 = vcmp.ge.f32.partialorder %v185_v31, 0.0  ;;  %v189_v35 = vmul.f32 0.2, %v185_v31  ;;  %v186_v36 = vadd.f32 %v182_v29, %v172_v33 }
  0xe8   :  { %v157_v38 = vpop.f32.mrf.mxu0 }
  0xe9   :  { %v191_v39 = vsel %vm187_vm0, %v185_v31, %v189_v35  ;;  %vm188_vm1 = vcmp.ge.f32.partialorder %v186_v36, 0.0  ;;  %v190_v40 = vmul.f32 0.2, %v186_v36 }
  0xea   :  { %v205_v42 = vadd.f32 %v239_v32, %v191_v39 }
  0xeb   :  { %v192_v41 = vsel %vm188_vm1, %v186_v36, %v190_v40 }
  0xec   :  { %v206_v43 = vadd.f32 %v202_v37, %v192_v41 }
  0xee   :  { %v209_v44 = vcombine.low %v205_v42, %v206_v43 }
  0xf0   :  { %240 = vst.sshfl [vmem:[%s365_s5] sm:$0x33 pattern:$0x76325410] %v209_v44 }

// kernel: unet_forward.21
= control target key start
LH: loop header
LB: loop body
LE: loop exit
PB: predicated region body
PF: predicated region fallthrough
CT: control target
= control target key end

     0   :  { %v794_v38 = vmov 1966171168   ;;  %v97_v40 = vlaneseq  ;;  %s1041_s1 = inlined_call_operand.vmem [shape: bf16[256,512], index: 1, kind: input, shape index: {}]   ;;  %s1042_s0 = inlined_call_operand.vmem [shape: bf16[2,256], index: 0, kind: input, shape index: {}]   ;;  %s1043_s2 = inlined_call_operand.vmem [shape: f32[1,512], index: 2, kind: input, shape index: {}]   ;;  %s1044_s3 = inlined_call_operand.vmem [shape: f32[1,512], index: 3, kind: input, shape index: {}]   ;;  %s1045_s4 = inlined_call_operand.vmem [shape: f32[2,512], index: 4, kind: input, shape index: {}]   ;;  %s1046_s5 = inlined_call_operand.vmem [shape: f32[2,512], index: 5, kind: output, shape index: {}]  }
   0x1   :  { %v697_v0 = vld [vmem:[%s1041_s1 + $0xe4] ss:$16 sps:$4 sm:$0xff]   ;;  %v699_v1 = vld [vmem:[%s1041_s1 + $0xec] ss:$16 sps:$4 sm:$0xff]   ;;  %v701_v2 = vld [vmem:[%s1041_s1 + $0xe0] ss:$16 sps:$4 sm:$0xff]   ;;  %v95_v39 = vunpack.c.l.s4 %v794_v38 }
   0x2   :  { %430 = vmatprep.subr.bf16.mxu0 %v697_v0  ;;  %v702_v3 = vld [vmem:[%s1041_s1 + $0xe8] ss:$16 sps:$4 sm:$0xff]   ;;  %471 = vmatprep.subr.bf16.mxu1 %v699_v1  ;;  %v703_v4 = vld [vmem:[%s1041_s1 + $0xc4] ss:$16 sps:$4 sm:$0xff]   ;;  %v705_v5 = vld [vmem:[%s1041_s1 + $0xcc] ss:$16 sps:$4 sm:$0xff]  }
   0x3   :  { %431 = vmatpush1.bf16.msra.mxu0 %v701_v2  ;;  %472 = vmatpush1.bf16.msra.mxu1 %v702_v3  ;;  %v707_v6 = vld [vmem:[%s1041_s1 + $0xc0] ss:$16 sps:$4 sm:$0xff]   ;;  %v708_v7 = vld [vmem:[%s1041_s1 + $0xc8] ss:$16 sps:$4 sm:$0xff]   ;;  %v709_v8 = vld [vmem:[%s1041_s1 + $0xa4] ss:$16 sps:$4 sm:$0xff]   ;;  %v96_v45 = vunpack.c.0.s8 %v95_v39 }
   0x4   :  { %432 = vmatprep.subr.bf16.mxu0 %v703_v4  ;;  %473 = vmatprep.subr.bf16.mxu1 %v705_v5  ;;  %v711_v9 = vld [vmem:[%s1041_s1 + $0xac] ss:$16 sps:$4 sm:$0xff]   ;;  %v713_v10 = vld [vmem:[%s1041_s1 + $0xa0] ss:$16 sps:$4 sm:$0xff]   ;;  %v714_v11 = vld [vmem:[%s1041_s1 + $0xa8] ss:$16 sps:$4 sm:$0xff]  }
   0x5   :  { %v715_v12 = vld [vmem:[%s1041_s1 + $0x84] ss:$16 sps:$4 sm:$0xff]   ;;  %v717_v13 = vld [vmem:[%s1041_s1 + $0x8c] ss:$16 sps:$4 sm:$0xff]   ;;  %v719_v14 = vld [vmem:[%s1041_s1 + $0x80] ss:$16 sps:$4 sm:$0xff]  }
   0x6   :  { %v720_v15 = vld [vmem:[%s1041_s1 + $0x88] ss:$16 sps:$4 sm:$0xff]   ;;  %v721_v16 = vld [vmem:[%s1041_s1 + $0x64] ss:$16 sps:$4 sm:$0xff]   ;;  %v723_v17 = vld [vmem:[%s1041_s1 + $0x6c] ss:$16 sps:$4 sm:$0xff]  }
   0x7   :  { %433 = vmatpush1.bf16.msra.mxu0 %v707_v6  ;;  %474 = vmatpush1.bf16.msra.mxu1 %v708_v7  ;;  %v725_v18 = vld [vmem:[%s1041_s1 + $0x60] ss:$16 sps:$4 sm:$0xff]   ;;  %v726_v19 = vld [vmem:[%s1041_s1 + $0x68] ss:$16 sps:$4 sm:$0xff]   ;;  %v727_v20 = vld [vmem:[%s1041_s1 + $0x44] ss:$16 sps:$4 sm:$0xff]  }
   0x8   :  { %434 = vmatprep.subr.bf16.mxu0 %v709_v8  ;;  %475 = vmatprep.subr.bf16.mxu1 %v711_v9  ;;  %v729_v21 = vld [vmem:[%s1041_s1 + $0x4c] ss:$16 sps:$4 sm:$0xff]   ;;  %v731_v22 = vld [vmem:[%s1041_s1 + $0x40] ss:$16 sps:$4 sm:$0xff]   ;;  %v732_v23 = vld [vmem:[%s1041_s1 + $0x48] ss:$16 sps:$4 sm:$0xff]  }
   0x9   :  { %v733_v24 = vld [vmem:[%s1041_s1 + $0x24] ss:$16 sps:$4 sm:$0xff]   ;;  %v735_v25 = vld [vmem:[%s1041_s1 + $0x2c] ss:$16 sps:$4 sm:$0xff]   ;;  %v737_v26 = vld [vmem:[%s1041_s1 + $0x20] ss:$16 sps:$4 sm:$0xff]  }
   0xa   :  { %v738_v27 = vld [vmem:[%s1041_s1 + $0x28] ss:$16 sps:$4 sm:$0xff]   ;;  %v739_v28 = vld [vmem:[%s1041_s1 + $0x4] ss:$16 sps:$4 sm:$0xff]   ;;  %v741_v29 = vld [vmem:[%s1041_s1 + $0xc] ss:$16 sps:$4 sm:$0xff]  }
   0xb   :  { %435 = vmatpush1.bf16.msra.mxu0 %v713_v10  ;;  %476 = vmatpush1.bf16.msra.mxu1 %v714_v11  ;;  %v743_v30 = vld [vmem:[%s1041_s1] ss:$16 sps:$4 sm:$0xff]   ;;  %v744_v31 = vld [vmem:[%s1041_s1 + $0x8] ss:$16 sps:$4 sm:$0xff]   ;;  %v745_v32 = vld [vmem:[%s1041_s1 + $0x1e4] ss:$16 sps:$4 sm:$0xff]  }
   0xc   :  { %436 = vmatprep.subr.bf16.mxu0 %v715_v12  ;;  %477 = vmatprep.subr.bf16.mxu1 %v717_v13  ;;  %v747_v33 = vld [vmem:[%s1041_s1 + $0x1ec] ss:$16 sps:$4 sm:$0xff]   ;;  %v749_v34 = vld [vmem:[%s1041_s1 + $0x1e0] ss:$16 sps:$4 sm:$0xff]   ;;  %v750_v35 = vld [vmem:[%s1041_s1 + $0x1e8] ss:$16 sps:$4 sm:$0xff]  }
   0xd   :  { %v751_v36 = vld [vmem:[%s1041_s1 + $0x1c4] ss:$16 sps:$4 sm:$0xff]   ;;  %v753_v37 = vld [vmem:[%s1041_s1 + $0x1cc] ss:$16 sps:$4 sm:$0xff]   ;;  %v755_v41 = vld [vmem:[%s1041_s1 + $0x1c0] ss:$16 sps:$4 sm:$0xff]  }
   0xe   :  { %v756_v42 = vld [vmem:[%s1041_s1 + $0x1c8] ss:$16 sps:$4 sm:$0xff]   ;;  %v757_v43 = vld [vmem:[%s1041_s1 + $0x1a4] ss:$16 sps:$4 sm:$0xff]   ;;  %v759_v44 = vld [vmem:[%s1041_s1 + $0x1ac] ss:$16 sps:$4 sm:$0xff]  }
   0xf   :  { %437 = vmatpush1.bf16.msra.mxu0 %v719_v14  ;;  %478 = vmatpush1.bf16.msra.mxu1 %v720_v15  ;;  %v952_v46 = vshrl.u32 %v97_v40, 7  ;;  %v761_v47 = vld [vmem:[%s1041_s1 + $0x1a0] ss:$16 sps:$4 sm:$0xff]   ;;  %v762_v48 = vld [vmem:[%s1041_s1 + $0x1a8] ss:$16 sps:$4 sm:$0xff]  }
  0x10   :  { %438 = vmatprep.subr.bf16.mxu0 %v721_v16  ;;  %479 = vmatprep.subr.bf16.mxu1 %v723_v17  ;;  %v763_v49 = vld [vmem:[%s1041_s1 + $0x184] ss:$16 sps:$4 sm:$0xff]   ;;  %v765_v50 = vld [vmem:[%s1041_s1 + $0x18c] ss:$16 sps:$4 sm:$0xff]   ;;  %v767_v53 = vld [vmem:[%s1041_s1 + $0x180] ss:$16 sps:$4 sm:$0xff]  }
  0x11   :  { %v99_v51 = vsub.s32 %v96_v45, %v952_v46  ;;  %v630_v52 = vld.sshfl [vmem:[%s1042_s0] sm:$0x11 pattern:$0x75316420]  ;;  %v768_v54 = vld [vmem:[%s1041_s1 + $0x188] ss:$16 sps:$4 sm:$0xff]  }
  0x12   :  { %v93_v55 = vcombine.high %v630_v52, %v630_v52  ;;  %v769_v56 = vld [vmem:[%s1041_s1 + $0x164] ss:$16 sps:$4 sm:$0xff]   ;;  %v771_v57 = vld [vmem:[%s1041_s1 + $0x16c] ss:$16 sps:$4 sm:$0xff]   ;;  %v773_v59 = vld [vmem:[%s1041_s1 + $0x160] ss:$16 sps:$4 sm:$0xff]  }
  0x13   :  { %439 = vmatpush1.bf16.msra.mxu0 %v725_v18  ;;  %480 = vmatpush1.bf16.msra.mxu1 %v726_v19  ;;  %v774_v60 = vld [vmem:[%s1041_s1 + $0x168] ss:$16 sps:$4 sm:$0xff]   ;;  %v775_v61 = vld [vmem:[%s1041_s1 + $0x144] ss:$16 sps:$4 sm:$0xff]   ;;  %v777_v62 = vld [vmem:[%s1041_s1 + $0x14c] ss:$16 sps:$4 sm:$0xff]   ;;  %v100_v9 = vrot.slane %v630_v52, %v99_v51 }
  0x14   :  { %440 = vmatprep.subr.bf16.mxu0 %v727_v20  ;;  %481 = vmatprep.subr.bf16.mxu1 %v729_v21  ;;  %v107_v58 = vrot.slane %v93_v55, %v99_v51  ;;  %v779_v63 = vld [vmem:[%s1041_s1 + $0x140] ss:$16 sps:$4 sm:$0xff]   ;;  %v780_v0 = vld [vmem:[%s1041_s1 + $0x148] ss:$16 sps:$4 sm:$0xff]   ;;  %v781_v1 = vld [vmem:[%s1041_s1 + $0x124] ss:$16 sps:$4 sm:$0xff]  }
  0x15   :  { %v783_v2 = vld [vmem:[%s1041_s1 + $0x12c] ss:$16 sps:$4 sm:$0xff]   ;;  %v785_v3 = vld [vmem:[%s1041_s1 + $0x120] ss:$16 sps:$4 sm:$0xff]   ;;  %v786_v4 = vld [vmem:[%s1041_s1 + $0x128] ss:$16 sps:$4 sm:$0xff]  }
  0x16   :  { %462 = vmatprep.mubr.bf16.mxu0 %v107_v58  ;;  %503 = vmatprep.mubr.bf16.mxu1 %v107_v58  ;;  %v787_v5 = vld [vmem:[%s1041_s1 + $0x104] ss:$16 sps:$4 sm:$0xff]   ;;  %v789_v6 = vld [vmem:[%s1041_s1 + $0x10c] ss:$16 sps:$4 sm:$0xff]   ;;  %v791_v7 = vld [vmem:[%s1041_s1 + $0x100] ss:$16 sps:$4 sm:$0xff]  }
  0x17   :  { %441 = vmatpush1.bf16.msra.mxu0 %v731_v22  ;;  %482 = vmatpush1.bf16.msra.mxu1 %v732_v23  ;;  %v792_v8 = vld [vmem:[%s1041_s1 + $0x108] ss:$16 sps:$4 sm:$0xff]   ;;  %v795_v10 = vmov 1983009808   ;;  %v516_v12 = vsub.s32 0, %v952_v46  ;;  %v524_v13 = vsub.s32 2, %v952_v46 }
  0x18   :  { %442 = vmatprep.subr.bf16.mxu0 %v733_v24  ;;  %483 = vmatprep.subr.bf16.mxu1 %v735_v25  ;;  %v580_v11 = vunpack.c.l.s4 %v795_v10  ;;  %v512_v14 = vld [vmem:[%s1043_s2] sm:$0xf]  ;;  %v520_v16 = vsub.s32 1, %v952_v46  ;;  %v528_v17 = vsub.s32 3, %v952_v46 }
  0x19   :  { %v538_v18 = vld [vmem:[%s1044_s3] sm:$0xf]  ;;  %v517_v19 = vrot.slane %v512_v14, %v516_v12  ;;  %v525_v21 = vrot.slane %v512_v14, %v524_v13 }
  0x1a   :  { %v581_v15 = vunpack.c.0.s8 %v580_v11  ;;  %v576_v20 = vld [vmem:[%s1045_s4] sm:$0xff]  ;;  %v543_v23 = vrot.slane %v538_v18, %v516_v12  ;;  %v551_v24 = vrot.slane %v538_v18, %v524_v13  ;;  %v521_v25 = vrot.slane %v512_v14, %v520_v16 }
  0x1b   :  { %443 = vmatpush1.bf16.msra.mxu0 %v737_v26  ;;  %484 = vmatpush1.bf16.msra.mxu1 %v738_v27  ;;  %v529_v26 = vrot.slane %v512_v14, %v528_v17 }
  0x1c   :  { %444 = vmatprep.subr.bf16.mxu0 %v739_v28  ;;  %485 = vmatprep.subr.bf16.mxu1 %v741_v29  ;;  %v584_v22 = vsub.s32 %v581_v15, %v952_v46  ;;  %v578_v29 = vcombine.high %v576_v20, %v576_v20 }
  0x1f   :  { %445 = vmatpush1.bf16.msra.mxu0 %v743_v30  ;;  %486 = vmatpush1.bf16.msra.mxu1 %v744_v31 }
  0x20   :  { %446 = vmatprep.subr.bf16.mxu0 %v745_v32  ;;  %487 = vmatprep.subr.bf16.mxu1 %v747_v33  ;;  %v585_v32 = vrot.slane %v576_v20, %v584_v22 }
  0x23   :  { %447 = vmatpush2.bf16.msra.mxu0 %v749_v34  ;;  %488 = vmatpush2.bf16.msra.mxu1 %v750_v35  ;;  %v547_v34 = vrot.slane %v538_v18, %v520_v16 }
  0x24   :  { %448 = vmatprep.subr.bf16.mxu0 %v751_v36  ;;  %489 = vmatprep.subr.bf16.mxu1 %v753_v37  ;;  %v555_v36 = vrot.slane %v538_v18, %v528_v17 }
  0x27   :  { %449 = vmatpush2.bf16.msra.mxu0 %v755_v41  ;;  %490 = vmatpush2.bf16.msra.mxu1 %v756_v42  ;;  %v592_v41 = vrot.slane %v578_v29, %v584_v22 }
  0x28   :  { %450 = vmatprep.subr.bf16.mxu0 %v757_v43  ;;  %491 = vmatprep.subr.bf16.mxu1 %v759_v44 }
  0x2b   :  { %451 = vmatpush2.bf16.msra.mxu0 %v761_v47  ;;  %492 = vmatpush2.bf16.msra.mxu1 %v762_v48 }
  0x2c   :  { %452 = vmatprep.subr.bf16.mxu0 %v763_v49  ;;  %493 = vmatprep.subr.bf16.mxu1 %v765_v50  ;;  %v593_v50 = vcombine.high %v585_v32, %v585_v32 }
  0x2f   :  { %453 = vmatpush2.bf16.msra.mxu0 %v767_v53  ;;  %494 = vmatpush2.bf16.msra.mxu1 %v768_v54  ;;  %v594_v53 = vcombine.high %v592_v41, %v592_v41 }
  0x30   :  { %454 = vmatprep.subr.bf16.mxu0 %v769_v56  ;;  %495 = vmatprep.subr.bf16.mxu1 %v771_v57 }
  0x33   :  { %455 = vmatpush2.bf16.msra.mxu0 %v773_v59  ;;  %496 = vmatpush2.bf16.msra.mxu1 %v774_v60 }
  0x34   :  { %456 = vmatprep.subr.bf16.mxu0 %v775_v61  ;;  %497 = vmatprep.subr.bf16.mxu1 %v777_v62 }
  0x37   :  { %457 = vmatpush2.bf16.msra.mxu0 %v779_v63  ;;  %498 = vmatpush2.bf16.msra.mxu1 %v780_v0 }
  0x38   :  { %458 = vmatprep.subr.bf16.mxu0 %v781_v1  ;;  %499 = vmatprep.subr.bf16.mxu1 %v783_v2 }
  0x3b   :  { %459 = vmatpush2.bf16.msra.mxu0 %v785_v3  ;;  %500 = vmatpush2.bf16.msra.mxu1 %v786_v4 }
  0x3c   :  { %460 = vmatprep.subr.bf16.mxu0 %v787_v5  ;;  %501 = vmatprep.subr.bf16.mxu1 %v789_v6 }
  0x3f   :  { %461 = vmatpush2.bf16.msra.mxu0 %v791_v7  ;;  %502 = vmatpush2.bf16.msra.mxu1 %v792_v8 }
  0x42   :  { %463 = vmatmul.mubr.bf16.vlgmr.msra.gmra.mxu0 %v100_v9  ;;  %504 = vmatmul.mubr.bf16.vlgmr.msra.gmra.mxu1 %v100_v9 }
 0x102   :  { %v464_v27 = vpop.f32.mrf.mxu0  ;;  %v505_v28 = vpop.f32.mrf.mxu1 }
 0x103   :  { %v534_v30 = vmul.f32 %v517_v19, %v464_v27  ;;  %v536_v31 = vmul.f32 %v525_v21, %v505_v28 }
 0x104   :  { %v466_v33 = vpop.f32.mrf.mxu0  ;;  %v507_v35 = vpop.f32.mrf.mxu1 }
 0x105   :  { %v560_v37 = vadd.f32 %v543_v23, %v534_v30  ;;  %v562_v38 = vadd.f32 %v551_v24, %v536_v31  ;;  %v535_v39 = vmul.f32 %v521_v25, %v466_v33  ;;  %v537_v40 = vmul.f32 %v529_v26, %v507_v35 }
 0x106   :  { %v468_v42 = vpop.f32.mrf.mxu0  ;;  %v509_v43 = vpop.f32.mrf.mxu1 }
 0x107   :  { %vm564_vm0 = vcmp.ge.f32.partialorder %v560_v37, 0.0  ;;  %v568_v44 = vmul.f32 0.2, %v560_v37  ;;  %v570_v45 = vmul.f32 0.2, %v562_v38  ;;  %vm566_vm1 = vcmp.ge.f32.partialorder %v562_v38, 0.0 }
 0x108   :  { %v561_v46 = vadd.f32 %v547_v34, %v535_v39  ;;  %v563_v47 = vadd.f32 %v555_v36, %v537_v40  ;;  %v469_v48 = vpop.f32.mrf.mxu0  ;;  %v510_v49 = vpop.f32.mrf.mxu1 }
 0x109   :  { %v572_v51 = vsel %vm564_vm0, %v560_v37, %v568_v44  ;;  %v574_v54 = vsel %vm566_vm1, %v562_v38, %v570_v45 }
 0x10a   :  { %vm565_vm2 = vcmp.ge.f32.partialorder %v561_v46, 0.0  ;;  %v569_v52 = vmul.f32 0.2, %v561_v46  ;;  %vm567_vm3 = vcmp.ge.f32.partialorder %v563_v47, 0.0  ;;  %v571_v55 = vmul.f32 0.2, %v563_v47 }
 0x10b   :  { %v599_v57 = vadd.f32 %v585_v32, %v572_v51  ;;  %v601_v60 = vadd.f32 %v592_v41, %v574_v54 }
 0x10c   :  { %v573_v56 = vsel %vm565_vm2, %v561_v46, %v569_v52  ;;  %v575_v59 = vsel %vm567_vm3, %v563_v47, %v571_v55 }
 0x10d   :  { %v600_v58 = vadd.f32 %v593_v50, %v573_v56  ;;  %v602_v61 = vadd.f32 %v594_v53, %v575_v59 }
 0x10f   :  { %v607_v62 = vcombine.low %v599_v57, %v600_v58  ;;  %v608_v63 = vcombine.low %v601_v60, %v602_v61 }
 0x111   :  { %v615_v0 = vrot.slane %v607_v62, %v584_v22  ;;  %v622_v1 = vrot.slane %v608_v63, %v584_v22 }
 0x113   :  { %v623_v2 = vcombine.low %v615_v0, %v622_v1 }
 0x115   :  { %625 = vst [vmem:[%s1046_s5] sm:$0xff] %v623_v2 }

// kernel: unet_forward.22
= control target key start
LH: loop header
LB: loop body
LE: loop exit
PB: predicated region body
PF: predicated region fallthrough
CT: control target
= control target key end

     0   :  { %v81_v38 = vlaneseq  ;;  %v701_v39 = vmov 1966171168   ;;  %s928_s1 = inlined_call_operand.vmem [shape: bf16[512,256], index: 1, kind: input, shape index: {}]   ;;  %s929_s0 = inlined_call_operand.vmem [shape: bf16[2,512], index: 0, kind: input, shape index: {}]   ;;  %s930_s2 = inlined_call_operand.vmem [shape: f32[1,256], index: 2, kind: input, shape index: {}]   ;;  %s931_s3 = inlined_call_operand.vmem [shape: f32[2,256], index: 3, kind: output, shape index: {}]  }
   0x1   :  { %v605_v0 = vld [vmem:[%s928_s1 + $0x74] ss:$8 sps:$4 sm:$0xff]   ;;  %v609_v2 = vld [vmem:[%s928_s1 + $0x70] ss:$8 sps:$4 sm:$0xff]   ;;  %v611_v4 = vld [vmem:[%s928_s1 + $0x64] ss:$8 sps:$4 sm:$0xff]   ;;  %v101_v40 = vunpack.c.l.s4 %v701_v39 }
   0x2   :  { %v607_v1 = vld [vmem:[%s928_s1 + $0x174] ss:$8 sps:$4 sm:$0xff]   ;;  %440 = vmatprep.subr.bf16.mxu0 %v605_v0  ;;  %v610_v3 = vld [vmem:[%s928_s1 + $0x170] ss:$8 sps:$4 sm:$0xff]   ;;  %v613_v5 = vld [vmem:[%s928_s1 + $0x164] ss:$8 sps:$4 sm:$0xff]  }
   0x3   :  { %481 = vmatprep.subr.bf16.mxu1 %v607_v1  ;;  %441 = vmatpush1.bf16.msra.mxu0 %v609_v2  ;;  %v615_v6 = vld [vmem:[%s928_s1 + $0x60] ss:$8 sps:$4 sm:$0xff]   ;;  %v617_v8 = vld [vmem:[%s928_s1 + $0x54] ss:$8 sps:$4 sm:$0xff]   ;;  %v621_v10 = vld [vmem:[%s928_s1 + $0x50] ss:$8 sps:$4 sm:$0xff]   ;;  %v102_v46 = vunpack.c.0.s8 %v101_v40 }
   0x4   :  { %482 = vmatpush1.bf16.msra.mxu1 %v610_v3  ;;  %442 = vmatprep.subr.bf16.mxu0 %v611_v4  ;;  %v616_v7 = vld [vmem:[%s928_s1 + $0x160] ss:$8 sps:$4 sm:$0xff]   ;;  %v619_v9 = vld [vmem:[%s928_s1 + $0x154] ss:$8 sps:$4 sm:$0xff]   ;;  %v622_v11 = vld [vmem:[%s928_s1 + $0x150] ss:$8 sps:$4 sm:$0xff]  }
   0x5   :  { %483 = vmatprep.subr.bf16.mxu1 %v613_v5  ;;  %v623_v12 = vld [vmem:[%s928_s1 + $0x44] ss:$8 sps:$4 sm:$0xff]   ;;  %v627_v14 = vld [vmem:[%s928_s1 + $0x40] ss:$8 sps:$4 sm:$0xff]   ;;  %v629_v16 = vld [vmem:[%s928_s1 + $0x34] ss:$8 sps:$4 sm:$0xff]  }
   0x6   :  { %v625_v13 = vld [vmem:[%s928_s1 + $0x144] ss:$8 sps:$4 sm:$0xff]   ;;  %v628_v15 = vld [vmem:[%s928_s1 + $0x140] ss:$8 sps:$4 sm:$0xff]   ;;  %v631_v17 = vld [vmem:[%s928_s1 + $0x134] ss:$8 sps:$4 sm:$0xff]  }
   0x7   :  { %443 = vmatpush1.bf16.msra.mxu0 %v615_v6  ;;  %v633_v18 = vld [vmem:[%s928_s1 + $0x30] ss:$8 sps:$4 sm:$0xff]   ;;  %v635_v20 = vld [vmem:[%s928_s1 + $0x24] ss:$8 sps:$4 sm:$0xff]   ;;  %v639_v22 = vld [vmem:[%s928_s1 + $0x20] ss:$8 sps:$4 sm:$0xff]  }
   0x8   :  { %484 = vmatpush1.bf16.msra.mxu1 %v616_v7  ;;  %444 = vmatprep.subr.bf16.mxu0 %v617_v8  ;;  %v634_v19 = vld [vmem:[%s928_s1 + $0x130] ss:$8 sps:$4 sm:$0xff]   ;;  %v637_v21 = vld [vmem:[%s928_s1 + $0x124] ss:$8 sps:$4 sm:$0xff]   ;;  %v640_v23 = vld [vmem:[%s928_s1 + $0x120] ss:$8 sps:$4 sm:$0xff]  }
   0x9   :  { %485 = vmatprep.subr.bf16.mxu1 %v619_v9  ;;  %v641_v24 = vld [vmem:[%s928_s1 + $0x14] ss:$8 sps:$4 sm:$0xff]   ;;  %v645_v26 = vld [vmem:[%s928_s1 + $0x10] ss:$8 sps:$4 sm:$0xff]   ;;  %v647_v28 = vld [vmem:[%s928_s1 + $0x4] ss:$8 sps:$4 sm:$0xff]  }
   0xa   :  { %v643_v25 = vld [vmem:[%s928_s1 + $0x114] ss:$8 sps:$4 sm:$0xff]   ;;  %v646_v27 = vld [vmem:[%s928_s1 + $0x110] ss:$8 sps:$4 sm:$0xff]   ;;  %v649_v29 = vld [vmem:[%s928_s1 + $0x104] ss:$8 sps:$4 sm:$0xff]  }
   0xb   :  { %445 = vmatpush1.bf16.msra.mxu0 %v621_v10  ;;  %v651_v30 = vld [vmem:[%s928_s1] ss:$8 sps:$4 sm:$0xff]   ;;  %v653_v32 = vld [vmem:[%s928_s1 + $0xf4] ss:$8 sps:$4 sm:$0xff]   ;;  %v657_v34 = vld [vmem:[%s928_s1 + $0xf0] ss:$8 sps:$4 sm:$0xff]  }
   0xc   :  { %486 = vmatpush1.bf16.msra.mxu1 %v622_v11  ;;  %446 = vmatprep.subr.bf16.mxu0 %v623_v12  ;;  %v652_v31 = vld [vmem:[%s928_s1 + $0x100] ss:$8 sps:$4 sm:$0xff]   ;;  %v655_v33 = vld [vmem:[%s928_s1 + $0x1f4] ss:$8 sps:$4 sm:$0xff]   ;;  %v658_v35 = vld [vmem:[%s928_s1 + $0x1f0] ss:$8 sps:$4 sm:$0xff]  }
   0xd   :  { %487 = vmatprep.subr.bf16.mxu1 %v625_v13  ;;  %v659_v36 = vld [vmem:[%s928_s1 + $0xe4] ss:$8 sps:$4 sm:$0xff]   ;;  %v663_v41 = vld [vmem:[%s928_s1 + $0xe0] ss:$8 sps:$4 sm:$0xff]   ;;  %v665_v43 = vld [vmem:[%s928_s1 + $0xd4] ss:$8 sps:$4 sm:$0xff]  }
   0xe   :  { %v661_v37 = vld [vmem:[%s928_s1 + $0x1e4] ss:$8 sps:$4 sm:$0xff]   ;;  %v664_v42 = vld [vmem:[%s928_s1 + $0x1e0] ss:$8 sps:$4 sm:$0xff]   ;;  %v667_v44 = vld [vmem:[%s928_s1 + $0x1d4] ss:$8 sps:$4 sm:$0xff]  }
   0xf   :  { %447 = vmatpush1.bf16.msra.mxu0 %v627_v14  ;;  %v848_v45 = vshrl.u32 %v81_v38, 7  ;;  %v669_v47 = vld [vmem:[%s928_s1 + $0xd0] ss:$8 sps:$4 sm:$0xff]   ;;  %v671_v49 = vld [vmem:[%s928_s1 + $0xc4] ss:$8 sps:$4 sm:$0xff]  }
  0x10   :  { %488 = vmatpush1.bf16.msra.mxu1 %v628_v15  ;;  %448 = vmatprep.subr.bf16.mxu0 %v629_v16  ;;  %v670_v48 = vld [vmem:[%s928_s1 + $0x1d0] ss:$8 sps:$4 sm:$0xff]   ;;  %v673_v50 = vld [vmem:[%s928_s1 + $0x1c4] ss:$8 sps:$4 sm:$0xff]   ;;  %v675_v53 = vld [vmem:[%s928_s1 + $0xc0] ss:$8 sps:$4 sm:$0xff]  }
  0x11   :  { %489 = vmatprep.subr.bf16.mxu1 %v631_v17  ;;  %v105_v51 = vsub.s32 %v102_v46, %v848_v45  ;;  %v538_v52 = vld.sshfl [vmem:[%s929_s0] sm:$0x33 pattern:$0x75316420]  ;;  %v677_v56 = vld [vmem:[%s928_s1 + $0xb4] ss:$8 sps:$4 sm:$0xff]  }
  0x12   :  { %v676_v54 = vld [vmem:[%s928_s1 + $0x1c0] ss:$8 sps:$4 sm:$0xff]   ;;  %v99_v55 = vcombine.high %v538_v52, %v538_v52  ;;  %v679_v57 = vld [vmem:[%s928_s1 + $0x1b4] ss:$8 sps:$4 sm:$0xff]   ;;  %v681_v59 = vld [vmem:[%s928_s1 + $0xb0] ss:$8 sps:$4 sm:$0xff]  }
  0x13   :  { %449 = vmatpush1.bf16.msra.mxu0 %v633_v18  ;;  %v682_v60 = vld [vmem:[%s928_s1 + $0x1b0] ss:$8 sps:$4 sm:$0xff]   ;;  %v683_v62 = vld [vmem:[%s928_s1 + $0xa4] ss:$8 sps:$4 sm:$0xff]   ;;  %v687_v0 = vld [vmem:[%s928_s1 + $0xa0] ss:$8 sps:$4 sm:$0xff]   ;;  %v106_v8 = vrot.slane %v538_v52, %v105_v51 }
  0x14   :  { %490 = vmatpush1.bf16.msra.mxu1 %v634_v19  ;;  %450 = vmatprep.subr.bf16.mxu0 %v635_v20  ;;  %v113_v58 = vrot.slane %v99_v55, %v105_v51  ;;  %v685_v63 = vld [vmem:[%s928_s1 + $0x1a4] ss:$8 sps:$4 sm:$0xff]   ;;  %v688_v1 = vld [vmem:[%s928_s1 + $0x1a0] ss:$8 sps:$4 sm:$0xff]   ;;  %v689_v2 = vld [vmem:[%s928_s1 + $0x94] ss:$8 sps:$4 sm:$0xff]  }
  0x15   :  { %491 = vmatprep.subr.bf16.mxu1 %v637_v21  ;;  %v691_v3 = vld [vmem:[%s928_s1 + $0x194] ss:$8 sps:$4 sm:$0xff]   ;;  %v693_v4 = vld [vmem:[%s928_s1 + $0x90] ss:$8 sps:$4 sm:$0xff]   ;;  %v695_v6 = vld [vmem:[%s928_s1 + $0x84] ss:$8 sps:$4 sm:$0xff]   ;;  %v114_v11 = vcombine.high %v106_v8, %v106_v8 }
  0x16   :  { %v115_v61 = vcombine.high %v113_v58, %v113_v58  ;;  %472 = vmatprep.mubr.bf16.mxu0 %v113_v58  ;;  %v694_v5 = vld [vmem:[%s928_s1 + $0x190] ss:$8 sps:$4 sm:$0xff]   ;;  %v697_v7 = vld [vmem:[%s928_s1 + $0x184] ss:$8 sps:$4 sm:$0xff]   ;;  %v699_v9 = vld [vmem:[%s928_s1 + $0x80] ss:$8 sps:$4 sm:$0xff]  }
  0x17   :  { %451 = vmatpush1.bf16.msra.mxu0 %v639_v22  ;;  %v700_v10 = vld [vmem:[%s928_s1 + $0x180] ss:$8 sps:$4 sm:$0xff]   ;;  %v83_v12 = vsub.s32 0, %v848_v45  ;;  %v87_v14 = vsub.s32 1, %v848_v45 }
  0x18   :  { %492 = vmatpush1.bf16.msra.mxu1 %v640_v23  ;;  %452 = vmatprep.subr.bf16.mxu0 %v641_v24  ;;  %v79_v13 = vld [vmem:[%s930_s2] sm:$0x3] }
  0x19   :  { %493 = vmatprep.subr.bf16.mxu1 %v643_v25  ;;  %513 = vmatprep.mubr.bf16.mxu1 %v115_v61  ;;  %v84_v15 = vrot.slane %v79_v13, %v83_v12  ;;  %v88_v16 = vrot.slane %v79_v13, %v87_v14 }
  0x1b   :  { %453 = vmatpush1.bf16.msra.mxu0 %v645_v26 }
  0x1c   :  { %494 = vmatpush1.bf16.msra.mxu1 %v646_v27  ;;  %454 = vmatprep.subr.bf16.mxu0 %v647_v28 }
  0x1d   :  { %495 = vmatprep.subr.bf16.mxu1 %v649_v29 }
  0x1f   :  { %455 = vmatpush1.bf16.msra.mxu0 %v651_v30 }
  0x20   :  { %496 = vmatpush1.bf16.msra.mxu1 %v652_v31  ;;  %456 = vmatprep.subr.bf16.mxu0 %v653_v32 }
  0x21   :  { %497 = vmatprep.subr.bf16.mxu1 %v655_v33 }
  0x23   :  { %457 = vmatpush2.bf16.msra.mxu0 %v657_v34 }
  0x24   :  { %498 = vmatpush2.bf16.msra.mxu1 %v658_v35  ;;  %458 = vmatprep.subr.bf16.mxu0 %v659_v36 }
  0x25   :  { %499 = vmatprep.subr.bf16.mxu1 %v661_v37 }
  0x27   :  { %459 = vmatpush2.bf16.msra.mxu0 %v663_v41 }
  0x28   :  { %500 = vmatpush2.bf16.msra.mxu1 %v664_v42  ;;  %460 = vmatprep.subr.bf16.mxu0 %v665_v43 }
  0x29   :  { %501 = vmatprep.subr.bf16.mxu1 %v667_v44 }
  0x2b   :  { %461 = vmatpush2.bf16.msra.mxu0 %v669_v47 }
  0x2c   :  { %502 = vmatpush2.bf16.msra.mxu1 %v670_v48  ;;  %462 = vmatprep.subr.bf16.mxu0 %v671_v49 }
  0x2d   :  { %503 = vmatprep.subr.bf16.mxu1 %v673_v50 }
  0x2f   :  { %463 = vmatpush2.bf16.msra.mxu0 %v675_v53 }
  0x30   :  { %504 = vmatpush2.bf16.msra.mxu1 %v676_v54  ;;  %464 = vmatprep.subr.bf16.mxu0 %v677_v56 }
  0x31   :  { %505 = vmatprep.subr.bf16.mxu1 %v679_v57 }
  0x33   :  { %465 = vmatpush2.bf16.msra.mxu0 %v681_v59 }
  0x34   :  { %506 = vmatpush2.bf16.msra.mxu1 %v682_v60  ;;  %466 = vmatprep.subr.bf16.mxu0 %v683_v62 }
  0x35   :  { %507 = vmatprep.subr.bf16.mxu1 %v685_v63 }
  0x37   :  { %467 = vmatpush2.bf16.msra.mxu0 %v687_v0 }
  0x38   :  { %508 = vmatpush2.bf16.msra.mxu1 %v688_v1  ;;  %468 = vmatprep.subr.bf16.mxu0 %v689_v2 }
  0x39   :  { %509 = vmatprep.subr.bf16.mxu1 %v691_v3 }
  0x3b   :  { %469 = vmatpush2.bf16.msra.mxu0 %v693_v4 }
  0x3c   :  { %510 = vmatpush2.bf16.msra.mxu1 %v694_v5  ;;  %470 = vmatprep.subr.bf16.mxu0 %v695_v6 }
  0x3d   :  { %511 = vmatprep.subr.bf16.mxu1 %v697_v7 }
  0x3f   :  { %471 = vmatpush2.bf16.msra.mxu0 %v699_v9 }
  0x40   :  { %512 = vmatpush2.bf16.msra.mxu1 %v700_v10 }
  0x42   :  { %473 = vmatmul.mubr.bf16.vlgmr.msra.gmra.mxu0 %v106_v8 }
  0x43   :  { %514 = vmatmul.mubr.bf16.vlgmr.msra.gmra.mxu1 %v114_v11 }
 0x102   :  { %v474_v17 = vpop.f32.mrf.mxu0 }
 0x103   :  { %v515_v18 = vpop.f32.mrf.mxu1  ;;  %v475_v19 = vadd.f32 %v474_v17, %v84_v15 }
 0x104   :  { %v476_v20 = vpop.f32.mrf.mxu0 }
 0x105   :  { %v517_v21 = vpop.f32.mrf.mxu1  ;;  %v477_v22 = vadd.f32 %v476_v20, %v88_v16  ;;  %v516_v25 = vadd.f32 %v515_v18, %v475_v19 }
 0x106   :  { %v478_v23 = vpop.f32.mrf.mxu0 }
 0x107   :  { %v519_v24 = vpop.f32.mrf.mxu1  ;;  %v518_v26 = vadd.f32 %v517_v21, %v477_v22 }
 0x108   :  { %v479_v27 = vpop.f32.mrf.mxu0 }
 0x109   :  { %v520_v28 = vpop.f32.mrf.mxu1  ;;  %v524_v29 = vcombine.low %v516_v25, %v518_v26 }
 0x10b   :  { %603 = vst.sshfl [vmem:[%s931_s3] sm:$0x33 pattern:$0x76325410] %v524_v29 }

// kernel: tile.19
= control target key start
LH: loop header
LB: loop body
LE: loop exit
PB: predicated region body
PF: predicated region fallthrough
CT: control target
= control target key end

     0   :  { %vm13_vm0 = vcmask 523264   ;;  %s16_s10 = smov 3  ;;  %s46_s11 = smov 64   ;;  %vm25_vm1 = vcmask 1048064   ;;  %s69_s0 = inlined_call_operand.vmem [shape: f32[2,4,64], index: 0, kind: input, shape index: {}]   ;;  %s70_s1 = inlined_call_operand.vmem [shape: f32[2,256], index: 1, kind: output, shape index: {}]  }
   0x1   :  { %v43_v0 = vld [vmem:[%s69_s0 + $0x4] sm:$0xf]  ;;  %v9_v1 = vld [vmem:[%s69_s0] sm:$0xf]  ;;  %s11_s0 = smov 3 }
   0x2   :  { %8 = vst [vmem:[#allocation1 + $0x8] sm:$0xf] %v43_v0  ;;  %10 = vst [vmem:[#allocation1] sm:$0xf] %v9_v1 }
   0x9   :  { %v22_v2 = vld.sshfl [vmem:[#allocation1 + $0x1] sm:$0xff pattern:$0xaaaaa280]   ;;  %v12_v3 = vld [vmem:[#allocation1] ss:$2 sm:%s11_s0]  }
   0xa   :  { %23 = vrot.lane.b32.xlu0 %v22_v2, %s46_s11  ;;  %14 = vst.msk [vmem:[#allocation0] ss:$8 sm:$0x3] %vm13_vm0, %v12_v3   ;;  %v17_v4 = vld [vmem:[#allocation1 + $0x8] ss:$2 sm:%s16_s10]  }
   0xb   :  { %20 = vst.msk [vmem:[#allocation0 + $0x1] ss:$8 sm:$0x3] %vm13_vm0, %v17_v4  }
  0x7c   :  { %v24_v5 = vpop.permute.xlu0 %23  }
  0x7d   :  { %26 = vst.msk [vmem:[#allocation0] sm:$0x3] %vm25_vm1, %v24_v5   ;;  %28 = vst.msk [vmem:[#allocation0 + $0x6] sm:$0xc] %vm25_vm1, %v24_v5  }
  0x84   :  { %v33_v6 = vld [vmem:[#allocation0] sm:$0x3]  ;;  %v38_v7 = vld [vmem:[#allocation0 + $0x8] sm:$0x3] }
  0x85   :  { %36 = vst [vmem:[%s70_s1] sm:$0x3] %v33_v6  ;;  %44 = vst [vmem:[%s70_s1 + $0x2] sm:$0x3] %v38_v7 }

// kernel: unet_forward.19
= control target key start
LH: loop header
LB: loop body
LE: loop exit
PB: predicated region body
PF: predicated region fallthrough
CT: control target
= control target key end

     0   :  { %v1592_v22 = vmov 1966171168   ;;  %v229_v24 = vlaneseq  ;;  %vm1594_vm0 = vmmov 0   ;;  %vm925_vm1 = vcmask 523264   ;;  %s1971_s1 = inlined_call_operand.vmem [shape: bf16[1600,128], index: 1, kind: input, shape index: {}]   ;;  %s1972_s0 = inlined_call_operand.vmem [shape: bf16[2,1600], index: 0, kind: input, shape index: {}]   ;;  %s1973_s2 = inlined_call_operand.vmem [shape: f32[1,128], index: 2, kind: input, shape index: {}]   ;;  %s1974_s3 = inlined_call_operand.vmem [shape: f32[1,128], index: 3, kind: input, shape index: {}]   ;;  %s1975_s4 = inlined_call_operand.vmem [shape: f32[2,128], index: 4, kind: input, shape index: {}]   ;;  %s1976_s5 = inlined_call_operand.vmem [shape: f32[2,128], index: 5, kind: output, shape index: {}]  }
   0x1   :  { %v1490_v0 = vld [vmem:[%s1971_s1 + $0x78] sm:$0xff]   ;;  %v1494_v4 = vld [vmem:[%s1971_s1 + $0x70] sm:$0xff]   ;;  %v1498_v8 = vld [vmem:[%s1971_s1 + $0x68] sm:$0xff]   ;;  %v227_v23 = vunpack.c.l.s4 %v1592_v22 }
   0x2   :  { %v1491_v1 = vld [vmem:[%s1971_s1 + $0xf8] sm:$0xff]   ;;  %1338 = vmatprep.subr.bf16.mxu0 %v1490_v0  ;;  %v1495_v5 = vld [vmem:[%s1971_s1 + $0xf0] sm:$0xff]   ;;  %v1499_v9 = vld [vmem:[%s1971_s1 + $0xe8] sm:$0xff]   ;;  %v230_v30 = vshrl.u32 %v229_v24, 7 }
   0x3   :  { %v1492_v2 = vld [vmem:[%s1971_s1 + $0x38] sm:$0xff]   ;;  %1360 = vmatprep.subr.bf16.mxu1 %v1491_v1  ;;  %v1496_v6 = vld [vmem:[%s1971_s1 + $0x30] sm:$0xff]   ;;  %v1500_v10 = vld [vmem:[%s1971_s1 + $0x28] sm:$0xff]   ;;  %v228_v29 = vunpack.c.0.s8 %v227_v23 }
   0x4   :  { %v1493_v3 = vld [vmem:[%s1971_s1 + $0xb8] sm:$0xff]   ;;  %1339 = vmatpush3.bf16.msra.mxu0 %v1492_v2  ;;  %v1497_v7 = vld [vmem:[%s1971_s1 + $0xb0] sm:$0xff]   ;;  %v1501_v11 = vld [vmem:[%s1971_s1 + $0xa8] sm:$0xff]  }
   0x5   :  { %1361 = vmatpush3.bf16.msra.mxu1 %v1493_v3  ;;  %1340 = vmatprep.subr.bf16.mxu0 %v1494_v4  ;;  %v1502_v12 = vld [vmem:[%s1971_s1 + $0x60] sm:$0xff]   ;;  %v1506_v16 = vld [vmem:[%s1971_s1 + $0x58] sm:$0xff]   ;;  %v1510_v20 = vld [vmem:[%s1971_s1 + $0x50] sm:$0xff]   ;;  %v1715_v35 = vsub.s32 %v228_v29, %v230_v30 }
   0x6   :  { %1362 = vmatprep.subr.bf16.mxu1 %v1495_v5  ;;  %v1503_v13 = vld [vmem:[%s1971_s1 + $0xe0] sm:$0xff]   ;;  %v1507_v17 = vld [vmem:[%s1971_s1 + $0xd8] sm:$0xff]   ;;  %v1511_v21 = vld [vmem:[%s1971_s1 + $0xd0] sm:$0xff]  }
   0x7   :  { %v1504_v14 = vld [vmem:[%s1971_s1 + $0x20] sm:$0xff]   ;;  %v1508_v18 = vld [vmem:[%s1971_s1 + $0x18] sm:$0xff]   ;;  %v1512_v25 = vld [vmem:[%s1971_s1 + $0x10] sm:$0xff]  }
   0x8   :  { %1341 = vmatpush3.bf16.msra.mxu0 %v1496_v6  ;;  %v1505_v15 = vld [vmem:[%s1971_s1 + $0xa0] sm:$0xff]   ;;  %v1509_v19 = vld [vmem:[%s1971_s1 + $0x98] sm:$0xff]   ;;  %v1513_v26 = vld [vmem:[%s1971_s1 + $0x90] sm:$0xff]  }
   0x9   :  { %1363 = vmatpush3.bf16.msra.mxu1 %v1497_v7  ;;  %1342 = vmatprep.subr.bf16.mxu0 %v1498_v8  ;;  %v1514_v27 = vld [vmem:[%s1971_s1 + $0x48] sm:$0xff]   ;;  %v1518_v33 = vld [vmem:[%s1971_s1 + $0x40] sm:$0xff]   ;;  %v1524_v41 = vld [vmem:[%s1971_s1 + $0x178] sm:$0xff]  }
   0xa   :  { %1364 = vmatprep.subr.bf16.mxu1 %v1499_v9  ;;  %v1515_v28 = vld [vmem:[%s1971_s1 + $0xc8] sm:$0xff]   ;;  %v1519_v34 = vld [vmem:[%s1971_s1 + $0xc0] sm:$0xff]   ;;  %v1526_v44 = vld [vmem:[%s1971_s1 + $0x1f8] sm:$0xff]  }
   0xb   :  { %v1516_v31 = vld [vmem:[%s1971_s1 + $0x8] sm:$0xff]   ;;  %v1520_v36 = vld [vmem:[%s1971_s1] sm:$0xff]   ;;  %v1525_v47 = vld [vmem:[%s1971_s1 + $0x138] sm:$0xff]  }
   0xc   :  { %1343 = vmatpush3.bf16.msra.mxu0 %v1500_v10  ;;  %v1517_v32 = vld [vmem:[%s1971_s1 + $0x88] sm:$0xff]   ;;  %v1521_v37 = vld [vmem:[%s1971_s1 + $0x80] sm:$0xff]   ;;  %v1528_v50 = vld [vmem:[%s1971_s1 + $0x170] sm:$0xff]  }
   0xd   :  { %1365 = vmatpush3.bf16.msra.mxu1 %v1501_v11  ;;  %1344 = vmatprep.subr.bf16.mxu0 %v1502_v12  ;;  %v21_v38 = vld [vmem:[%s1972_s0] sm:$0xff]  ;;  %v1527_v52 = vld [vmem:[%s1971_s1 + $0x1b8] sm:$0xff]   ;;  %v1530_v54 = vld [vmem:[%s1971_s1 + $0x1f0] sm:$0xff]  }
   0xe   :  { %1366 = vmatprep.subr.bf16.mxu1 %v1503_v13  ;;  %v225_v39 = vcombine.high %v21_v38, %v21_v38  ;;  %v232_v40 = vrot.slane %v21_v38, %v1715_v35  ;;  %v1529_v55 = vld [vmem:[%s1971_s1 + $0x130] sm:$0xff]   ;;  %v1532_v57 = vld [vmem:[%s1971_s1 + $0x168] sm:$0xff]   ;;  %v1536_v61 = vld [vmem:[%s1971_s1 + $0x160] sm:$0xff]  }
   0xf   :  { %v1531_v58 = vld [vmem:[%s1971_s1 + $0x1b0] sm:$0xff]   ;;  %v1534_v59 = vld [vmem:[%s1971_s1 + $0x1e8] sm:$0xff]   ;;  %v1538_v63 = vld [vmem:[%s1971_s1 + $0x1e0] sm:$0xff]  }
  0x10   :  { %1345 = vmatpush3.bf16.msra.mxu0 %v1504_v14  ;;  %v240_v42 = vcombine.high %v232_v40, %v232_v40  ;;  %v248_v43 = vrot.slane %v232_v40, %v1715_v35  ;;  %v1735_v45 = vrot.slane %v225_v39, %v1715_v35  ;;  %v1533_v60 = vld [vmem:[%s1971_s1 + $0x128] sm:$0xff]   ;;  %v1537_v0 = vld [vmem:[%s1971_s1 + $0x120] sm:$0xff]   ;;  %v1540_v1 = vld [vmem:[%s1971_s1 + $0x158] sm:$0xff]  }
  0x11   :  { %1367 = vmatpush3.bf16.msra.mxu1 %v1505_v15  ;;  %1346 = vmatprep.subr.bf16.mxu0 %v1506_v16  ;;  %v1535_v62 = vld [vmem:[%s1971_s1 + $0x1a8] sm:$0xff]   ;;  %v1539_v2 = vld [vmem:[%s1971_s1 + $0x1a0] sm:$0xff]   ;;  %v1542_v3 = vld [vmem:[%s1971_s1 + $0x1d8] sm:$0xff]  }
  0x12   :  { %1368 = vmatprep.subr.bf16.mxu1 %v1507_v17  ;;  %v262_v46 = vrot.slane %v240_v42, %v1715_v35  ;;  %v241_v48 = vcombine.high %v1735_v45, %v1735_v45  ;;  %v270_v49 = vcombine.high %v248_v43, %v248_v43  ;;  %v1541_v4 = vld [vmem:[%s1971_s1 + $0x118] sm:$0xff]   ;;  %v1795_v5 = vld [vmem:[%s1972_s0 + $0x8] sm:$0x1f]  ;;  %v1544_v6 = vld [vmem:[%s1971_s1 + $0x150] sm:$0xff]  }
  0x13   :  { %v1543_v7 = vld [vmem:[%s1971_s1 + $0x198] sm:$0xff]   ;;  %v1546_v8 = vld [vmem:[%s1971_s1 + $0x1d0] sm:$0xff]   ;;  %v1548_v10 = vld [vmem:[%s1971_s1 + $0x148] sm:$0xff]   ;;  %v1817_v12 = vrot.slane %v1795_v5, %v1715_v35 }
  0x14   :  { %1347 = vmatpush3.bf16.msra.mxu0 %v1508_v18  ;;  %961 = vmatprep.mubr.bf16.mxu0 %v262_v46  ;;  %v272_v51 = vcombine.high %v262_v46, %v262_v46  ;;  %v269_v53 = vrot.slane %v241_v48, %v1715_v35  ;;  %v1545_v9 = vld [vmem:[%s1971_s1 + $0x110] sm:$0xff]   ;;  %v1550_v13 = vld [vmem:[%s1971_s1 + $0x1c8] sm:$0xff]   ;;  %v1552_v15 = vld [vmem:[%s1971_s1 + $0x140] sm:$0xff]  }
  0x15   :  { %1369 = vmatpush3.bf16.msra.mxu1 %v1509_v19  ;;  %1348 = vmatprep.subr.bf16.mxu0 %v1510_v20  ;;  %v1547_v11 = vld [vmem:[%s1971_s1 + $0x190] sm:$0xff]   ;;  %v1549_v14 = vld [vmem:[%s1971_s1 + $0x108] sm:$0xff]   ;;  %v289_v17 = vcombine.high %v1817_v12, %v1817_v12  ;;  %v1554_v18 = vld [vmem:[%s1971_s1 + $0x1c0] sm:$0xff]   ;;  %v255_v20 = vrot.slane %v1735_v45, %v1715_v35 }
  0x16   :  { %1370 = vmatprep.subr.bf16.mxu1 %v1511_v21  ;;  %1001 = vmatprep.mubr.bf16.mxu1 %v272_v51  ;;  %v273_v56 = vcombine.high %v269_v53, %v269_v53  ;;  %v1551_v16 = vld [vmem:[%s1971_s1 + $0x188] sm:$0xff]   ;;  %v1553_v19 = vld [vmem:[%s1971_s1 + $0x100] sm:$0xff]   ;;  %v1556_v21 = vld [vmem:[%s1971_s1 + $0x278] sm:$0xff]  }
  0x17   :  { %v1555_v22 = vld [vmem:[%s1971_s1 + $0x180] sm:$0xff]   ;;  %v310_v23 = vrot.slane %v289_v17, %v1715_v35  ;;  %v1558_v24 = vld [vmem:[%s1971_s1 + $0x2f8] sm:$0xff]   ;;  %v1562_v30 = vld [vmem:[%s1971_s1 + $0x2f0] sm:$0xff]  }
  0x18   :  { %1349 = vmatpush3.bf16.msra.mxu0 %v1512_v25  ;;  %v1557_v25 = vld [vmem:[%s1971_s1 + $0x238] sm:$0xff]   ;;  %v1567_v38 = vld [vmem:[%s1971_s1 + $0x2a8] sm:$0xff]   ;;  %v1570_v39 = vld [vmem:[%s1971_s1 + $0x2e0] sm:$0xff]  }
  0x19   :  { %1371 = vmatpush3.bf16.msra.mxu1 %v1513_v26  ;;  %1350 = vmatprep.subr.bf16.mxu0 %v1514_v27  ;;  %v271_v26 = vcombine.high %v255_v20, %v255_v20  ;;  %v1560_v27 = vld [vmem:[%s1971_s1 + $0x270] sm:$0xff]   ;;  %v312_v29 = vcombine.high %v310_v23, %v310_v23  ;;  %v1569_v40 = vld [vmem:[%s1971_s1 + $0x220] sm:$0xff]   ;;  %v1575_v46 = vld [vmem:[%s1971_s1 + $0x298] sm:$0xff]  }
  0x1a   :  { %1372 = vmatprep.subr.bf16.mxu1 %v1515_v28  ;;  %v1559_v28 = vld [vmem:[%s1971_s1 + $0x2b8] sm:$0xff]   ;;  %v1571_v42 = vld [vmem:[%s1971_s1 + $0x2a0] sm:$0xff]   ;;  %v1576_v45 = vld [vmem:[%s1971_s1 + $0x250] sm:$0xff]  }
  0x1b   :  { %v1577_v48 = vld [vmem:[%s1971_s1 + $0x210] sm:$0xff]   ;;  %v1582_v51 = vld [vmem:[%s1971_s1 + $0x2c8] sm:$0xff]  }
  0x1c   :  { %1351 = vmatpush3.bf16.msra.mxu0 %v1516_v31  ;;  %v1561_v31 = vld [vmem:[%s1971_s1 + $0x230] sm:$0xff]  }
  0x1d   :  { %1373 = vmatpush3.bf16.msra.mxu1 %v1517_v32  ;;  %1352 = vmatprep.subr.bf16.mxu0 %v1518_v33  ;;  %v1564_v32 = vld [vmem:[%s1971_s1 + $0x268] sm:$0xff]   ;;  %v1563_v33 = vld [vmem:[%s1971_s1 + $0x2b0] sm:$0xff]  }
  0x1e   :  { %1374 = vmatprep.subr.bf16.mxu1 %v1519_v34  ;;  %v1566_v34 = vld [vmem:[%s1971_s1 + $0x2e8] sm:$0xff]  }
  0x20   :  { %1353 = vmatpush3.bf16.msra.mxu0 %v1520_v36  ;;  %v1565_v36 = vld [vmem:[%s1971_s1 + $0x228] sm:$0xff]  }
  0x21   :  { %1375 = vmatpush3.bf16.msra.mxu1 %v1521_v37  ;;  %1382 = vmatprep.subr.bf16.mxu0 %v1524_v41  ;;  %v1568_v37 = vld [vmem:[%s1971_s1 + $0x260] sm:$0xff]   ;;  %v1572_v41 = vld [vmem:[%s1971_s1 + $0x258] sm:$0xff]  }
  0x22   :  { %1404 = vmatprep.subr.bf16.mxu1 %v1526_v44  ;;  %v1573_v44 = vld [vmem:[%s1971_s1 + $0x218] sm:$0xff]  }
  0x23   :  { %962 = vmatmul.mubr.bf16.vlgmr.msra.gmra.mxu0 %v248_v43  ;;  %v1574_v43 = vld [vmem:[%s1971_s1 + $0x2d8] sm:$0xff]  }
  0x24   :  { %1383 = vmatpush3.bf16.msra.mxu0 %v1525_v47  ;;  %1002 = vmatmul.mubr.bf16.vlgmr.msra.gmra.mxu1 %v270_v49  ;;  %v1578_v47 = vld [vmem:[%s1971_s1 + $0x2d0] sm:$0xff]   ;;  %v1580_v49 = vld [vmem:[%s1971_s1 + $0x248] sm:$0xff]  }
  0x25   :  { %1384 = vmatprep.subr.bf16.mxu0 %v1528_v50  ;;  %1405 = vmatpush3.bf16.msra.mxu1 %v1527_v52  ;;  %v1579_v50 = vld [vmem:[%s1971_s1 + $0x290] sm:$0xff]   ;;  %v1581_v52 = vld [vmem:[%s1971_s1 + $0x208] sm:$0xff]  }
  0x26   :  { %1041 = vmatprep.mubr.bf16.mxu0 %v269_v53  ;;  %1406 = vmatprep.subr.bf16.mxu1 %v1530_v54  ;;  %v1584_v53 = vld [vmem:[%s1971_s1 + $0x240] sm:$0xff]   ;;  %v1583_v54 = vld [vmem:[%s1971_s1 + $0x288] sm:$0xff]  }
  0x27   :  { %1081 = vmatprep.mubr.bf16.mxu1 %v273_v56  ;;  %v1585_v56 = vld [vmem:[%s1971_s1 + $0x200] sm:$0xff]  }
  0x28   :  { %1385 = vmatpush3.bf16.msra.mxu0 %v1529_v55  ;;  %v1586_v55 = vld [vmem:[%s1971_s1 + $0x2c0] sm:$0xff]  }
  0x29   :  { %1386 = vmatprep.subr.bf16.mxu0 %v1532_v57  ;;  %1407 = vmatpush3.bf16.msra.mxu1 %v1531_v58  ;;  %v296_v57 = vrot.slane %v1817_v12, %v1715_v35  ;;  %v1587_v58 = vld [vmem:[%s1971_s1 + $0x280] sm:$0xff]  }
  0x2a   :  { %1408 = vmatprep.subr.bf16.mxu1 %v1534_v59  ;;  %v1588_v59 = vld [vmem:[%s1971_s1 + $0x318] sm:$0xff]  }
  0x2c   :  { %1387 = vmatpush3.bf16.msra.mxu0 %v1533_v60  ;;  %v1593_v60 = vmov 0.0  }
  0x2d   :  { %1388 = vmatprep.subr.bf16.mxu0 %v1536_v61  ;;  %1409 = vmatpush3.bf16.msra.mxu1 %v1535_v62  ;;  %v311_v61 = vcombine.high %v296_v57, %v296_v57  ;;  %v1589_v62 = vld [vmem:[%s1971_s1 + $0x310] sm:$0xff]  }
  0x2e   :  { %1410 = vmatprep.subr.bf16.mxu1 %v1538_v63  ;;  %v274_v63 = vcombine.high %v1795_v5, %v1795_v5 }
  0x30   :  { %1389 = vmatpush3.bf16.msra.mxu0 %v1537_v0  ;;  %v1590_v0 = vld [vmem:[%s1971_s1 + $0x308] sm:$0xff]  }
  0x31   :  { %1390 = vmatprep.subr.bf16.mxu0 %v1540_v1  ;;  %1411 = vmatpush3.bf16.msra.mxu1 %v1539_v2  ;;  %v288_v1 = vrot.slane %v274_v63, %v1715_v35  ;;  %v1591_v2 = vld [vmem:[%s1971_s1 + $0x300] sm:$0xff]  }
  0x32   :  { %1412 = vmatprep.subr.bf16.mxu1 %v1542_v3 }
  0x33   :  { %v303_v3 = vrot.slane %v288_v1, %v1715_v35 }
  0x34   :  { %1391 = vmatpush3.bf16.msra.mxu0 %v1541_v4 }
  0x35   :  { %1392 = vmatprep.subr.bf16.mxu0 %v1544_v6  ;;  %1413 = vmatpush3.bf16.msra.mxu1 %v1543_v7 }
  0x36   :  { %1414 = vmatprep.subr.bf16.mxu1 %v1546_v8 }
  0x38   :  { %1393 = vmatpush3.bf16.msra.mxu0 %v1545_v9 }
  0x39   :  { %1394 = vmatprep.subr.bf16.mxu0 %v1548_v10  ;;  %1415 = vmatpush3.bf16.msra.mxu1 %v1547_v11 }
  0x3a   :  { %1416 = vmatprep.subr.bf16.mxu1 %v1550_v13 }
  0x3c   :  { %1395 = vmatpush3.bf16.msra.mxu0 %v1549_v14 }
  0x3d   :  { %1396 = vmatprep.subr.bf16.mxu0 %v1552_v15  ;;  %1417 = vmatpush3.bf16.msra.mxu1 %v1551_v16 }
  0x3e   :  { %1418 = vmatprep.subr.bf16.mxu1 %v1554_v18 }
  0x40   :  { %1397 = vmatpush3.bf16.msra.mxu0 %v1553_v19 }
  0x41   :  { %1426 = vmatprep.subr.bf16.mxu0 %v1556_v21  ;;  %1419 = vmatpush3.bf16.msra.mxu1 %v1555_v22 }
  0x42   :  { %1448 = vmatprep.subr.bf16.mxu1 %v1558_v24 }
  0x43   :  { %1042 = vmatmul.mubr.bf16.vlgmr.msra.gmra.mxu0 %v255_v20 }
  0x44   :  { %1427 = vmatpush3.bf16.msra.mxu0 %v1557_v25  ;;  %1121 = vmatprep.mubr.bf16.mxu0 %v310_v23 }
  0x45   :  { %1082 = vmatmul.mubr.bf16.vlgmr.msra.gmra.mxu1 %v271_v26  ;;  %1428 = vmatprep.subr.bf16.mxu0 %v1560_v27 }
  0x46   :  { %1449 = vmatpush3.bf16.msra.mxu1 %v1559_v28  ;;  %1161 = vmatprep.mubr.bf16.mxu1 %v312_v29 }
  0x47   :  { %1450 = vmatprep.subr.bf16.mxu1 %v1562_v30 }
  0x48   :  { %1429 = vmatpush3.bf16.msra.mxu0 %v1561_v31 }
  0x49   :  { %1430 = vmatprep.subr.bf16.mxu0 %v1564_v32 }
  0x4a   :  { %1451 = vmatpush3.bf16.msra.mxu1 %v1563_v33 }
  0x4b   :  { %1452 = vmatprep.subr.bf16.mxu1 %v1566_v34 }
  0x4c   :  { %1431 = vmatpush3.bf16.msra.mxu0 %v1565_v36 }
  0x4d   :  { %1432 = vmatprep.subr.bf16.mxu0 %v1568_v37 }
  0x4e   :  { %1453 = vmatpush3.bf16.msra.mxu1 %v1567_v38 }
  0x4f   :  { %1454 = vmatprep.subr.bf16.mxu1 %v1570_v39 }
  0x50   :  { %1433 = vmatpush3.bf16.msra.mxu0 %v1569_v40  ;;  %v1336_v40 = vld [vmem:[%s1973_s2] ss:$0 sm:$0xff] }
  0x51   :  { %1434 = vmatprep.subr.bf16.mxu0 %v1572_v41 }
  0x52   :  { %1455 = vmatpush3.bf16.msra.mxu1 %v1571_v42  ;;  %v1337_v42 = vld [vmem:[%s1974_s3] ss:$0 sm:$0xff] }
  0x53   :  { %1456 = vmatprep.subr.bf16.mxu1 %v1574_v43 }
  0x54   :  { %1435 = vmatpush3.bf16.msra.mxu0 %v1573_v44 }
  0x55   :  { %1436 = vmatprep.subr.bf16.mxu0 %v1576_v45 }
  0x56   :  { %1457 = vmatpush3.bf16.msra.mxu1 %v1575_v46 }
  0x57   :  { %1458 = vmatprep.subr.bf16.mxu1 %v1578_v47 }
  0x58   :  { %1437 = vmatpush3.bf16.msra.mxu0 %v1577_v48 }
  0x59   :  { %1438 = vmatprep.subr.bf16.mxu0 %v1580_v49  ;;  %v1228_v49 = vld [vmem:[%s1975_s4] sm:$0x3] }
  0x5a   :  { %1459 = vmatpush3.bf16.msra.mxu1 %v1579_v50 }
  0x5b   :  { %1460 = vmatprep.subr.bf16.mxu1 %v1582_v51 }
  0x5c   :  { %1439 = vmatpush3.bf16.msra.mxu0 %v1581_v52 }
  0x5d   :  { %1440 = vmatprep.subr.bf16.mxu0 %v1584_v53 }
  0x5e   :  { %1461 = vmatpush3.bf16.msra.mxu1 %v1583_v54 }
  0x5f   :  { %1462 = vmatprep.subr.bf16.mxu1 %v1586_v55 }
  0x60   :  { %1441 = vmatpush3.bf16.msra.mxu0 %v1585_v56 }
  0x61   :  { %1475 = vmatprep.subr.bf16.mxu0 %v1593_v60 }
  0x62   :  { %1463 = vmatpush3.bf16.msra.mxu1 %v1587_v58 }
  0x63   :  { %1122 = vmatmul.mubr.bf16.vlgmr.msra.gmra.mxu0 %v296_v57 }
  0x64   :  { %1476 = vmatpush3.bf16.msra.mxu0 %v1588_v59  ;;  %1483 = vmatprep.mubr.msk.bf16.mxu0 %vm1594_vm0, %v1593_v60 }
  0x65   :  { %1162 = vmatmul.mubr.bf16.vlgmr.msra.gmra.mxu1 %v311_v61  ;;  %1477 = vmatprep.subr.bf16.mxu0 %v1593_v60 }
  0x68   :  { %1478 = vmatpush3.bf16.msra.mxu0 %v1589_v62 }
  0x69   :  { %1479 = vmatprep.subr.bf16.mxu0 %v1593_v60 }
  0x6c   :  { %1480 = vmatpush3.bf16.msra.mxu0 %v1590_v0 }
  0x6d   :  { %1481 = vmatprep.subr.bf16.mxu0 %v1593_v60 }
  0x70   :  { %1482 = vmatpush3.bf16.msra.mxu0 %v1591_v2 }
  0x73   :  { %1484 = vmatmul.mubr.msk.bf16.vlgmr.msra.gmra.mxu0 %vm925_vm1, %v303_v3 }
  0xe3   :  { %v1354_v4 = vpop.f32.mrf.mxu0 }
  0xe4   :  { %v1376_v5 = vpop.f32.mrf.mxu1 }
  0xe5   :  { %v1355_v6 = vpop.f32.mrf.mxu0 }
  0xe6   :  { %v1356_v7 = vadd.f32 %v1355_v6, %v1354_v4  ;;  %v1377_v8 = vpop.f32.mrf.mxu1 }
  0xe7   :  { %v1357_v9 = vpop.f32.mrf.mxu0  ;;  %v1378_v10 = vadd.f32 %v1377_v8, %v1376_v5 }
  0xe8   :  { %v1379_v12 = vpop.f32.mrf.mxu1 }
  0xe9   :  { %v1358_v11 = vpop.f32.mrf.mxu0  ;;  %v1004_v13 = vadd.f32 %v1378_v10, %v1356_v7 }
  0xea   :  { %v1380_v14 = vpop.f32.mrf.mxu1 }
 0x103   :  { %v1398_v15 = vpop.f32.mrf.mxu0 }
 0x105   :  { %v1399_v16 = vpop.f32.mrf.mxu0  ;;  %v1420_v17 = vpop.f32.mrf.mxu1 }
 0x106   :  { %v1400_v23 = vadd.f32 %v1399_v16, %v1398_v15 }
 0x107   :  { %v1401_v18 = vpop.f32.mrf.mxu0  ;;  %v1421_v19 = vpop.f32.mrf.mxu1 }
 0x108   :  { %v1044_v28 = vadd.f32 %v1400_v23, %v1004_v13  ;;  %v1422_v29 = vadd.f32 %v1421_v19, %v1420_v17 }
 0x109   :  { %v1402_v35 = vpop.f32.mrf.mxu0  ;;  %v1423_v20 = vpop.f32.mrf.mxu1 }
 0x10a   :  { %v1084_v34 = vadd.f32 %v1422_v29, %v1044_v28 }
 0x10b   :  { %v1424_v21 = vpop.f32.mrf.mxu1 }
 0x123   :  { %v1442_v22 = vpop.f32.mrf.mxu0 }
 0x125   :  { %v1443_v24 = vpop.f32.mrf.mxu0  ;;  %v1464_v25 = vpop.f32.mrf.mxu1 }
 0x126   :  { %v1444_v32 = vadd.f32 %v1443_v24, %v1442_v22 }
 0x127   :  { %v1445_v26 = vpop.f32.mrf.mxu0  ;;  %v1465_v27 = vpop.f32.mrf.mxu1 }
 0x128   :  { %v1124_v36 = vadd.f32 %v1444_v32, %v1084_v34  ;;  %v1466_v37 = vadd.f32 %v1465_v27, %v1464_v25 }
 0x129   :  { %v1446_v30 = vpop.f32.mrf.mxu0  ;;  %v1467_v31 = vpop.f32.mrf.mxu1 }
 0x12a   :  { %v1164_v38 = vadd.f32 %v1466_v37, %v1124_v36 }
 0x12b   :  { %v1468_v33 = vpop.f32.mrf.mxu1 }
 0x133   :  { %v1203_v39 = vpop.f32.mrf.mxu0 }
 0x134   :  { %v1204_v41 = vadd.f32 %v1203_v39, %v1164_v38 }
 0x135   :  { %v1485_v43 = vpop.f32.mrf.mxu0 }
 0x136   :  { %v1216_v44 = vmul.f32 %v1336_v40, %v1204_v41 }
 0x137   :  { %v1206_v45 = vpop.f32.mrf.mxu0 }
 0x138   :  { %v1224_v46 = vadd.f32 %v1337_v42, %v1216_v44 }
 0x139   :  { %v1486_v47 = vpop.f32.mrf.mxu0 }
 0x13a   :  { %vm1225_vm2 = vcmp.ge.f32.partialorder %v1224_v46, 0.0  ;;  %v1226_v48 = vmul.f32 0.2, %v1224_v46 }
 0x13c   :  { %v1227_v50 = vsel %vm1225_vm2, %v1224_v46, %v1226_v48 }
 0x13d   :  { %v1229_v51 = vadd.f32 %v1228_v49, %v1227_v50 }
 0x13f   :  { %1230 = vst [vmem:[%s1976_s5] sm:$0x3] %v1229_v51 }

// kernel: unet_forward.23
= control target key start
LH: loop header
LB: loop body
LE: loop exit
PB: predicated region body
PF: predicated region fallthrough
CT: control target
= control target key end

     0   :  { %v523_v22 = vmov 1966171168   ;;  %v98_v24 = vlaneseq  ;;  %s665_s1 = inlined_call_operand.vmem [shape: bf16[512,128], index: 1, kind: input, shape index: {}]   ;;  %s666_s0 = inlined_call_operand.vmem [shape: bf16[2,512], index: 0, kind: input, shape index: {}]   ;;  %s667_s2 = inlined_call_operand.vmem [shape: f32[1,128], index: 2, kind: input, shape index: {}]   ;;  %s668_s3 = inlined_call_operand.vmem [shape: f32[1,128], index: 3, kind: input, shape index: {}]   ;;  %s669_s4 = inlined_call_operand.vmem [shape: f32[2,128], index: 4, kind: input, shape index: {}]   ;;  %s670_s5 = inlined_call_operand.vmem [shape: f32[2,128], index: 5, kind: output, shape index: {}]  }
   0x1   :  { %v491_v0 = vld [vmem:[%s665_s1 + $0x78] sm:$0xff]   ;;  %v495_v4 = vld [vmem:[%s665_s1 + $0x70] sm:$0xff]   ;;  %v499_v8 = vld [vmem:[%s665_s1 + $0x68] sm:$0xff]   ;;  %v96_v23 = vunpack.c.l.s4 %v523_v22 }
   0x2   :  { %v492_v1 = vld [vmem:[%s665_s1 + $0xf8] sm:$0xff]   ;;  %446 = vmatprep.subr.bf16.mxu0 %v491_v0  ;;  %v496_v5 = vld [vmem:[%s665_s1 + $0xf0] sm:$0xff]   ;;  %v500_v9 = vld [vmem:[%s665_s1 + $0xe8] sm:$0xff]   ;;  %v99_v30 = vshrl.u32 %v98_v24, 7 }
   0x3   :  { %v493_v2 = vld [vmem:[%s665_s1 + $0x38] sm:$0xff]   ;;  %468 = vmatprep.subr.bf16.mxu1 %v492_v1  ;;  %v497_v6 = vld [vmem:[%s665_s1 + $0x30] sm:$0xff]   ;;  %v501_v10 = vld [vmem:[%s665_s1 + $0x28] sm:$0xff]   ;;  %v97_v29 = vunpack.c.0.s8 %v96_v23 }
   0x4   :  { %v494_v3 = vld [vmem:[%s665_s1 + $0xb8] sm:$0xff]   ;;  %447 = vmatpush3.bf16.msra.mxu0 %v493_v2  ;;  %v498_v7 = vld [vmem:[%s665_s1 + $0xb0] sm:$0xff]   ;;  %v502_v11 = vld [vmem:[%s665_s1 + $0xa8] sm:$0xff]  }
   0x5   :  { %469 = vmatpush3.bf16.msra.mxu1 %v494_v3  ;;  %448 = vmatprep.subr.bf16.mxu0 %v495_v4  ;;  %v503_v12 = vld [vmem:[%s665_s1 + $0x60] sm:$0xff]   ;;  %v507_v16 = vld [vmem:[%s665_s1 + $0x58] sm:$0xff]   ;;  %v511_v20 = vld [vmem:[%s665_s1 + $0x50] sm:$0xff]   ;;  %v100_v35 = vsub.s32 %v97_v29, %v99_v30 }
   0x6   :  { %470 = vmatprep.subr.bf16.mxu1 %v496_v5  ;;  %v504_v13 = vld [vmem:[%s665_s1 + $0xe0] sm:$0xff]   ;;  %v508_v17 = vld [vmem:[%s665_s1 + $0xd8] sm:$0xff]   ;;  %v512_v21 = vld [vmem:[%s665_s1 + $0xd0] sm:$0xff]  }
   0x7   :  { %v505_v14 = vld [vmem:[%s665_s1 + $0x20] sm:$0xff]   ;;  %v509_v18 = vld [vmem:[%s665_s1 + $0x18] sm:$0xff]   ;;  %v513_v25 = vld [vmem:[%s665_s1 + $0x10] sm:$0xff]  }
   0x8   :  { %449 = vmatpush3.bf16.msra.mxu0 %v497_v6  ;;  %v506_v15 = vld [vmem:[%s665_s1 + $0xa0] sm:$0xff]   ;;  %v510_v19 = vld [vmem:[%s665_s1 + $0x98] sm:$0xff]   ;;  %v514_v26 = vld [vmem:[%s665_s1 + $0x90] sm:$0xff]  }
   0x9   :  { %471 = vmatpush3.bf16.msra.mxu1 %v498_v7  ;;  %450 = vmatprep.subr.bf16.mxu0 %v499_v8  ;;  %v515_v27 = vld [vmem:[%s665_s1 + $0x48] sm:$0xff]   ;;  %v519_v33 = vld [vmem:[%s665_s1 + $0x40] sm:$0xff]  }
   0xa   :  { %472 = vmatprep.subr.bf16.mxu1 %v500_v9  ;;  %v516_v28 = vld [vmem:[%s665_s1 + $0xc8] sm:$0xff]   ;;  %v520_v34 = vld [vmem:[%s665_s1 + $0xc0] sm:$0xff]  }
   0xb   :  { %v517_v31 = vld [vmem:[%s665_s1 + $0x8] sm:$0xff]   ;;  %v521_v36 = vld [vmem:[%s665_s1] sm:$0xff]  }
   0xc   :  { %451 = vmatpush3.bf16.msra.mxu0 %v501_v10  ;;  %v518_v32 = vld [vmem:[%s665_s1 + $0x88] sm:$0xff]   ;;  %v522_v37 = vld [vmem:[%s665_s1 + $0x80] sm:$0xff]  }
   0xd   :  { %473 = vmatpush3.bf16.msra.mxu1 %v502_v11  ;;  %452 = vmatprep.subr.bf16.mxu0 %v503_v12  ;;  %v411_v38 = vld.sshfl [vmem:[%s666_s0] sm:$0x33 pattern:$0x75316420] }
   0xe   :  { %474 = vmatprep.subr.bf16.mxu1 %v504_v13  ;;  %v94_v39 = vcombine.high %v411_v38, %v411_v38  ;;  %v101_v40 = vrot.slane %v411_v38, %v100_v35  ;;  %v444_v51 = vld [vmem:[%s667_s2] ss:$0 sm:$0xff] }
   0xf   :  { %v445_v55 = vld [vmem:[%s668_s3] ss:$0 sm:$0xff] }
  0x10   :  { %453 = vmatpush3.bf16.msra.mxu0 %v505_v14  ;;  %v108_v41 = vrot.slane %v94_v39, %v100_v35  ;;  %v109_v42 = vcombine.high %v101_v40, %v101_v40  ;;  %v404_v59 = vld [vmem:[%s669_s4] sm:$0x3] }
  0x11   :  { %475 = vmatpush3.bf16.msra.mxu1 %v506_v15  ;;  %454 = vmatprep.subr.bf16.mxu0 %v507_v16 }
  0x12   :  { %476 = vmatprep.subr.bf16.mxu1 %v508_v17  ;;  %339 = vmatprep.mubr.bf16.mxu0 %v108_v41  ;;  %v110_v43 = vcombine.high %v108_v41, %v108_v41 }
  0x14   :  { %455 = vmatpush3.bf16.msra.mxu0 %v509_v18  ;;  %379 = vmatprep.mubr.bf16.mxu1 %v110_v43 }
  0x15   :  { %477 = vmatpush3.bf16.msra.mxu1 %v510_v19  ;;  %456 = vmatprep.subr.bf16.mxu0 %v511_v20 }
  0x16   :  { %478 = vmatprep.subr.bf16.mxu1 %v512_v21 }
  0x18   :  { %457 = vmatpush3.bf16.msra.mxu0 %v513_v25 }
  0x19   :  { %479 = vmatpush3.bf16.msra.mxu1 %v514_v26  ;;  %458 = vmatprep.subr.bf16.mxu0 %v515_v27 }
  0x1a   :  { %480 = vmatprep.subr.bf16.mxu1 %v516_v28 }
  0x1c   :  { %459 = vmatpush3.bf16.msra.mxu0 %v517_v31 }
  0x1d   :  { %481 = vmatpush3.bf16.msra.mxu1 %v518_v32  ;;  %460 = vmatprep.subr.bf16.mxu0 %v519_v33 }
  0x1e   :  { %482 = vmatprep.subr.bf16.mxu1 %v520_v34 }
  0x20   :  { %461 = vmatpush3.bf16.msra.mxu0 %v521_v36 }
  0x21   :  { %483 = vmatpush3.bf16.msra.mxu1 %v522_v37 }
  0x23   :  { %340 = vmatmul.mubr.bf16.vlgmr.msra.gmra.mxu0 %v101_v40 }
  0x24   :  { %380 = vmatmul.mubr.bf16.vlgmr.msra.gmra.mxu1 %v109_v42 }
  0xe3   :  { %v462_v44 = vpop.f32.mrf.mxu0 }
  0xe4   :  { %v484_v45 = vpop.f32.mrf.mxu1 }
  0xe5   :  { %v463_v46 = vpop.f32.mrf.mxu0 }
  0xe6   :  { %v464_v47 = vadd.f32 %v463_v46, %v462_v44  ;;  %v485_v48 = vpop.f32.mrf.mxu1 }
  0xe7   :  { %v465_v49 = vpop.f32.mrf.mxu0  ;;  %v486_v50 = vadd.f32 %v485_v48, %v484_v45 }
  0xe8   :  { %v487_v52 = vpop.f32.mrf.mxu1 }
  0xe9   :  { %v466_v53 = vpop.f32.mrf.mxu0  ;;  %v382_v54 = vadd.f32 %v486_v50, %v464_v47 }
  0xea   :  { %v488_v56 = vpop.f32.mrf.mxu1 }
  0xeb   :  { %v394_v57 = vmul.f32 %v444_v51, %v382_v54 }
  0xed   :  { %v402_v58 = vadd.f32 %v445_v55, %v394_v57 }
  0xef   :  { %v403_v60 = vmax.f32 %v402_v58, 0.0 }
  0xf1   :  { %v405_v61 = vadd.f32 %v404_v59, %v403_v60 }
  0xf3   :  { %406 = vst [vmem:[%s670_s5] sm:$0x3] %v405_v61 }

// kernel: unet_forward.24
= control target key start
LH: loop header
LB: loop body
LE: loop exit
PB: predicated region body
PF: predicated region fallthrough
CT: control target
= control target key end

     0   :  { %v423_v9 = vmov 1966171168   ;;  %v65_v11 = vlaneseq  ;;  %s570_s1 = inlined_call_operand.vmem [shape: bf16[256,256], index: 1, kind: input, shape index: {}]   ;;  %s571_s0 = inlined_call_operand.vmem [shape: bf16[2,256], index: 0, kind: input, shape index: {}]   ;;  %s572_s2 = inlined_call_operand.vmem [shape: f32[1,256], index: 2, kind: input, shape index: {}]   ;;  %s573_s3 = inlined_call_operand.vmem [shape: f32[1,256], index: 3, kind: input, shape index: {}]   ;;  %s574_s4 = inlined_call_operand.vmem [shape: f32[2,256], index: 4, kind: input, shape index: {}]   ;;  %s575_s5 = inlined_call_operand.vmem [shape: f32[2,256], index: 5, kind: output, shape index: {}]  }
   0x1   :  { %v375_v0 = vld [vmem:[%s570_s1 + $0x74] ss:$8 sps:$4 sm:$0xff]   ;;  %v377_v1 = vld [vmem:[%s570_s1 + $0x70] ss:$8 sps:$4 sm:$0xff]   ;;  %v378_v2 = vld [vmem:[%s570_s1 + $0x64] ss:$8 sps:$4 sm:$0xff]   ;;  %v63_v10 = vunpack.c.l.s4 %v423_v9 }
   0x2   :  { %238 = vmatprep.subr.bf16.mxu0 %v375_v0  ;;  %v380_v3 = vld [vmem:[%s570_s1 + $0x60] ss:$8 sps:$4 sm:$0xff]   ;;  %v381_v4 = vld [vmem:[%s570_s1 + $0x54] ss:$8 sps:$4 sm:$0xff]   ;;  %v383_v5 = vld [vmem:[%s570_s1 + $0x50] ss:$8 sps:$4 sm:$0xff]  }
   0x3   :  { %239 = vmatpush1.bf16.msra.mxu0 %v377_v1  ;;  %v384_v6 = vld [vmem:[%s570_s1 + $0x44] ss:$8 sps:$4 sm:$0xff]   ;;  %v386_v7 = vld [vmem:[%s570_s1 + $0x40] ss:$8 sps:$4 sm:$0xff]   ;;  %v387_v8 = vld [vmem:[%s570_s1 + $0x34] ss:$8 sps:$4 sm:$0xff]   ;;  %v64_v14 = vunpack.c.0.s8 %v63_v10 }
   0x4   :  { %240 = vmatprep.subr.bf16.mxu0 %v378_v2  ;;  %v389_v12 = vld [vmem:[%s570_s1 + $0x30] ss:$8 sps:$4 sm:$0xff]   ;;  %v390_v13 = vld [vmem:[%s570_s1 + $0x24] ss:$8 sps:$4 sm:$0xff]   ;;  %v487_v15 = vshrl.u32 %v65_v11, 7 }
   0x5   :  { %v392_v16 = vld [vmem:[%s570_s1 + $0x20] ss:$8 sps:$4 sm:$0xff]   ;;  %v393_v17 = vld [vmem:[%s570_s1 + $0x14] ss:$8 sps:$4 sm:$0xff]   ;;  %v395_v21 = vld [vmem:[%s570_s1 + $0x10] ss:$8 sps:$4 sm:$0xff]  }
   0x6   :  { %v67_v18 = vsub.s32 %v64_v14, %v487_v15  ;;  %v339_v19 = vld.sshfl [vmem:[%s571_s0] sm:$0x11 pattern:$0x75316420]  ;;  %v396_v22 = vld [vmem:[%s570_s1 + $0x4] ss:$8 sps:$4 sm:$0xff]  }
   0x7   :  { %241 = vmatpush1.bf16.msra.mxu0 %v380_v3  ;;  %v61_v20 = vcombine.high %v339_v19, %v339_v19  ;;  %v398_v24 = vld [vmem:[%s570_s1] ss:$8 sps:$4 sm:$0xff]   ;;  %v399_v25 = vld [vmem:[%s570_s1 + $0xf4] ss:$8 sps:$4 sm:$0xff]   ;;  %v401_v26 = vld [vmem:[%s570_s1 + $0xf0] ss:$8 sps:$4 sm:$0xff]  }
   0x8   :  { %242 = vmatprep.subr.bf16.mxu0 %v381_v4  ;;  %v402_v27 = vld [vmem:[%s570_s1 + $0xe4] ss:$8 sps:$4 sm:$0xff]   ;;  %v404_v28 = vld [vmem:[%s570_s1 + $0xe0] ss:$8 sps:$4 sm:$0xff]   ;;  %v405_v29 = vld [vmem:[%s570_s1 + $0xd4] ss:$8 sps:$4 sm:$0xff]   ;;  %v68_v41 = vrot.slane %v339_v19, %v67_v18 }
   0x9   :  { %v75_v23 = vrot.slane %v61_v20, %v67_v18  ;;  %v407_v30 = vld [vmem:[%s570_s1 + $0xd0] ss:$8 sps:$4 sm:$0xff]   ;;  %v408_v31 = vld [vmem:[%s570_s1 + $0xc4] ss:$8 sps:$4 sm:$0xff]   ;;  %v410_v32 = vld [vmem:[%s570_s1 + $0xc0] ss:$8 sps:$4 sm:$0xff]  }
   0xa   :  { %v411_v33 = vld [vmem:[%s570_s1 + $0xb4] ss:$8 sps:$4 sm:$0xff]   ;;  %v413_v34 = vld [vmem:[%s570_s1 + $0xb0] ss:$8 sps:$4 sm:$0xff]   ;;  %v414_v35 = vld [vmem:[%s570_s1 + $0xa4] ss:$8 sps:$4 sm:$0xff]  }
   0xb   :  { %243 = vmatpush1.bf16.msra.mxu0 %v383_v5  ;;  %270 = vmatprep.mubr.bf16.mxu0 %v75_v23  ;;  %v416_v36 = vld [vmem:[%s570_s1 + $0xa0] ss:$8 sps:$4 sm:$0xff]   ;;  %v417_v37 = vld [vmem:[%s570_s1 + $0x94] ss:$8 sps:$4 sm:$0xff]   ;;  %v419_v38 = vld [vmem:[%s570_s1 + $0x90] ss:$8 sps:$4 sm:$0xff]  }
   0xc   :  { %244 = vmatprep.subr.bf16.mxu0 %v384_v6  ;;  %v420_v39 = vld [vmem:[%s570_s1 + $0x84] ss:$8 sps:$4 sm:$0xff]   ;;  %v422_v40 = vld [vmem:[%s570_s1 + $0x80] ss:$8 sps:$4 sm:$0xff]   ;;  %v283_v42 = vsub.s32 0, %v487_v15  ;;  %v287_v44 = vsub.s32 1, %v487_v15 }
   0xd   :  { %v279_v43 = vld [vmem:[%s572_s2] sm:$0x3] }
   0xe   :  { %v293_v45 = vld [vmem:[%s573_s3] sm:$0x3]  ;;  %v284_v46 = vrot.slane %v279_v43, %v283_v42  ;;  %v288_v48 = vrot.slane %v279_v43, %v287_v44 }
   0xf   :  { %245 = vmatpush1.bf16.msra.mxu0 %v386_v7  ;;  %v298_v47 = vrot.slane %v293_v45, %v283_v42  ;;  %v302_v51 = vrot.slane %v293_v45, %v287_v44  ;;  %v372_v52 = vld.sshfl [vmem:[%s574_s4] sm:$0x33 pattern:$0x76325410] }
  0x10   :  { %246 = vmatprep.subr.bf16.mxu0 %v387_v8  ;;  %v318_v59 = vcombine.high %v372_v52, %v372_v52 }
  0x13   :  { %247 = vmatpush1.bf16.msra.mxu0 %v389_v12 }
  0x14   :  { %248 = vmatprep.subr.bf16.mxu0 %v390_v13 }
  0x17   :  { %249 = vmatpush1.bf16.msra.mxu0 %v392_v16 }
  0x18   :  { %250 = vmatprep.subr.bf16.mxu0 %v393_v17 }
  0x1b   :  { %251 = vmatpush1.bf16.msra.mxu0 %v395_v21 }
  0x1c   :  { %252 = vmatprep.subr.bf16.mxu0 %v396_v22 }
  0x1f   :  { %253 = vmatpush1.bf16.msra.mxu0 %v398_v24 }
  0x20   :  { %254 = vmatprep.subr.bf16.mxu0 %v399_v25 }
  0x23   :  { %255 = vmatpush2.bf16.msra.mxu0 %v401_v26 }
  0x24   :  { %256 = vmatprep.subr.bf16.mxu0 %v402_v27 }
  0x27   :  { %257 = vmatpush2.bf16.msra.mxu0 %v404_v28 }
  0x28   :  { %258 = vmatprep.subr.bf16.mxu0 %v405_v29 }
  0x2b   :  { %259 = vmatpush2.bf16.msra.mxu0 %v407_v30 }
  0x2c   :  { %260 = vmatprep.subr.bf16.mxu0 %v408_v31 }
  0x2f   :  { %261 = vmatpush2.bf16.msra.mxu0 %v410_v32 }
  0x30   :  { %262 = vmatprep.subr.bf16.mxu0 %v411_v33 }
  0x33   :  { %263 = vmatpush2.bf16.msra.mxu0 %v413_v34 }
  0x34   :  { %264 = vmatprep.subr.bf16.mxu0 %v414_v35 }
  0x37   :  { %265 = vmatpush2.bf16.msra.mxu0 %v416_v36 }
  0x38   :  { %266 = vmatprep.subr.bf16.mxu0 %v417_v37 }
  0x3b   :  { %267 = vmatpush2.bf16.msra.mxu0 %v419_v38 }
  0x3c   :  { %268 = vmatprep.subr.bf16.mxu0 %v420_v39 }
  0x3f   :  { %269 = vmatpush2.bf16.msra.mxu0 %v422_v40 }
  0x42   :  { %271 = vmatmul.mubr.bf16.vlgmr.msra.gmra.mxu0 %v68_v41 }
 0x102   :  { %v272_v49 = vpop.f32.mrf.mxu0 }
 0x103   :  { %v291_v50 = vmul.f32 %v284_v46, %v272_v49 }
 0x104   :  { %v274_v53 = vpop.f32.mrf.mxu0 }
 0x105   :  { %v305_v54 = vadd.f32 %v298_v47, %v291_v50  ;;  %v292_v55 = vmul.f32 %v288_v48, %v274_v53 }
 0x106   :  { %v276_v56 = vpop.f32.mrf.mxu0 }
 0x107   :  { %v307_v57 = vmax.f32 %v305_v54, 0.0  ;;  %v306_v58 = vadd.f32 %v302_v51, %v292_v55 }
 0x108   :  { %v277_v60 = vpop.f32.mrf.mxu0 }
 0x109   :  { %v308_v61 = vmax.f32 %v306_v58, 0.0  ;;  %v321_v62 = vadd.f32 %v372_v52, %v307_v57 }
 0x10b   :  { %v322_v63 = vadd.f32 %v318_v59, %v308_v61 }
 0x10d   :  { %v325_v0 = vcombine.low %v321_v62, %v322_v63 }
 0x10f   :  { %373 = vst.sshfl [vmem:[%s575_s5] sm:$0x33 pattern:$0x76325410] %v325_v0 }

// kernel: unet_forward.25
= control target key start
LH: loop header
LB: loop body
LE: loop exit
PB: predicated region body
PF: predicated region fallthrough
CT: control target
= control target key end

     0   :  { %vm1142_vm0 = vmmov 0   ;;  %s1416_s1 = inlined_call_operand.vmem [shape: bf16[1152,128], index: 1, kind: input, shape index: {}]   ;;  %s1417_s0 = inlined_call_operand.vmem [shape: bf16[8,1152], index: 0, kind: input, shape index: {}]   ;;  %s1418_s2 = inlined_call_operand.vmem [shape: f32[1,128], index: 2, kind: input, shape index: {}]   ;;  %s1419_s3 = inlined_call_operand.vmem [shape: f32[1,128], index: 3, kind: input, shape index: {}]   ;;  %s1420_s4 = inlined_call_operand.vmem [shape: f32[8,128], index: 4, kind: input, shape index: {}]   ;;  %s1421_s5 = inlined_call_operand.vmem [shape: f32[8,128], index: 5, kind: output, shape index: {}]  }
   0x1   :  { %v1060_v0 = vld [vmem:[%s1416_s1 + $0x78] sm:$0xff]   ;;  %v1064_v4 = vld [vmem:[%s1416_s1 + $0x70] sm:$0xff]   ;;  %v1068_v8 = vld [vmem:[%s1416_s1 + $0x68] sm:$0xff]  }
   0x2   :  { %v1061_v1 = vld [vmem:[%s1416_s1 + $0xf8] sm:$0xff]   ;;  %941 = vmatprep.subr.bf16.mxu0 %v1060_v0  ;;  %v1065_v5 = vld [vmem:[%s1416_s1 + $0xf0] sm:$0xff]   ;;  %v1069_v9 = vld [vmem:[%s1416_s1 + $0xe8] sm:$0xff]  }
   0x3   :  { %v1062_v2 = vld [vmem:[%s1416_s1 + $0x38] sm:$0xff]   ;;  %963 = vmatprep.subr.bf16.mxu1 %v1061_v1  ;;  %v1066_v6 = vld [vmem:[%s1416_s1 + $0x30] sm:$0xff]   ;;  %v1070_v10 = vld [vmem:[%s1416_s1 + $0x28] sm:$0xff]  }
   0x4   :  { %v1063_v3 = vld [vmem:[%s1416_s1 + $0xb8] sm:$0xff]   ;;  %942 = vmatpush3.bf16.msra.mxu0 %v1062_v2  ;;  %v1067_v7 = vld [vmem:[%s1416_s1 + $0xb0] sm:$0xff]   ;;  %v1071_v11 = vld [vmem:[%s1416_s1 + $0xa8] sm:$0xff]  }
   0x5   :  { %964 = vmatpush3.bf16.msra.mxu1 %v1063_v3  ;;  %943 = vmatprep.subr.bf16.mxu0 %v1064_v4  ;;  %v1072_v12 = vld [vmem:[%s1416_s1 + $0x60] sm:$0xff]   ;;  %v1076_v16 = vld [vmem:[%s1416_s1 + $0x58] sm:$0xff]   ;;  %v1080_v20 = vld [vmem:[%s1416_s1 + $0x50] sm:$0xff]  }
   0x6   :  { %965 = vmatprep.subr.bf16.mxu1 %v1065_v5  ;;  %v1073_v13 = vld [vmem:[%s1416_s1 + $0xe0] sm:$0xff]   ;;  %v1077_v17 = vld [vmem:[%s1416_s1 + $0xd8] sm:$0xff]   ;;  %v1081_v21 = vld [vmem:[%s1416_s1 + $0xd0] sm:$0xff]  }
   0x7   :  { %v1074_v14 = vld [vmem:[%s1416_s1 + $0x20] sm:$0xff]   ;;  %v1078_v18 = vld [vmem:[%s1416_s1 + $0x18] sm:$0xff]   ;;  %v1082_v22 = vld [vmem:[%s1416_s1 + $0x10] sm:$0xff]  }
   0x8   :  { %944 = vmatpush3.bf16.msra.mxu0 %v1066_v6  ;;  %v1075_v15 = vld [vmem:[%s1416_s1 + $0xa0] sm:$0xff]   ;;  %v1079_v19 = vld [vmem:[%s1416_s1 + $0x98] sm:$0xff]   ;;  %v1083_v23 = vld [vmem:[%s1416_s1 + $0x90] sm:$0xff]  }
   0x9   :  { %966 = vmatpush3.bf16.msra.mxu1 %v1067_v7  ;;  %945 = vmatprep.subr.bf16.mxu0 %v1068_v8  ;;  %v1084_v24 = vld [vmem:[%s1416_s1 + $0x48] sm:$0xff]   ;;  %v1088_v28 = vld [vmem:[%s1416_s1 + $0x40] sm:$0xff]   ;;  %v1096_v38 = vld [vmem:[%s1416_s1 + $0x178] sm:$0xff]  }
   0xa   :  { %967 = vmatprep.subr.bf16.mxu1 %v1069_v9  ;;  %v1085_v25 = vld [vmem:[%s1416_s1 + $0xc8] sm:$0xff]   ;;  %v1089_v29 = vld [vmem:[%s1416_s1 + $0xc0] sm:$0xff]   ;;  %v1097_v39 = vld [vmem:[%s1416_s1 + $0x138] sm:$0xff]  }
   0xb   :  { %v1086_v26 = vld [vmem:[%s1416_s1 + $0x8] sm:$0xff]   ;;  %v1090_v30 = vld [vmem:[%s1416_s1] sm:$0xff]   ;;  %v1098_v40 = vld [vmem:[%s1416_s1 + $0x1f8] sm:$0xff]  }
   0xc   :  { %946 = vmatpush3.bf16.msra.mxu0 %v1070_v10  ;;  %v1087_v27 = vld [vmem:[%s1416_s1 + $0x88] sm:$0xff]   ;;  %v1091_v31 = vld [vmem:[%s1416_s1 + $0x80] sm:$0xff]   ;;  %v1099_v41 = vld [vmem:[%s1416_s1 + $0x1b8] sm:$0xff]  }
   0xd   :  { %968 = vmatpush3.bf16.msra.mxu1 %v1071_v11  ;;  %947 = vmatprep.subr.bf16.mxu0 %v1072_v12  ;;  %v21_v32 = vld [vmem:[%s1417_s0] sm:$0xff]  ;;  %v22_v33 = vld [vmem:[%s1417_s0 + $0x8] sm:$0xff]  ;;  %v1100_v42 = vld [vmem:[%s1416_s1 + $0x170] sm:$0xff]  }
   0xe   :  { %969 = vmatprep.subr.bf16.mxu1 %v1073_v13  ;;  %v858_v34 = vcombine.low %v21_v32, %v21_v32  ;;  %v859_v35 = vcombine.high %v21_v32, %v21_v32  ;;  %v860_v36 = vcombine.low %v22_v33, %v22_v33  ;;  %v861_v37 = vcombine.high %v22_v33, %v22_v33  ;;  %v1101_v43 = vld [vmem:[%s1416_s1 + $0x130] sm:$0xff]   ;;  %v1104_v46 = vld [vmem:[%s1416_s1 + $0x168] sm:$0xff]   ;;  %v1108_v50 = vld [vmem:[%s1416_s1 + $0x160] sm:$0xff]  }
   0xf   :  { %v1102_v44 = vld [vmem:[%s1416_s1 + $0x1f0] sm:$0xff]   ;;  %v1105_v47 = vld [vmem:[%s1416_s1 + $0x128] sm:$0xff]   ;;  %v1109_v51 = vld [vmem:[%s1416_s1 + $0x120] sm:$0xff]   ;;  %v1141_v13 = vmov 0.0  }
  0x10   :  { %948 = vmatpush3.bf16.msra.mxu0 %v1074_v14  ;;  %666 = vmatprep.mubr.bf16.mxu0 %v859_v35  ;;  %v1103_v45 = vld [vmem:[%s1416_s1 + $0x1b0] sm:$0xff]   ;;  %v1106_v48 = vld [vmem:[%s1416_s1 + $0x1e8] sm:$0xff]   ;;  %v1110_v52 = vld [vmem:[%s1416_s1 + $0x1e0] sm:$0xff]  }
  0x11   :  { %970 = vmatpush3.bf16.msra.mxu1 %v1075_v15  ;;  %949 = vmatprep.subr.bf16.mxu0 %v1076_v16  ;;  %v1107_v49 = vld [vmem:[%s1416_s1 + $0x1a8] sm:$0xff]   ;;  %v1111_v53 = vld [vmem:[%s1416_s1 + $0x1a0] sm:$0xff]   ;;  %v1112_v54 = vld [vmem:[%s1416_s1 + $0x158] sm:$0xff]  }
  0x12   :  { %971 = vmatprep.subr.bf16.mxu1 %v1077_v17  ;;  %706 = vmatprep.mubr.bf16.mxu1 %v861_v37  ;;  %v1113_v55 = vld [vmem:[%s1416_s1 + $0x118] sm:$0xff]   ;;  %v1116_v58 = vld [vmem:[%s1416_s1 + $0x150] sm:$0xff]   ;;  %v1120_v62 = vld [vmem:[%s1416_s1 + $0x148] sm:$0xff]  }
  0x13   :  { %v1114_v56 = vld [vmem:[%s1416_s1 + $0x1d8] sm:$0xff]   ;;  %v1117_v59 = vld [vmem:[%s1416_s1 + $0x110] sm:$0xff]   ;;  %v1121_v63 = vld [vmem:[%s1416_s1 + $0x108] sm:$0xff]  }
  0x14   :  { %950 = vmatpush3.bf16.msra.mxu0 %v1078_v18  ;;  %v1115_v57 = vld [vmem:[%s1416_s1 + $0x198] sm:$0xff]   ;;  %v1118_v60 = vld [vmem:[%s1416_s1 + $0x1d0] sm:$0xff]   ;;  %v1122_v0 = vld [vmem:[%s1416_s1 + $0x1c8] sm:$0xff]  }
  0x15   :  { %972 = vmatpush3.bf16.msra.mxu1 %v1079_v19  ;;  %951 = vmatprep.subr.bf16.mxu0 %v1080_v20  ;;  %v1119_v61 = vld [vmem:[%s1416_s1 + $0x190] sm:$0xff]   ;;  %v1123_v1 = vld [vmem:[%s1416_s1 + $0x188] sm:$0xff]   ;;  %v1124_v2 = vld [vmem:[%s1416_s1 + $0x140] sm:$0xff]  }
  0x16   :  { %973 = vmatprep.subr.bf16.mxu1 %v1081_v21  ;;  %v1125_v3 = vld [vmem:[%s1416_s1 + $0x100] sm:$0xff]   ;;  %v23_v5 = vld [vmem:[%s1417_s0 + $0x10] sm:$0xff]  ;;  %v24_v9 = vld [vmem:[%s1417_s0 + $0x18] sm:$0xff] }
  0x17   :  { %v1126_v4 = vld [vmem:[%s1416_s1 + $0x1c0] sm:$0xff]   ;;  %v863_v6 = vcombine.high %v23_v5, %v23_v5  ;;  %v862_v8 = vcombine.low %v23_v5, %v23_v5  ;;  %v864_v10 = vcombine.low %v24_v9, %v24_v9  ;;  %v865_v11 = vcombine.high %v24_v9, %v24_v9  ;;  %v1132_v12 = vld [vmem:[%s1416_s1 + $0x238] sm:$0xff]   ;;  %v1133_v14 = vld [vmem:[%s1416_s1 + $0x230] sm:$0xff]  }
  0x18   :  { %952 = vmatpush3.bf16.msra.mxu0 %v1082_v22  ;;  %v1129_v7 = vld [vmem:[%s1416_s1 + $0x180] sm:$0xff]   ;;  %v1134_v15 = vld [vmem:[%s1416_s1 + $0x228] sm:$0xff]   ;;  %v1136_v17 = vld [vmem:[%s1416_s1 + $0x218] sm:$0xff]  }
  0x19   :  { %974 = vmatpush3.bf16.msra.mxu1 %v1083_v23  ;;  %953 = vmatprep.subr.bf16.mxu0 %v1084_v24  ;;  %v1135_v16 = vld [vmem:[%s1416_s1 + $0x220] sm:$0xff]   ;;  %v1137_v18 = vld [vmem:[%s1416_s1 + $0x210] sm:$0xff]   ;;  %v1138_v19 = vld [vmem:[%s1416_s1 + $0x208] sm:$0xff]  }
  0x1a   :  { %975 = vmatprep.subr.bf16.mxu1 %v1085_v25  ;;  %v1139_v20 = vld [vmem:[%s1416_s1 + $0x200] sm:$0xff]  }
  0x1b   :  { %v1140_v21 = vld [vmem:[%s1417_s0 + $0x20] ss:$0 sps:$4 sm:$0xff]  }
  0x1c   :  { %954 = vmatpush3.bf16.msra.mxu0 %v1086_v26 }
  0x1d   :  { %976 = vmatpush3.bf16.msra.mxu1 %v1087_v27  ;;  %955 = vmatprep.subr.bf16.mxu0 %v1088_v28 }
  0x1e   :  { %977 = vmatprep.subr.bf16.mxu1 %v1089_v29 }
  0x20   :  { %956 = vmatpush3.bf16.msra.mxu0 %v1090_v30 }
  0x21   :  { %978 = vmatpush3.bf16.msra.mxu1 %v1091_v31  ;;  %985 = vmatprep.subr.bf16.mxu0 %v1096_v38 }
  0x22   :  { %1007 = vmatprep.subr.bf16.mxu1 %v1098_v40 }
  0x23   :  { %667 = vmatmul.mubr.bf16.vlgmr.msra.gmra.mxu0 %v858_v34 }
  0x24   :  { %707 = vmatmul.mubr.bf16.vlgmr.msra.gmra.mxu1 %v860_v36  ;;  %986 = vmatpush3.bf16.msra.mxu0 %v1097_v39 }
  0x25   :  { %1008 = vmatpush3.bf16.msra.mxu1 %v1099_v41  ;;  %987 = vmatprep.subr.bf16.mxu0 %v1100_v42 }
  0x26   :  { %1009 = vmatprep.subr.bf16.mxu1 %v1102_v44  ;;  %746 = vmatprep.mubr.bf16.mxu0 %v863_v6 }
  0x27   :  { %786 = vmatprep.mubr.bf16.mxu1 %v865_v11 }
  0x28   :  { %988 = vmatpush3.bf16.msra.mxu0 %v1101_v43 }
  0x29   :  { %1010 = vmatpush3.bf16.msra.mxu1 %v1103_v45  ;;  %989 = vmatprep.subr.bf16.mxu0 %v1104_v46  ;;  %v939_v46 = vld [vmem:[%s1418_s2] ss:$0 sm:$0xff] }
  0x2a   :  { %1011 = vmatprep.subr.bf16.mxu1 %v1106_v48  ;;  %v940_v48 = vld [vmem:[%s1419_s3] ss:$0 sm:$0xff] }
  0x2c   :  { %990 = vmatpush3.bf16.msra.mxu0 %v1105_v47 }
  0x2d   :  { %1012 = vmatpush3.bf16.msra.mxu1 %v1107_v49  ;;  %991 = vmatprep.subr.bf16.mxu0 %v1108_v50 }
  0x2e   :  { %1013 = vmatprep.subr.bf16.mxu1 %v1110_v52 }
  0x30   :  { %992 = vmatpush3.bf16.msra.mxu0 %v1109_v51 }
  0x31   :  { %1014 = vmatpush3.bf16.msra.mxu1 %v1111_v53  ;;  %993 = vmatprep.subr.bf16.mxu0 %v1112_v54  ;;  %v851_v53 = vld [vmem:[%s1420_s4] sm:$0xff] }
  0x32   :  { %1015 = vmatprep.subr.bf16.mxu1 %v1114_v56 }
  0x34   :  { %994 = vmatpush3.bf16.msra.mxu0 %v1113_v55 }
  0x35   :  { %1016 = vmatpush3.bf16.msra.mxu1 %v1115_v57  ;;  %995 = vmatprep.subr.bf16.mxu0 %v1116_v58 }
  0x36   :  { %1017 = vmatprep.subr.bf16.mxu1 %v1118_v60 }
  0x38   :  { %996 = vmatpush3.bf16.msra.mxu0 %v1117_v59 }
  0x39   :  { %1018 = vmatpush3.bf16.msra.mxu1 %v1119_v61  ;;  %997 = vmatprep.subr.bf16.mxu0 %v1120_v62 }
  0x3a   :  { %1019 = vmatprep.subr.bf16.mxu1 %v1122_v0 }
  0x3c   :  { %998 = vmatpush3.bf16.msra.mxu0 %v1121_v63 }
  0x3d   :  { %1020 = vmatpush3.bf16.msra.mxu1 %v1123_v1  ;;  %999 = vmatprep.subr.bf16.mxu0 %v1124_v2 }
  0x3e   :  { %1021 = vmatprep.subr.bf16.mxu1 %v1126_v4 }
  0x40   :  { %1000 = vmatpush3.bf16.msra.mxu0 %v1125_v3 }
  0x41   :  { %1022 = vmatpush3.bf16.msra.mxu1 %v1129_v7  ;;  %1038 = vmatprep.subr.bf16.mxu0 %v1141_v13 }
  0x43   :  { %747 = vmatmul.mubr.bf16.vlgmr.msra.gmra.mxu0 %v862_v8 }
  0x44   :  { %1039 = vmatpush3.bf16.msra.mxu0 %v1132_v12  ;;  %787 = vmatmul.mubr.bf16.vlgmr.msra.gmra.mxu1 %v864_v10 }
  0x45   :  { %1040 = vmatprep.subr.bf16.mxu0 %v1141_v13  ;;  %1054 = vmatprep.mubr.msk.bf16.mxu0 %vm1142_vm0, %v1141_v13 }
  0x48   :  { %1041 = vmatpush3.bf16.msra.mxu0 %v1133_v14 }
  0x49   :  { %1042 = vmatprep.subr.bf16.mxu0 %v1141_v13 }
  0x4c   :  { %1043 = vmatpush3.bf16.msra.mxu0 %v1134_v15 }
  0x4d   :  { %1044 = vmatprep.subr.bf16.mxu0 %v1141_v13 }
  0x50   :  { %1045 = vmatpush3.bf16.msra.mxu0 %v1135_v16 }
  0x51   :  { %1046 = vmatprep.subr.bf16.mxu0 %v1141_v13 }
  0x54   :  { %1047 = vmatpush3.bf16.msra.mxu0 %v1136_v17 }
  0x55   :  { %1048 = vmatprep.subr.bf16.mxu0 %v1141_v13 }
  0x58   :  { %1049 = vmatpush3.bf16.msra.mxu0 %v1137_v18 }
  0x59   :  { %1050 = vmatprep.subr.bf16.mxu0 %v1141_v13 }
  0x5c   :  { %1051 = vmatpush3.bf16.msra.mxu0 %v1138_v19 }
  0x5d   :  { %1052 = vmatprep.subr.bf16.mxu0 %v1141_v13 }
  0x60   :  { %1053 = vmatpush3.bf16.msra.mxu0 %v1139_v20 }
  0x63   :  { %1055 = vmatmul.mubr.bf16.vlgmr.msra.gmra.mxu0 %v1140_v21 }
  0xe3   :  { %v957_v22 = vpop.f32.mrf.mxu0 }
  0xe4   :  { %v979_v23 = vpop.f32.mrf.mxu1 }
  0xe5   :  { %v958_v24 = vpop.f32.mrf.mxu0 }
  0xe6   :  { %v980_v25 = vpop.f32.mrf.mxu1  ;;  %v959_v38 = vadd.f32 %v958_v24, %v957_v22 }
  0xe7   :  { %v960_v26 = vpop.f32.mrf.mxu0  ;;  %v981_v39 = vadd.f32 %v980_v25, %v979_v23 }
  0xe8   :  { %v982_v27 = vpop.f32.mrf.mxu1 }
  0xe9   :  { %v961_v28 = vpop.f32.mrf.mxu0  ;;  %v709_v41 = vadd.f32 %v981_v39, %v959_v38 }
  0xea   :  { %v983_v29 = vpop.f32.mrf.mxu1 }
 0x103   :  { %v1001_v30 = vpop.f32.mrf.mxu0 }
 0x104   :  { %v1023_v31 = vpop.f32.mrf.mxu1 }
 0x105   :  { %v1002_v32 = vpop.f32.mrf.mxu0 }
 0x106   :  { %v1024_v33 = vpop.f32.mrf.mxu1  ;;  %v1003_v40 = vadd.f32 %v1002_v32, %v1001_v30 }
 0x107   :  { %v1004_v34 = vpop.f32.mrf.mxu0  ;;  %v1025_v43 = vadd.f32 %v1024_v33, %v1023_v31 }
 0x108   :  { %v1026_v35 = vpop.f32.mrf.mxu1  ;;  %v749_v42 = vadd.f32 %v1003_v40, %v709_v41 }
 0x109   :  { %v1005_v36 = vpop.f32.mrf.mxu0 }
 0x10a   :  { %v1027_v37 = vpop.f32.mrf.mxu1  ;;  %v789_v44 = vadd.f32 %v1025_v43, %v749_v42 }
 0x123   :  { %v828_v45 = vpop.f32.mrf.mxu0 }
 0x124   :  { %v829_v47 = vadd.f32 %v828_v45, %v789_v44 }
 0x125   :  { %v1056_v49 = vpop.f32.mrf.mxu0 }
 0x126   :  { %v841_v50 = vmul.f32 %v939_v46, %v829_v47 }
 0x127   :  { %v831_v51 = vpop.f32.mrf.mxu0 }
 0x128   :  { %v849_v52 = vadd.f32 %v940_v48, %v841_v50 }
 0x129   :  { %v1057_v54 = vpop.f32.mrf.mxu0 }
 0x12a   :  { %v850_v55 = vmax.f32 %v849_v52, 0.0 }
 0x12c   :  { %v852_v56 = vadd.f32 %v851_v53, %v850_v55 }
 0x12e   :  { %853 = vst [vmem:[%s1421_s5] sm:$0xff] %v852_v56 }

// kernel: unet_forward.26
= control target key start
LH: loop header
LB: loop body
LE: loop exit
PB: predicated region body
PF: predicated region fallthrough
CT: control target
= control target key end

     0   :  { %vm371_vm0 = vcmask 523264   ;;  %s945_s1 = inlined_call_operand.vmem [shape: bf16[576,64], index: 1, kind: input, shape index: {}]   ;;  %s946_s0 = inlined_call_operand.vmem [shape: bf16[32,576], index: 0, kind: input, shape index: {}]   ;;  %s947_s2 = inlined_call_operand.vmem [shape: f32[1,64], index: 2, kind: input, shape index: {}]   ;;  %s948_s3 = inlined_call_operand.vmem [shape: f32[1,64], index: 3, kind: input, shape index: {}]   ;;  %s949_s4 = inlined_call_operand.vmem [shape: f32[32,64], index: 4, kind: input, shape index: {}]   ;;  %s950_s5 = inlined_call_operand.vmem [shape: f32[32,64], index: 5, kind: output, shape index: {}]  }
   0x1   :  { %v691_v0 = vld [vmem:[%s945_s1 + $0x78] sm:$0xff]   ;;  %v695_v4 = vld [vmem:[%s945_s1 + $0x70] sm:$0xff]   ;;  %v699_v8 = vld [vmem:[%s945_s1 + $0x68] sm:$0xff]  }
   0x2   :  { %v692_v1 = vld [vmem:[%s945_s1 + $0xf8] sm:$0xff]   ;;  %617 = vmatprep.subr.bf16.mxu0 %v691_v0  ;;  %v696_v5 = vld [vmem:[%s945_s1 + $0xf0] sm:$0xff]   ;;  %v700_v9 = vld [vmem:[%s945_s1 + $0xe8] sm:$0xff]  }
   0x3   :  { %v693_v2 = vld [vmem:[%s945_s1 + $0x38] sm:$0xff]   ;;  %645 = vmatprep.subr.bf16.mxu1 %v692_v1  ;;  %v697_v6 = vld [vmem:[%s945_s1 + $0x30] sm:$0xff]   ;;  %v701_v10 = vld [vmem:[%s945_s1 + $0x28] sm:$0xff]  }
   0x4   :  { %v694_v3 = vld [vmem:[%s945_s1 + $0xb8] sm:$0xff]   ;;  %618 = vmatpush3.bf16.msra.mxu0 %v693_v2  ;;  %v698_v7 = vld [vmem:[%s945_s1 + $0xb0] sm:$0xff]   ;;  %v702_v11 = vld [vmem:[%s945_s1 + $0xa8] sm:$0xff]  }
   0x5   :  { %646 = vmatpush3.bf16.msra.mxu1 %v694_v3  ;;  %619 = vmatprep.subr.bf16.mxu0 %v695_v4  ;;  %v703_v12 = vld [vmem:[%s945_s1 + $0x60] sm:$0xff]   ;;  %v707_v16 = vld [vmem:[%s945_s1 + $0x58] sm:$0xff]   ;;  %v711_v20 = vld [vmem:[%s945_s1 + $0x50] sm:$0xff]  }
   0x6   :  { %647 = vmatprep.subr.bf16.mxu1 %v696_v5  ;;  %v704_v13 = vld [vmem:[%s945_s1 + $0xe0] sm:$0xff]   ;;  %v708_v17 = vld [vmem:[%s945_s1 + $0xd8] sm:$0xff]   ;;  %v712_v21 = vld [vmem:[%s945_s1 + $0xd0] sm:$0xff]  }
   0x7   :  { %v705_v14 = vld [vmem:[%s945_s1 + $0x20] sm:$0xff]   ;;  %v709_v18 = vld [vmem:[%s945_s1 + $0x18] sm:$0xff]   ;;  %v713_v22 = vld [vmem:[%s945_s1 + $0x10] sm:$0xff]  }
   0x8   :  { %620 = vmatpush3.bf16.msra.mxu0 %v697_v6  ;;  %v706_v15 = vld [vmem:[%s945_s1 + $0xa0] sm:$0xff]   ;;  %v710_v19 = vld [vmem:[%s945_s1 + $0x98] sm:$0xff]   ;;  %v714_v23 = vld [vmem:[%s945_s1 + $0x90] sm:$0xff]  }
   0x9   :  { %648 = vmatpush3.bf16.msra.mxu1 %v698_v7  ;;  %621 = vmatprep.subr.bf16.mxu0 %v699_v8  ;;  %v715_v24 = vld [vmem:[%s945_s1 + $0x48] sm:$0xff]   ;;  %v719_v28 = vld [vmem:[%s945_s1 + $0x40] sm:$0xff]   ;;  %v729_v36 = vld [vmem:[%s945_s1 + $0x118] sm:$0xff]  }
   0xa   :  { %649 = vmatprep.subr.bf16.mxu1 %v700_v9  ;;  %v716_v25 = vld [vmem:[%s945_s1 + $0xc8] sm:$0xff]   ;;  %v720_v29 = vld [vmem:[%s945_s1 + $0xc0] sm:$0xff]   ;;  %v730_v37 = vld [vmem:[%s945_s1 + $0x110] sm:$0xff]  }
   0xb   :  { %v717_v26 = vld [vmem:[%s945_s1 + $0x8] sm:$0xff]   ;;  %v721_v30 = vld [vmem:[%s945_s1] sm:$0xff]  }
   0xc   :  { %622 = vmatpush3.bf16.msra.mxu0 %v701_v10  ;;  %v718_v27 = vld [vmem:[%s945_s1 + $0x88] sm:$0xff]   ;;  %v722_v31 = vld [vmem:[%s945_s1 + $0x80] sm:$0xff]  }
   0xd   :  { %650 = vmatpush3.bf16.msra.mxu1 %v702_v11  ;;  %623 = vmatprep.subr.bf16.mxu0 %v703_v12  ;;  %v723_v32 = vld [vmem:[%s946_s0] ss:$20 sps:$4 sm:$0xff]   ;;  %v725_v33 = vld [vmem:[%s946_s0 + $0x4] ss:$20 sps:$4 sm:$0xff]   ;;  %v726_v34 = vld [vmem:[%s946_s0 + $0x8] ss:$20 sps:$4 sm:$0xff]  }
   0xe   :  { %651 = vmatprep.subr.bf16.mxu1 %v704_v13  ;;  %v728_v35 = vld [vmem:[%s946_s0 + $0xc] ss:$20 sps:$4 sm:$0xff]   ;;  %410 = vmatprep.mubr.bf16.mxu0 %v725_v33  ;;  %v733_v39 = vld [vmem:[%s946_s0 + $0x34] ss:$20 sps:$4 sm:$0xff]   ;;  %v736_v42 = vld [vmem:[%s946_s0 + $0x30] ss:$20 sps:$4 sm:$0xff]  }
   0xf   :  { %459 = vmatprep.mubr.bf16.mxu1 %v728_v35  ;;  %v731_v38 = vld [vmem:[%s946_s0 + $0x2c] ss:$20 sps:$4 sm:$0xff]   ;;  %v735_v40 = vld [vmem:[%s946_s0 + $0x28] ss:$20 sps:$4 sm:$0xff]   ;;  %v739_v43 = vld [vmem:[%s946_s0 + $0x10] ss:$20 sps:$4 sm:$0xff]  }
  0x10   :  { %624 = vmatpush3.bf16.msra.mxu0 %v705_v14  ;;  %v737_v41 = vld [vmem:[%s945_s1 + $0x108] sm:$0xff]   ;;  %v738_v44 = vld [vmem:[%s945_s1 + $0x100] sm:$0xff]  }
  0x11   :  { %652 = vmatpush3.bf16.msra.mxu1 %v706_v15  ;;  %625 = vmatprep.subr.bf16.mxu0 %v707_v16  ;;  %v740_v45 = vld [vmem:[%s946_s0 + $0x38] ss:$20 sps:$4 sm:$0xff]   ;;  %v615_v6 = vld [vmem:[%s947_s2] ss:$0 sm:$0xff] }
  0x12   :  { %653 = vmatprep.subr.bf16.mxu1 %v708_v17  ;;  %v616_v11 = vld [vmem:[%s948_s3] ss:$0 sm:$0xff] }
  0x14   :  { %626 = vmatpush3.bf16.msra.mxu0 %v709_v18 }
  0x15   :  { %654 = vmatpush3.bf16.msra.mxu1 %v710_v19  ;;  %627 = vmatprep.subr.bf16.mxu0 %v711_v20 }
  0x16   :  { %655 = vmatprep.subr.bf16.mxu1 %v712_v21  ;;  %v553_v21 = vld [vmem:[%s949_s4 + $0x10] sm:$0xff] }
  0x18   :  { %628 = vmatpush3.bf16.msra.mxu0 %v713_v22 }
  0x19   :  { %656 = vmatpush3.bf16.msra.mxu1 %v714_v23  ;;  %629 = vmatprep.subr.bf16.mxu0 %v715_v24 }
  0x1a   :  { %657 = vmatprep.subr.bf16.mxu1 %v716_v25 }
  0x1c   :  { %630 = vmatpush3.bf16.msra.mxu0 %v717_v26 }
  0x1d   :  { %658 = vmatpush3.bf16.msra.mxu1 %v718_v27  ;;  %631 = vmatprep.subr.bf16.mxu0 %v719_v28  ;;  %v551_v27 = vld [vmem:[%s949_s4] sm:$0xff] }
  0x1e   :  { %659 = vmatprep.subr.bf16.mxu1 %v720_v29 }
  0x20   :  { %632 = vmatpush3.bf16.msra.mxu0 %v721_v30 }
  0x21   :  { %660 = vmatpush3.bf16.msra.mxu1 %v722_v31  ;;  %679 = vmatprep.subr.bf16.mxu0 %v729_v36 }
  0x23   :  { %411 = vmatmul.mubr.bf16.vlgmr.msra.gmra.mxu0 %v723_v32  ;;  %v554_v32 = vld [vmem:[%s949_s4 + $0x18] sm:$0xff] }
  0x24   :  { %460 = vmatmul.mubr.bf16.vlgmr.msra.gmra.mxu1 %v726_v34  ;;  %680 = vmatpush3.bf16.msra.mxu0 %v729_v36  ;;  %v552_v36 = vld [vmem:[%s949_s4 + $0x8] sm:$0xff] }
  0x25   :  { %681 = vmatprep.subr.bf16.mxu0 %v730_v37  ;;  %418 = vmatprep.mubr.bf16.mxu0 %v731_v38 }
  0x26   :  { %467 = vmatprep.mubr.bf16.mxu1 %v733_v39 }
  0x28   :  { %682 = vmatpush3.bf16.msra.mxu0 %v730_v37 }
  0x29   :  { %683 = vmatprep.subr.bf16.mxu0 %v737_v41 }
  0x2b   :  { %419 = vmatmul.mubr.bf16.gmra.mxu0 %v735_v40 }
  0x2c   :  { %468 = vmatmul.mubr.bf16.gmra.mxu1 %v736_v42  ;;  %687 = vmatprep.mubr.msk.bf16.mxu0 %vm371_vm0, %v739_v43 }
  0x2d   :  { %684 = vmatpush3.bf16.msra.mxu0 %v737_v41 }
  0x2e   :  { %685 = vmatprep.subr.bf16.mxu0 %v738_v44 }
  0x31   :  { %686 = vmatpush3.bf16.msra.mxu0 %v738_v44 }
  0x34   :  { %688 = vmatmul.mubr.msk.bf16.vlgmr.msra.gmra.mxu0 %vm371_vm0, %v740_v45 }
  0xe3   :  { %v633_v46 = vpop.f32.mrf.mxu0 }
  0xe4   :  { %v661_v47 = vpop.f32.mrf.mxu1 }
  0xe5   :  { %v634_v48 = vpop.f32.mrf.mxu0 }
  0xe6   :  { %v662_v49 = vpop.f32.mrf.mxu1  ;;  %v635_v62 = vadd.f32 %v634_v48, %v633_v46 }
  0xe7   :  { %v636_v50 = vpop.f32.mrf.mxu0  ;;  %v663_v63 = vadd.f32 %v662_v49, %v661_v47 }
  0xe8   :  { %v664_v51 = vpop.f32.mrf.mxu1 }
  0xe9   :  { %v637_v52 = vpop.f32.mrf.mxu0  ;;  %v462_v10 = vadd.f32 %v663_v63, %v635_v62 }
  0xea   :  { %v665_v53 = vpop.f32.mrf.mxu1  ;;  %v638_v7 = vadd.f32 %v637_v52, %v636_v50 }
  0xeb   :  { %v639_v54 = vpop.f32.mrf.mxu0  ;;  %v666_v8 = vadd.f32 %v665_v53, %v664_v51 }
  0xec   :  { %v667_v55 = vpop.f32.mrf.mxu1 }
  0xed   :  { %v640_v56 = vpop.f32.mrf.mxu0  ;;  %v465_v20 = vadd.f32 %v666_v8, %v638_v7 }
  0xee   :  { %v668_v57 = vpop.f32.mrf.mxu1  ;;  %v641_v58 = vadd.f32 %v640_v56, %v639_v54 }
  0xef   :  { %v669_v59 = vadd.f32 %v668_v57, %v667_v55  ;;  %v642_v60 = vpop.f32.mrf.mxu0 }
  0xf0   :  { %v670_v61 = vpop.f32.mrf.mxu1 }
  0xf1   :  { %v643_v0 = vpop.f32.mrf.mxu0  ;;  %v470_v4 = vadd.f32 %v669_v59, %v641_v58 }
  0xf2   :  { %v671_v1 = vpop.f32.mrf.mxu1  ;;  %v644_v2 = vadd.f32 %v643_v0, %v642_v60 }
  0xf3   :  { %v672_v3 = vadd.f32 %v671_v1, %v670_v61 }
  0xf4   :  { %v689_v5 = vpop.f32.mrf.mxu0 }
  0xf5   :  { %v519_v9 = vadd.f32 %v689_v5, %v470_v4  ;;  %v473_v15 = vadd.f32 %v672_v3, %v644_v2 }
  0xf6   :  { %v510_v12 = vpop.f32.mrf.mxu0 }
  0xf7   :  { %v534_v13 = vmul.f32 %v615_v6, %v519_v9  ;;  %v511_v14 = vadd.f32 %v510_v12, %v462_v10 }
  0xf8   :  { %v690_v16 = vpop.f32.mrf.mxu0 }
  0xf9   :  { %v545_v17 = vadd.f32 %v616_v11, %v534_v13  ;;  %v532_v18 = vmul.f32 %v615_v6, %v511_v14  ;;  %v522_v19 = vadd.f32 %v690_v16, %v473_v15 }
  0xfa   :  { %v513_v22 = vpop.f32.mrf.mxu0 }
  0xfb   :  { %v549_v23 = vmax.f32 %v545_v17, 0.0  ;;  %v543_v24 = vadd.f32 %v616_v11, %v532_v18  ;;  %v535_v25 = vmul.f32 %v615_v6, %v522_v19  ;;  %v514_v26 = vadd.f32 %v513_v22, %v465_v20 }
  0xfd   :  { %v557_v28 = vadd.f32 %v553_v21, %v549_v23  ;;  %v547_v29 = vmax.f32 %v543_v24, 0.0  ;;  %v546_v30 = vadd.f32 %v616_v11, %v535_v25  ;;  %v533_v31 = vmul.f32 %v615_v6, %v514_v26 }
  0xff   :  { %561 = vst.msk [vmem:[%s950_s5 + $0x10] sm:$0xff] %vm371_vm0, %v557_v28  ;;  %v555_v33 = vadd.f32 %v551_v27, %v547_v29  ;;  %v550_v34 = vmax.f32 %v546_v30, 0.0  ;;  %v544_v35 = vadd.f32 %v616_v11, %v533_v31 }
 0x101   :  { %559 = vst.msk [vmem:[%s950_s5] sm:$0xff] %vm371_vm0, %v555_v33  ;;  %v558_v37 = vadd.f32 %v554_v32, %v550_v34  ;;  %v548_v38 = vmax.f32 %v544_v35, 0.0 }
 0x103   :  { %562 = vst.msk [vmem:[%s950_s5 + $0x18] sm:$0xff] %vm371_vm0, %v558_v37  ;;  %v556_v39 = vadd.f32 %v552_v36, %v548_v38 }
 0x105   :  { %560 = vst.msk [vmem:[%s950_s5 + $0x8] sm:$0xff] %vm371_vm0, %v556_v39 }

// kernel: unet_forward.27
= control target key start
LH: loop header
LB: loop body
LE: loop exit
PB: predicated region body
PF: predicated region fallthrough
CT: control target
= control target key end

     0   :  { %vm318_vm0 = vcmask 261120   ;;  %vm537_vm1 = vcmask 31744   ;;  %s1023_s1 = inlined_call_operand.vmem [shape: bf16[288,4], index: 1, kind: input, shape index: {}]   ;;  %s1024_s0 = inlined_call_operand.vmem [shape: bf16[128,288], index: 0, kind: input, shape index: {}]   ;;  %s1025_s2 = inlined_call_operand.vmem [shape: f32[1,4], index: 2, kind: input, shape index: {}]   ;;  %s1026_s3 = inlined_call_operand.vmem [shape: f32[128,4], index: 3, kind: output, shape index: {}]  }
   0x1   :  { %v719_v0 = vld [vmem:[%s1023_s1 + $0x78] sm:$0xff]   ;;  %v721_v2 = vld [vmem:[%s1023_s1 + $0x70] sm:$0xff]   ;;  %v723_v4 = vld [vmem:[%s1023_s1 + $0x68] sm:$0xff]  }
   0x2   :  { %v720_v1 = vld [vmem:[%s1023_s1 + $0x38] sm:$0xff]   ;;  %609 = vmatprep.subr.bf16.mxu0 %v719_v0  ;;  %703 = vmatprep.subr.bf16.mxu1 %v719_v0  ;;  %v722_v3 = vld [vmem:[%s1023_s1 + $0x30] sm:$0xff]   ;;  %v724_v5 = vld [vmem:[%s1023_s1 + $0x28] sm:$0xff]  }
   0x3   :  { %610 = vmatpush3.bf16.msra.mxu0 %v720_v1  ;;  %711 = vmatpush3.bf16.msra.mxu1 %v720_v1  ;;  %v725_v6 = vld [vmem:[%s1023_s1 + $0x60] sm:$0xff]   ;;  %v727_v8 = vld [vmem:[%s1023_s1 + $0x58] sm:$0xff]   ;;  %v729_v10 = vld [vmem:[%s1023_s1 + $0x50] sm:$0xff]  }
   0x4   :  { %611 = vmatprep.subr.bf16.mxu0 %v721_v2  ;;  %704 = vmatprep.subr.bf16.mxu1 %v721_v2  ;;  %v726_v7 = vld [vmem:[%s1023_s1 + $0x20] sm:$0xff]   ;;  %v728_v9 = vld [vmem:[%s1023_s1 + $0x18] sm:$0xff]   ;;  %v730_v13 = vld [vmem:[%s1023_s1 + $0x10] sm:$0xff]  }
   0x5   :  { %v737_v11 = vld [vmem:[%s1024_s0 + $0x4] ss:$12 sps:$4 sm:$0xff]   ;;  %v740_v12 = vld [vmem:[%s1024_s0 + $0x94] ss:$12 sps:$4 sm:$0xff]   ;;  %v731_v14 = vld [vmem:[%s1023_s1 + $0x48] sm:$0xff]  }
   0x6   :  { %375 = vmatprep.mubr.bf16.mxu0 %v737_v11  ;;  %423 = vmatprep.mubr.bf16.mxu1 %v740_v12  ;;  %v732_v15 = vld [vmem:[%s1023_s1 + $0x8] sm:$0xff]   ;;  %v733_v16 = vld [vmem:[%s1023_s1 + $0x40] sm:$0xff]   ;;  %v738_v20 = vld [vmem:[%s1024_s0 + $0x90] ss:$12 sps:$4 sm:$0xff]  }
   0x7   :  { %612 = vmatpush3.bf16.msra.mxu0 %v722_v3  ;;  %712 = vmatpush3.bf16.msra.mxu1 %v722_v3  ;;  %v734_v17 = vld [vmem:[%s1023_s1] sm:$0xff]   ;;  %v741_v19 = vld [vmem:[%s1023_s1 + $0x88] sm:$0xff]   ;;  %v752_v28 = vld [vmem:[%s1024_s0 + $0x30] ss:$12 sps:$4 sm:$0xff]  }
   0x8   :  { %613 = vmatprep.subr.bf16.mxu0 %v723_v4  ;;  %705 = vmatprep.subr.bf16.mxu1 %v723_v4  ;;  %v735_v18 = vld [vmem:[%s1024_s0] ss:$12 sps:$4 sm:$0xff]   ;;  %v742_v21 = vld [vmem:[%s1024_s0 + $0x1c] ss:$12 sps:$4 sm:$0xff]   ;;  %v746_v24 = vld [vmem:[%s1024_s0 + $0x18] ss:$12 sps:$4 sm:$0xff]  }
   0x9   :  { %v744_v22 = vld [vmem:[%s1024_s0 + $0xac] ss:$12 sps:$4 sm:$0xff]   ;;  %v748_v23 = vld [vmem:[%s1023_s1 + $0x80] sm:$0xff]   ;;  %v747_v25 = vld [vmem:[%s1024_s0 + $0xa8] ss:$12 sps:$4 sm:$0xff]  }
   0xa   :  { %v749_v26 = vld [vmem:[%s1024_s0 + $0x34] ss:$12 sps:$4 sm:$0xff]   ;;  %v754_v30 = vld [vmem:[%s1024_s0 + $0x4c] ss:$12 sps:$4 sm:$0xff]   ;;  %v758_v33 = vld [vmem:[%s1024_s0 + $0x50] ss:$12 sps:$4 sm:$0xff]  }
   0xb   :  { %614 = vmatpush3.bf16.msra.mxu0 %v724_v5  ;;  %713 = vmatpush3.bf16.msra.mxu1 %v724_v5  ;;  %v751_v27 = vld [vmem:[%s1024_s0 + $0x8] ss:$12 sps:$4 sm:$0xff]   ;;  %v753_v29 = vld [vmem:[%s1024_s0 + $0x20] ss:$12 sps:$4 sm:$0xff]   ;;  %v756_v31 = vld [vmem:[%s1024_s0 + $0x38] ss:$12 sps:$4 sm:$0xff]  }
   0xc   :  { %615 = vmatprep.subr.bf16.mxu0 %v725_v6  ;;  %706 = vmatprep.subr.bf16.mxu1 %v725_v6  ;;  %v757_v32 = vld [vmem:[%s1024_s0 + $0x48] ss:$12 sps:$4 sm:$0xff]   ;;  %v759_v34 = vld [vmem:[%s1024_s0 + $0x64] ss:$12 sps:$4 sm:$0xff]   ;;  %v762_v36 = vld [vmem:[%s1024_s0 + $0x60] ss:$12 sps:$4 sm:$0xff]  }
   0xd   :  { %v761_v35 = vld [vmem:[%s1024_s0 + $0x68] ss:$12 sps:$4 sm:$0xff]   ;;  %v763_v37 = vld [vmem:[%s1024_s0 + $0x80] ss:$12 sps:$4 sm:$0xff]   ;;  %v766_v39 = vld [vmem:[%s1024_s0 + $0x98] ss:$12 sps:$4 sm:$0xff]  }
   0xe   :  { %v764_v38 = vld [vmem:[%s1024_s0 + $0x7c] ss:$12 sps:$4 sm:$0xff]   ;;  %v767_v40 = vld [vmem:[%s1024_s0 + $0x78] ss:$12 sps:$4 sm:$0xff]   ;;  %v936_v60 = vld [vmem:[%s1025_s2] ss:$0 sm:$0xff] }
   0xf   :  { %616 = vmatpush3.bf16.msra.mxu0 %v726_v7  ;;  %714 = vmatpush3.bf16.msra.mxu1 %v726_v7  ;;  %v768_v41 = vld [vmem:[%s1024_s0 + $0xb0] ss:$12 sps:$4 sm:$0xff]  }
  0x10   :  { %617 = vmatprep.subr.bf16.mxu0 %v727_v8  ;;  %707 = vmatprep.subr.bf16.mxu1 %v727_v8 }
  0x13   :  { %618 = vmatpush3.bf16.msra.mxu0 %v728_v9  ;;  %715 = vmatpush3.bf16.msra.mxu1 %v728_v9 }
  0x14   :  { %619 = vmatprep.subr.bf16.mxu0 %v729_v10  ;;  %708 = vmatprep.subr.bf16.mxu1 %v729_v10 }
  0x17   :  { %620 = vmatpush3.bf16.msra.mxu0 %v730_v13  ;;  %716 = vmatpush3.bf16.msra.mxu1 %v730_v13 }
  0x18   :  { %621 = vmatprep.subr.bf16.mxu0 %v731_v14  ;;  %709 = vmatprep.subr.bf16.mxu1 %v731_v14 }
  0x1b   :  { %622 = vmatpush3.bf16.msra.mxu0 %v732_v15  ;;  %717 = vmatpush3.bf16.msra.mxu1 %v732_v15 }
  0x1c   :  { %623 = vmatprep.subr.bf16.mxu0 %v733_v16  ;;  %710 = vmatprep.subr.bf16.mxu1 %v733_v16 }
  0x1f   :  { %624 = vmatpush3.bf16.msra.mxu0 %v734_v17  ;;  %718 = vmatpush3.bf16.msra.mxu1 %v734_v17 }
  0x20   :  { %683 = vmatprep.subr.bf16.mxu1 %v741_v19 }
  0x22   :  { %376 = vmatmul.mubr.bf16.vlgmr.msra.gmra.mxu0 %v735_v18  ;;  %424 = vmatmul.mubr.bf16.vlgmr.msra.gmra.mxu1 %v738_v20 }
  0x23   :  { %684 = vmatpush3.bf16.msra.mxu1 %v741_v19  ;;  %383 = vmatprep.mubr.bf16.mxu0 %v742_v21 }
  0x24   :  { %431 = vmatprep.mubr.bf16.mxu1 %v744_v22  ;;  %685 = vmatprep.subr.bf16.mxu1 %v748_v23 }
  0x27   :  { %686 = vmatpush3.bf16.msra.mxu1 %v748_v23 }
  0x2a   :  { %384 = vmatmul.mubr.bf16.gmra.mxu0 %v746_v24  ;;  %432 = vmatmul.mubr.bf16.gmra.mxu1 %v747_v25 }
  0x2b   :  { %391 = vmatprep.mubr.bf16.mxu0 %v749_v26  ;;  %687 = vmatprep.mubr.msk.bf16.mxu1 %vm318_vm0, %v751_v27 }
  0x32   :  { %392 = vmatmul.mubr.bf16.gmra.mxu0 %v752_v28  ;;  %688 = vmatmul.mubr.msk.bf16.vlgmr.msra.gmra.mxu1 %vm318_vm0, %v753_v29 }
  0x33   :  { %399 = vmatprep.mubr.bf16.mxu0 %v754_v30  ;;  %691 = vmatprep.mubr.msk.bf16.mxu1 %vm318_vm0, %v756_v31 }
  0x3a   :  { %400 = vmatmul.mubr.bf16.gmra.mxu0 %v757_v32  ;;  %692 = vmatmul.mubr.msk.bf16.gmra.mxu1 %vm318_vm0, %v758_v33 }
  0x3b   :  { %407 = vmatprep.mubr.bf16.mxu0 %v759_v34  ;;  %695 = vmatprep.mubr.msk.bf16.mxu1 %vm318_vm0, %v761_v35 }
  0x42   :  { %408 = vmatmul.mubr.bf16.gmra.mxu0 %v762_v36  ;;  %696 = vmatmul.mubr.msk.bf16.gmra.mxu1 %vm318_vm0, %v763_v37 }
  0x43   :  { %415 = vmatprep.mubr.bf16.mxu0 %v764_v38  ;;  %699 = vmatprep.mubr.msk.bf16.mxu1 %vm318_vm0, %v766_v39 }
  0x4a   :  { %416 = vmatmul.mubr.bf16.gmra.mxu0 %v767_v40  ;;  %700 = vmatmul.mubr.msk.bf16.gmra.mxu1 %vm318_vm0, %v768_v41 }
  0xe2   :  { %v625_v42 = vpop.f32.mrf.mxu0  ;;  %v923_v43 = vpop.f32.mrf.mxu1 }
  0xe4   :  { %v626_v44 = vpop.f32.mrf.mxu0  ;;  %v925_v45 = vpop.f32.mrf.mxu1 }
  0xe5   :  { %v627_v57 = vadd.f32 %v626_v44, %v625_v42  ;;  %v663_v44 = vadd.f32 %v925_v45, %v923_v43 }
  0xe6   :  { %v628_v46 = vpop.f32.mrf.mxu0  ;;  %v927_v47 = vpop.f32.mrf.mxu1 }
  0xe7   :  { %v378_v3 = vadd.f32 %v627_v57, %v936_v60 }
  0xe8   :  { %v629_v48 = vpop.f32.mrf.mxu0  ;;  %v929_v49 = vpop.f32.mrf.mxu1 }
  0xe9   :  { %v630_v1 = vadd.f32 %v629_v48, %v628_v46  ;;  %v666_v43 = vadd.f32 %v929_v49, %v927_v47 }
  0xea   :  { %v631_v50 = vpop.f32.mrf.mxu0  ;;  %v667_v51 = vpop.f32.mrf.mxu1 }
  0xeb   :  { %v381_v12 = vadd.f32 %v630_v1, %v936_v60 }
  0xec   :  { %v632_v52 = vpop.f32.mrf.mxu0  ;;  %v668_v53 = vpop.f32.mrf.mxu1 }
  0xed   :  { %v633_v54 = vadd.f32 %v632_v52, %v631_v50  ;;  %v669_v38 = vadd.f32 %v668_v53, %v667_v51 }
  0xee   :  { %v634_v55 = vpop.f32.mrf.mxu0  ;;  %v931_v56 = vpop.f32.mrf.mxu1 }
  0xef   :  { %v386_v62 = vadd.f32 %v633_v54, %v936_v60  ;;  %v434_v53 = vadd.f32 %v669_v38, %v936_v60 }
  0xf0   :  { %v635_v58 = vpop.f32.mrf.mxu0  ;;  %v671_v59 = vpop.f32.mrf.mxu1 }
  0xf1   :  { %v636_v61 = vadd.f32 %v635_v58, %v634_v55  ;;  %v672_v52 = vadd.f32 %v671_v59, %v931_v56 }
  0xf2   :  { %v637_v63 = vpop.f32.mrf.mxu0  ;;  %v689_v0 = vpop.f32.mrf.mxu1 }
  0xf3   :  { %v483_v2 = vadd.f32 %v689_v0, %v386_v62  ;;  %v389_v7 = vadd.f32 %v636_v61, %v936_v60  ;;  %v426_v61 = vadd.f32 %v663_v44, %v936_v60  ;;  %v437_v49 = vadd.f32 %v672_v52, %v936_v60 }
  0xf4   :  { %v638_v4 = vpop.f32.mrf.mxu0  ;;  %v474_v5 = vpop.f32.mrf.mxu1 }
  0xf5   :  { %540 = vst.msk [vmem:[%s1026_s3 + $0x10] sm:$0xff] %vm537_vm1, %v483_v2  ;;  %v475_v6 = vadd.f32 %v474_v5, %v378_v3  ;;  %v639_v10 = vadd.f32 %v638_v4, %v637_v63  ;;  %v429_v4 = vadd.f32 %v666_v43, %v936_v60 }
  0xf6   :  { %v640_v8 = vpop.f32.mrf.mxu0  ;;  %v690_v9 = vpop.f32.mrf.mxu1 }
  0xf7   :  { %538 = vst.msk [vmem:[%s1026_s3] sm:$0xff] %vm537_vm1, %v475_v6  ;;  %v486_v11 = vadd.f32 %v690_v9, %v389_v7  ;;  %v394_v19 = vadd.f32 %v639_v10, %v936_v60 }
  0xf8   :  { %v641_v13 = vpop.f32.mrf.mxu0  ;;  %v477_v14 = vpop.f32.mrf.mxu1 }
  0xf9   :  { %541 = vst.msk [vmem:[%s1026_s3 + $0x18] sm:$0xff] %vm537_vm1, %v486_v11  ;;  %v478_v15 = vadd.f32 %v477_v14, %v381_v12  ;;  %v642_v18 = vadd.f32 %v641_v13, %v640_v8 }
  0xfa   :  { %v643_v16 = vpop.f32.mrf.mxu0  ;;  %v693_v17 = vpop.f32.mrf.mxu1 }
  0xfb   :  { %539 = vst.msk [vmem:[%s1026_s3 + $0x8] sm:$0xff] %vm537_vm1, %v478_v15  ;;  %v397_v27 = vadd.f32 %v642_v18, %v936_v60 }
  0xfc   :  { %v644_v20 = vpop.f32.mrf.mxu0  ;;  %v490_v21 = vpop.f32.mrf.mxu1 }
  0xfd   :  { %v645_v22 = vadd.f32 %v644_v20, %v643_v16  ;;  %v491_v23 = vadd.f32 %v490_v21, %v394_v19 }
  0xfe   :  { %v646_v24 = vpop.f32.mrf.mxu0  ;;  %v694_v25 = vpop.f32.mrf.mxu1 }
  0xff   :  { %v402_v26 = vadd.f32 %v645_v22, %v936_v60  ;;  %542 = vst.msk [vmem:[%s1026_s3 + $0x20] sm:$0xff] %vm537_vm1, %v491_v23 }
 0x100   :  { %v647_v28 = vpop.f32.mrf.mxu0  ;;  %v493_v29 = vpop.f32.mrf.mxu1 }
 0x101   :  { %v499_v30 = vadd.f32 %v693_v17, %v402_v26  ;;  %v648_v31 = vadd.f32 %v647_v28, %v646_v24  ;;  %v494_v32 = vadd.f32 %v493_v29, %v397_v27 }
 0x102   :  { %v649_v33 = vpop.f32.mrf.mxu0  ;;  %v697_v34 = vpop.f32.mrf.mxu1 }
 0x103   :  { %544 = vst.msk [vmem:[%s1026_s3 + $0x30] sm:$0xff] %vm537_vm1, %v499_v30  ;;  %v405_v35 = vadd.f32 %v648_v31, %v936_v60  ;;  %543 = vst.msk [vmem:[%s1026_s3 + $0x28] sm:$0xff] %vm537_vm1, %v494_v32 }
 0x104   :  { %v650_v36 = vpop.f32.mrf.mxu0  ;;  %v506_v37 = vpop.f32.mrf.mxu1 }
 0x105   :  { %v502_v39 = vadd.f32 %v694_v25, %v405_v35  ;;  %v651_v40 = vadd.f32 %v650_v36, %v649_v33 }
 0x106   :  { %v652_v41 = vpop.f32.mrf.mxu0  ;;  %v698_v42 = vpop.f32.mrf.mxu1 }
 0x107   :  { %545 = vst.msk [vmem:[%s1026_s3 + $0x38] sm:$0xff] %vm537_vm1, %v502_v39  ;;  %v410_v46 = vadd.f32 %v651_v40, %v936_v60 }
 0x108   :  { %v653_v48 = vpop.f32.mrf.mxu0  ;;  %v509_v50 = vpop.f32.mrf.mxu1 }
 0x109   :  { %v507_v54 = vadd.f32 %v506_v37, %v410_v46  ;;  %v654_v51 = vadd.f32 %v653_v48, %v652_v41 }
 0x10a   :  { %v655_v55 = vpop.f32.mrf.mxu0  ;;  %v701_v57 = vpop.f32.mrf.mxu1 }
 0x10b   :  { %546 = vst.msk [vmem:[%s1026_s3 + $0x40] sm:$0xff] %vm537_vm1, %v507_v54  ;;  %v413_v45 = vadd.f32 %v654_v51, %v936_v60  ;;  %v531_v58 = vadd.f32 %v701_v57, %v434_v53 }
 0x10c   :  { %v656_v56 = vpop.f32.mrf.mxu0  ;;  %v522_v59 = vpop.f32.mrf.mxu1 }
 0x10d   :  { %v510_v62 = vadd.f32 %v509_v50, %v413_v45  ;;  %552 = vst.msk [vmem:[%s1026_s3 + $0x70] sm:$0xff] %vm537_vm1, %v531_v58  ;;  %v657_v63 = vadd.f32 %v656_v56, %v655_v55  ;;  %v523_v47 = vadd.f32 %v522_v59, %v426_v61 }
 0x10e   :  { %v658_v0 = vpop.f32.mrf.mxu0  ;;  %v702_v1 = vpop.f32.mrf.mxu1 }
 0x10f   :  { %547 = vst.msk [vmem:[%s1026_s3 + $0x48] sm:$0xff] %vm537_vm1, %v510_v62  ;;  %v418_v2 = vadd.f32 %v657_v63, %v936_v60  ;;  %550 = vst.msk [vmem:[%s1026_s3 + $0x60] sm:$0xff] %vm537_vm1, %v523_v47  ;;  %v534_v3 = vadd.f32 %v702_v1, %v437_v49 }
 0x110   :  { %v659_v5 = vpop.f32.mrf.mxu0  ;;  %v525_v6 = vpop.f32.mrf.mxu1 }
 0x111   :  { %v515_v7 = vadd.f32 %v697_v34, %v418_v2  ;;  %553 = vst.msk [vmem:[%s1026_s3 + $0x78] sm:$0xff] %vm537_vm1, %v534_v3  ;;  %v660_v8 = vadd.f32 %v659_v5, %v658_v0  ;;  %v526_v9 = vadd.f32 %v525_v6, %v429_v4 }
 0x113   :  { %548 = vst.msk [vmem:[%s1026_s3 + $0x50] sm:$0xff] %vm537_vm1, %v515_v7  ;;  %v421_v10 = vadd.f32 %v660_v8, %v936_v60  ;;  %551 = vst.msk [vmem:[%s1026_s3 + $0x68] sm:$0xff] %vm537_vm1, %v526_v9 }
 0x115   :  { %v518_v11 = vadd.f32 %v698_v42, %v421_v10 }
 0x117   :  { %549 = vst.msk [vmem:[%s1026_s3 + $0x58] sm:$0xff] %vm537_vm1, %v518_v11 }

</bundles_post_ra>
